<compile_context>
chip_gen: v6e
topology: v6e:2x2x1
jax: 0.10.0
libtpu: 0.0.40
codegen_flags: <defaults>
</compile_context>

<pallas_src>
import jax
import jax.numpy as jnp
from jax.experimental import pallas as pl
from jax.experimental.pallas import tpu as pltpu

# ---- model hyper-parameters (lane/sublane aligned) ---------------------------
EMBED = 128                 # embed_size  -> maps to the 128-lane axis
INNER = 4 * EMBED           # inner_dim   (FeedForwardLayer(embed, dropout, 4*embed))
DROPOUT = 0.1               # stored by the module, never applied in forward
MAX_TM = 1024               # upper bound on the row tile


def _choose_tm(m):
    """Largest 8-aligned row tile <= MAX_TM that still leaves >=2 grid steps.

    >=2 steps keeps both v7x TensorCores busy (leading 'parallel' axis); only
    very small inputs (m <= 8) collapse to a single step.
    """
    for tm in (1024, 512, 256, 128, 64, 32, 16, 8):
        if tm <= MAX_TM and pl.cdiv(m, tm) >= 2:
            return tm
    return 8


# ---- Pallas kernel -----------------------------------------------------------
def ffn_kernel(x_ref, w1t_ref, b1_ref, w2t_ref, b2_ref, o_ref):
    # x_ref: (TM, EMBED) f32   w1t_ref: (EMBED, INNER) bf16
    # b1_ref: (1, INNER) f32   w2t_ref: (INNER, EMBED) bf16   b2_ref: (1, EMBED) f32
    x = x_ref[...].astype(jnp.bfloat16)                       # bf16 MXU operand
    h = jnp.dot(x, w1t_ref[...], preferred_element_type=jnp.float32)
    h = jnp.maximum(h + b1_ref[...], 0.0)                     # bias + ReLU in f32 (VPU)
    y = jnp.dot(h.astype(jnp.bfloat16), w2t_ref[...],
                preferred_element_type=jnp.float32)
    o_ref[...] = (y + b2_ref[...]).astype(o_ref.dtype)        # lane-dense full vst


# ---- wrapper -----------------------------------------------------------------
def feed_forward(x, params):
    """x: (..., EMBED) -> (..., EMBED), matching FeedForwardLayer.forward."""
    orig_shape = x.shape
    e = orig_shape[-1]
    assert e == EMBED
    m = 1
    for d in orig_shape[:-1]:
        m *= d
    x2 = x.reshape(m, e)

    tm = _choose_tm(m)
    grid = (pl.cdiv(m, tm),)            # ragged tail handled by Pallas boundary clamp

    out = pl.pallas_call(
        ffn_kernel,
        out_shape=jax.ShapeDtypeStruct((m, e), x.dtype),
        grid_spec=pltpu.PrefetchScalarGridSpec(
            num_scalar_prefetch=0,
            grid=grid,
            in_specs=[
                # x rows: streamed, double-buffered (default)
                pl.BlockSpec((tm, EMBED), lambda i: (i, 0)),
                # weights / biases: grid-invariant -> resident, single-buffered
                pl.BlockSpec((EMBED, INNER), lambda i: (0, 0),
                             pipeline_mode=pl.Buffered(1)),
                pl.BlockSpec((1, INNER), lambda i: (0, 0),
                             pipeline_mode=pl.Buffered(1)),
                pl.BlockSpec((INNER, EMBED), lambda i: (0, 0),
                             pipeline_mode=pl.Buffered(1)),
                pl.BlockSpec((1, EMBED), lambda i: (0, 0),
                             pipeline_mode=pl.Buffered(1)),
            ],
            out_specs=pl.BlockSpec((tm, EMBED), lambda i: (i, 0)),
        ),
        compiler_params=pltpu.CompilerParams(
            dimension_semantics=("parallel",)),                # megacore / v7x 2-TC
    )(x2, params["w1t"], params["b1"], params["w2t"], params["b2"])

    return out.reshape(orig_shape)


# ---- deterministic parameter init (torch nn.Linear-style uniform) ------------
def init_params(key, embed=EMBED, inner=INNER):
    k1, k2, k3, k4 = jax.random.split(key, 4)

    def u(k, shape, fan_in):
        bound = 1.0 / (fan_in ** 0.5)
        return jax.random.uniform(k, shape, jnp.float32, -bound, bound)

    w1 = u(k1, (inner, embed), embed)   # torch weight layout: (out, in)
    b1 = u(k2, (inner,), embed)
    w2 = u(k3, (embed, inner), inner)
    b2 = u(k4, (embed,), inner)
    return {
        # one-time host-side transpose + bf16 cast: kernel contracts along rows
        # and feeds the MXU bf16 operands (f32 accumulation inside the kernel).
        "w1t": jnp.asarray(w1.T, dtype=jnp.bfloat16),    # (EMBED, INNER)
        "b1": b1.reshape(1, inner).astype(jnp.float32),
        "w2t": jnp.asarray(w2.T, dtype=jnp.bfloat16),    # (INNER, EMBED)
        "b2": b2.reshape(1, embed).astype(jnp.float32),
    }


# ---- pure-JAX reference (same math & casts, outside Pallas) -------------------
def forward_ref(x, params):
    h = jnp.dot(x.astype(jnp.bfloat16), params["w1t"],
                preferred_element_type=jnp.float32)
    h = jnp.maximum(h + params["b1"], 0.0)
    y = jnp.dot(h.astype(jnp.bfloat16), params["w2t"],
                preferred_element_type=jnp.float32)
    return (y + params["b2"]).astype(x.dtype)


if __name__ == "__main__":
    key = jax.random.PRNGKey(0)
    pkey, xkey = jax.random.split(key)
    params = init_params(pkey)

    # input: (batch=4, seq=256, embed=128) -> 1024 rows -> TM=512, 2 grid steps
    x = jax.random.normal(xkey, (4, 256, EMBED), jnp.float32)

    out = feed_forward(x, params)
    out = jax.block_until_ready(out)

    ref = forward_ref(x, params)
    assert out.shape == x.shape
    assert jnp.allclose(out, ref, atol=1e-2, rtol=1e-2), "kernel/reference mismatch"

    print("KERNEL_OK")
</pallas_src>

<mosaic_0001>
module attributes {stable_mosaic.version = 11 : i64} {
  func.func @ffn_kernel(%arg0: i32, %arg1: memref<512x128xf32, #tpu.memory_space<vmem>>, %arg2: memref<128x512xbf16, #tpu.memory_space<vmem>>, %arg3: memref<1x512xf32, #tpu.memory_space<vmem>>, %arg4: memref<512x128xbf16, #tpu.memory_space<vmem>>, %arg5: memref<1x128xf32, #tpu.memory_space<vmem>>, %arg6: memref<512x128xf32, #tpu.memory_space<vmem>>) attributes {dimension_semantics = [#tpu.dimension_semantics<parallel>], iteration_bounds = array<i64: 2>, scalar_prefetch = 0 : i64, scratch_operands = 0 : i64, tpu.core_type = #tpu.core_type<tc>, window_params = [{transform_indices = @transform_0, window_bounds = array<i64: 512, 128>}, {pipeline_mode = #tpu.pipeline_mode<synchronous>, transform_indices = @transform_1, window_bounds = array<i64: 128, 512>}, {pipeline_mode = #tpu.pipeline_mode<synchronous>, transform_indices = @transform_2, window_bounds = array<i64: 1, 512>}, {pipeline_mode = #tpu.pipeline_mode<synchronous>, transform_indices = @transform_3, window_bounds = array<i64: 512, 128>}, {pipeline_mode = #tpu.pipeline_mode<synchronous>, transform_indices = @transform_4, window_bounds = array<i64: 1, 128>}, {transform_indices = @transform_5, window_bounds = array<i64: 512, 128>}]} {
    %c0 = arith.constant 0 : index
    %c0_0 = arith.constant 0 : index
    %0 = vector.load %arg1[%c0, %c0_0] : memref<512x128xf32, #tpu.memory_space<vmem>>, vector<512x128xf32>
    %1 = arith.truncf %0 : vector<512x128xf32> to vector<512x128xbf16>
    %c0_1 = arith.constant 0 : index
    %c0_2 = arith.constant 0 : index
    %2 = vector.load %arg2[%c0_1, %c0_2] : memref<128x512xbf16, #tpu.memory_space<vmem>>, vector<128x512xbf16>
    %cst = arith.constant dense<0.000000e+00> : vector<512x512xf32>
    %3 = tpu.matmul %1, %2, %cst {dimension_numbers = #tpu.dot_dimension_numbers<[1], [0], [0], [1], [0, 0, 1, 1], [], []>} : vector<512x128xbf16>, vector<128x512xbf16>, vector<512x512xf32> -> vector<512x512xf32>
    %c0_3 = arith.constant 0 : index
    %c0_4 = arith.constant 0 : index
    %4 = vector.load %arg3[%c0_3, %c0_4] : memref<1x512xf32, #tpu.memory_space<vmem>>, vector<1x512xf32>
    %5 = vector.broadcast %4 : vector<1x512xf32> to vector<512x512xf32>
    %6 = arith.addf %3, %5 : vector<512x512xf32>
    %cst_5 = arith.constant 0.000000e+00 : f32
    %7 = vector.broadcast %cst_5 : f32 to vector<512x512xf32>
    %8 = arith.maximumf %6, %7 : vector<512x512xf32>
    %9 = arith.truncf %8 : vector<512x512xf32> to vector<512x512xbf16>
    %c0_6 = arith.constant 0 : index
    %c0_7 = arith.constant 0 : index
    %10 = vector.load %arg4[%c0_6, %c0_7] : memref<512x128xbf16, #tpu.memory_space<vmem>>, vector<512x128xbf16>
    %cst_8 = arith.constant dense<0.000000e+00> : vector<512x128xf32>
    %11 = tpu.matmul %9, %10, %cst_8 {dimension_numbers = #tpu.dot_dimension_numbers<[1], [0], [0], [1], [0, 0, 1, 1], [], []>} : vector<512x512xbf16>, vector<512x128xbf16>, vector<512x128xf32> -> vector<512x128xf32>
    %c0_9 = arith.constant 0 : index
    %c0_10 = arith.constant 0 : index
    %12 = vector.load %arg5[%c0_9, %c0_10] : memref<1x128xf32, #tpu.memory_space<vmem>>, vector<1x128xf32>
    %13 = vector.broadcast %12 : vector<1x128xf32> to vector<512x128xf32>
    %14 = arith.addf %11, %13 : vector<512x128xf32>
    %c0_11 = arith.constant 0 : index
    %c0_12 = arith.constant 0 : index
    %15 = vector.load %arg6[%c0_11, %c0_12] : memref<512x128xf32, #tpu.memory_space<vmem>>, vector<512x128xf32>
    tpu.vector_store %arg6[%c0_11, %c0_12], %14 {strides = array<i32>} : memref<512x128xf32, #tpu.memory_space<vmem>>, vector<512x128xf32>,
    return
  }
  func.func @transform_0(%arg0: i32) -> (i32, i32) {
    %c0_i32 = arith.constant 0 : i32
    %c0_i32_0 = arith.constant 0 : i32
    return %arg0, %c0_i32 : i32, i32
  }
  func.func @transform_1(%arg0: i32) -> (i32, i32) {
    %c0_i32 = arith.constant 0 : i32
    %c0_i32_0 = arith.constant 0 : i32
    %c0_i32_1 = arith.constant 0 : i32
    return %c0_i32, %c0_i32_0 : i32, i32
  }
  func.func @transform_2(%arg0: i32) -> (i32, i32) {
    %c0_i32 = arith.constant 0 : i32
    %c0_i32_0 = arith.constant 0 : i32
    %c0_i32_1 = arith.constant 0 : i32
    return %c0_i32, %c0_i32_0 : i32, i32
  }
  func.func @transform_3(%arg0: i32) -> (i32, i32) {
    %c0_i32 = arith.constant 0 : i32
    %c0_i32_0 = arith.constant 0 : i32
    %c0_i32_1 = arith.constant 0 : i32
    return %c0_i32, %c0_i32_0 : i32, i32
  }
  func.func @transform_4(%arg0: i32) -> (i32, i32) {
    %c0_i32 = arith.constant 0 : i32
    %c0_i32_0 = arith.constant 0 : i32
    %c0_i32_1 = arith.constant 0 : i32
    return %c0_i32, %c0_i32_0 : i32, i32
  }
  func.func @transform_5(%arg0: i32) -> (i32, i32) {
    %c0_i32 = arith.constant 0 : i32
    %c0_i32_0 = arith.constant 0 : i32
    return %arg0, %c0_i32 : i32, i32
  }
}

</mosaic_0001>

<bundles_post_ra>
// kernel: tpu_custom_call.1
= control target key start
LH: loop header
LB: loop body
LE: loop exit
PB: predicated region body
PF: predicated region fallthrough
CT: control target
= control target key end

     0   :  { %10 = vsyncpa [#allocation3], 0  ;;  %s4726_s0 = inlined_call_operand.hbm [shape: f32[1024,128], index: 0, kind: input, shape index: {}]   ;;  %s4727_s1 = inlined_call_operand.hbm [shape: bf16[128,512], index: 1, kind: input, shape index: {}]   ;;  %s4728_s2 = inlined_call_operand.hbm [shape: f32[1,512], index: 2, kind: input, shape index: {}]   ;;  %s4729_s3 = inlined_call_operand.hbm [shape: bf16[512,128], index: 3, kind: input, shape index: {}]   ;;  %s4730_s4 = inlined_call_operand.vmem [shape: f32[1,128], index: 4, kind: input, shape index: {}]   ;;  %s4731_s5 = inlined_call_operand.hbm [shape: f32[1024,128], index: 5, kind: output, shape index: {}]  }
   0x1   :  { %12 = vsyncpa [#allocation3 + $0x1], 0 }
   0x2   :  { %13 = vsyncpa [#allocation6], 0 }
   0x3   :  { %14 = vsyncpa [#allocation9], 0 }
   0x4   :  { %15 = vsyncpa [#allocation4], 0 }
   0x5   :  { %17 = vsyncpa [#allocation4 + $0x1], 0  ;;  %s3187_s18 = smov 0   ;;  %s3189_s19 = smov 0  }
   0x6   :  { %s3191_s20 = smov 0   ;;  %s3193_s21 = smov 0  }
   0x7 LB: > { %s3208_s22 = sadd.s32 4294967295, %s3141_s21   ;;  %s2709_s23 = sadd.s32 4294967294, %s3141_s21   ;;  %s3141_s21 = sphi %s3193_s21, %s4845_s21   ;;  %s3137_s20 = sphi %s3191_s20, %s4844_s20   ;;  %s3133_s19 = sphi %s3189_s19, %s4843_s19   ;;  %s3129_s18 = sphi %s3187_s18, %s4842_s18  }
   0x8   : > { %p43_p0 = scmp.ne.s32.totalorder %s3133_s19, %s3129_s18  ;;  %p4732_p1 = scmp.eq.s32.totalorder %s3208_s22, 0 }
   0x9   : > { %p157_p3 = scmp.eq.s32.totalorder %s2709_s23, 1  ;;  %p2710_p5 = scmp.ge.s32.totalorder %s3141_s21, 1 }
   0xa   : > { %p3217_p4 = por %p4732_p1, %p43_p0  ;;  %p164_p7 = scmp.lt.s32.totalorder %s3141_s21, 3 }
   0xb   : > { %p3222_p6 = por %p157_p3, %p43_p0  ;;  %s3143_s27 = smov [#allocation5]  }
   0xc   : > { %s4736_s24 = scalar_select %p3217_p4, 1, 0 }
   0xd   : > { %s4737_s25 = scalar_select %p3222_p6, 1, 0 }
   0xe   : > { %p3227_p8 = pnand %p2710_p5, %p164_p7  ;;  %s176_s28 = sshll.u32 %s3143_s27, 4  ;;  %s177_s28 = int_to_ptr.vmem [resolvable:$true] %s176_s28 }
   0xf   : > { %s3144_s30 = smov [#allocation7]   ;;  %s3145_s7 = smov [#allocation8]  }
  0x10   : > { %s4738_s26 = scalar_select %p3227_p8, 1, 0 }
  0x11   : > { %p2812_p9 = pneg %p3227_p8  ;;  %s190_s6 = sshll.u32 %s3144_s30, 4  ;;  %s191_s6 = int_to_ptr.vmem [resolvable:$true] %s190_s6 }
  0x12   : > { %s200_s8 = sshll.u32 %s3145_s7, 4  ;;  %s2974_s9 = scalar_lea.vmem %s177_s28, 4096  ;;  %s201_s8 = int_to_ptr.vmem [resolvable:$true] %s200_s8 }
  0x13   : > { %p3236_p11 = pnand %p2812_p9, %p4732_p1  ;;  %p2975_p13 = scmp.ne.s32.totalorder %s177_s28, %s2974_s9 }
  0x14   : > { %p2982_p5 = scmp.lt.s32.totalorder %s177_s28, %s177_s28  ;;  %p2983_p7 = scmp.lt.s32.totalorder %s2974_s9, %s2974_s9 }
  0x15   : > { %p2965_p12 = pneg %p3236_p11 }
  0x16   : > { %p2984_p9 = por %p2983_p7, %p2982_p5 }
  0x17   : > { %p2977_p0 = pnand %p2975_p13, %p2965_p12 }
  0x19   : > { %p2978_p3 = pneg %p2977_p0 }
  0x1b   : > { %p2985_p10 = pnand %p2984_p9, %p2978_p3 }
  0x1d   : > { %2988 = shalt.err (!%p2985_p10)
}
  0x1e   : > { %s3146_s10 = smov 256   ;;  %s3147_s11 = smov 16  }
  0x1f   : > { %2815 = dma.hbm_to_vmem [thread:$0]  (!%p3236_p11), %s4727_s1, 4096, %s177_s28, [#allocation6], %s3146_s10, %s3146_s10, %s3147_s11  }
  0x20   : > { %s3000_s14 = scalar_lea.vmem %s191_s6, 64  ;;  %p3008_p2 = scmp.lt.s32.totalorder %s191_s6, %s191_s6 }
  0x21   : > { %p3001_p1 = scmp.ne.s32.totalorder %s191_s6, %s3000_s14  ;;  %p3009_p6 = scmp.lt.s32.totalorder %s3000_s14, %s3000_s14 }
  0x23   : > { %p3003_p13 = pnand %p3001_p1, %p2965_p12  ;;  %p3010_p5 = por %p3009_p6, %p3008_p2 }
  0x25   : > { %p3004_p0 = pneg %p3003_p13 }
  0x27   : > { %p3011_p3 = pnand %p3010_p5, %p3004_p0 }
  0x29   : > { %3014 = shalt.err (!%p3011_p3)
}
  0x2a   : > { %2818 = dma.hbm_to_vmem [thread:$0]  (!%p3236_p11), %s4728_s2, 64, %s191_s6, [#allocation6]  }
  0x2b   : > { %s3026_s17 = scalar_lea.vmem %s201_s8, 4096  ;;  %p3034_p9 = scmp.lt.s32.totalorder %s201_s8, %s201_s8 }
  0x2c   : > { %p3027_p10 = scmp.ne.s32.totalorder %s201_s8, %s3026_s17  ;;  %p3035_p13 = scmp.lt.s32.totalorder %s3026_s17, %s3026_s17 }
  0x2e   : > { %p3029_p7 = pnand %p3027_p10, %p2965_p12  ;;  %p3036_p4 = por %p3035_p13, %p3034_p9 }
  0x30   : > { %p3030_p1 = pneg %p3029_p7 }
  0x32   : > { %p3037_p2 = pnand %p3036_p4, %p3030_p1 }
  0x34   : > { %3040 = shalt.err (!%p3037_p2)
}
  0x35   : > { %s3148_s23 = smov 64   ;;  %s3149_s27 = smov 4  }
  0x36   : > { %2821 = dma.hbm_to_vmem [thread:$0]  (!%p3236_p11), %s4729_s3, 4096, %s201_s8, [#allocation9], %s3148_s23, %s3148_s23, %s3149_s27  }
  0x37   : > { %s3267_s6 = sadd.s32 1, %s3141_s21   ;;  %s30_s9 = sadd.s32 1, %s3137_s20 }
  0x38   : > { %s27_s7 = ssub.s32 %s3141_s21, %s3267_s6  ;;  %p37_p6 = scmp.ne.s32.totalorder %s3137_s20, %s3133_s19 }
  0x39   : > { %p28_p4 = scmp.eq.s32.totalorder %s27_s7, 0  ;;  %p38_p12 = scmp.eq.s32.totalorder %s3141_s21, 0 }
  0x3a   : > { %p2833_p0 = scmp.lt.s32.totalorder %s3141_s21, 2  ;;  %p4740_p3 = scmp.eq.s32.totalorder %s3208_s22, 1 }
  0x3b   : > { %s3277_s10 = scalar_select %p28_p4, %s3137_s20, %s30_s9  }
  0x3c   : > { %p39_p5 = por %p38_p12, %p37_p6  ;;  %p3281_p10 = por %p4740_p3, %p37_p6 }
  0x3d   : > { %s217_s29 = sand.u32 1, %s3137_s20   ;;  %s2794_s12 = sshll.u32 %s3141_s21, 13 }
  0x3e   : > { %s4741_s11 = scalar_select %p3281_p10, 1, 0 }
  0x3f   : > { %s2715_s8 = sshll.u32 %s217_s29, 9  ;;  %s3290_s15 = scalar_lea.hbm %s4726_s0, %s2794_s12 }
  0x40   : > { %s221_s16 = scalar_lea.vmem [#allocation2], %s2715_s8  ;;  %p3292_p11 = pnand %p2833_p0, %p39_p5 }
  0x41   : > { %s228_s17 = sshll.u32 %s221_s16, 4  ;;  %s3298_s27 = scalar_lea.sflag [#allocation3], %s217_s29  ;;  %s3296_s17 = int_to_ptr.vmem [resolvable:$true] %s228_s17 }
  0x42   : > { %s3041_s28 = scalar_lea.hbm %s3290_s15, 8192  ;;  %p3043_p1 = pneg %p3292_p11 }
  0x43   : > { %p3042_p7 = scmp.ne.s32.totalorder %s3290_s15, %s3041_s28  ;;  %s3046_s9 = scalar_lea.hbm %s4726_s0, 16384 }
  0x44   : > { %p3047_p2 = scmp.lt.s32.totalorder %s3290_s15, %s4726_s0  ;;  %p3048_p4 = scmp.lt.s32.totalorder %s3046_s9, %s3041_s28 }
  0x45   : > { %p3044_p9 = pnand %p3043_p1, %p3042_p7 }
  0x46   : > { %p3049_p6 = por %p3048_p4, %p3047_p2 }
  0x47   : > { %p3045_p13 = pneg %p3044_p9 }
  0x49   : > { %p3050_p12 = pnand %p3049_p6, %p3045_p13 }
  0x4b   : > { %3053 = shalt.err (!%p3050_p12)
}
  0x4c   : > { %s3054_s29 = scalar_lea.vmem %s3296_s17, 8192  ;;  %s3150_s13 = smov [#allocation2]  }
  0x4d   : > { %p3055_p0 = scmp.ne.s32.totalorder %s3296_s17, %s3054_s29  ;;  %s3059_s14 = sshll.u32 %s3150_s13, 4  ;;  %s3060_s14 = int_to_ptr.vmem [resolvable:$false] %s3059_s14 }
  0x4e   : > { %s3061_s16 = scalar_lea.vmem %s3060_s14, 16384  ;;  %p3062_p7 = scmp.lt.s32.totalorder %s3296_s17, %s3060_s14 }
  0x4f   : > { %p3057_p5 = pnand %p3055_p0, %p3043_p1  ;;  %p3063_p9 = scmp.lt.s32.totalorder %s3061_s16, %s3054_s29 }
  0x51   : > { %p3058_p3 = pneg %p3057_p5  ;;  %p3064_p10 = por %p3063_p9, %p3062_p7 }
  0x53   : > { %p3065_p8 = pnand %p3064_p10, %p3058_p3 }
  0x55   : > { %3068 = shalt.err (!%p3065_p8)
}
  0x56   : > { %s3151_s28 = smov 128   ;;  %s3152_s30 = smov 8  }
  0x57   : > { %2825 = dma.hbm_to_vmem [thread:$0]  (!%p3292_p11), %s3290_s15, 8192, %s3296_s17, %s3298_s27, %s3151_s28, %s3151_s28, %s3152_s30  }
  0x58   : > { %p4743_p1 = scmp.ne.s32.totalorder %s4738_s26, 0 }
  0x5a   : > { %240 = sbr.rel (%p4743_p1) target bundleno = 858 (0x35a), region = 40 }
  0x5f   : > { %s3322_s7 = sand.u32 1, %s3133_s19   ;;  %p4744_p8 = scmp.ne.s32.totalorder %s4736_s24, 0 }
  0x60   : > { %s2719_s9 = sshll.u32 %s3322_s7, 9  ;;  %s243_s12 = scalar_lea.sflag [#allocation3], %s3322_s7 }
  0x61   : > { %s3328_s8 = scalar_lea.vmem [#allocation2], %s2719_s9 }
  0x62   : > { %3112 = dma.done.wait (%p4744_p8), %s243_s12, 8192  }
  0x63   : > { %3114 = vsyncadd (%p4744_p8), %s243_s12, 4294959104  ;;  %p4745_p10 = scmp.eq.s32.totalorder %s3208_s22, 0 }
  0x65   : > { %3116 = dma.done.wait (%p4745_p10), [#allocation6], 4160   ;;  %p4746_p11 = pmov %p4745_p10 }
  0x66   : > { %p4747_p13 = pmov %p4745_p10 }
  0x67   : > { %3118 = vsyncadd (%p4746_p11), [#allocation6], 4294963136 }
  0x68   : > { %3120 = dma.done.wait (%p4747_p13), [#allocation9], 4096   ;;  %p4748_p2 = pmov %p4745_p10 }
  0x69   : > { %v3153_v0 = vmov 0   ;;  %v2882_v1 = vld [vmem:[#allocation5 + $0xe4] ss:$16 sps:$4 sm:$0xff]   ;;  %v2884_v2 = vld [vmem:[#allocation5 + $0xec] ss:$16 sps:$4 sm:$0xff]   ;;  %s4461_s15 = scalar_lea.vmem [#allocation10], %s2719_s9 }
  0x6a   : > { %3122 = vsyncadd (%p4748_p2), [#allocation9], 4294963200  ;;  %630 = vmatprep.mubr.bf16.mxu0 %v3153_v0  ;;  %983 = vmatprep.mubr.bf16.mxu1 %v3153_v0  ;;  %v2886_v3 = vld [vmem:[#allocation5 + $0xe0] ss:$16 sps:$4 sm:$0xff]   ;;  %v2887_v4 = vld [vmem:[#allocation5 + $0xe8] ss:$16 sps:$4 sm:$0xff]  }
  0x6b   : > { %598 = vmatprep.subr.bf16.mxu0 %v2882_v1  ;;  %951 = vmatprep.subr.bf16.mxu1 %v2884_v2  ;;  %v2888_v5 = vld [vmem:[#allocation5 + $0xc4] ss:$16 sps:$4 sm:$0xff]   ;;  %v2890_v6 = vld [vmem:[#allocation5 + $0xcc] ss:$16 sps:$4 sm:$0xff]   ;;  %v2892_v7 = vld [vmem:[#allocation5 + $0xc0] ss:$16 sps:$4 sm:$0xff]  }
  0x6c   : > { %599 = vmatpush1.bf16.msra.mxu0 %v2886_v3  ;;  %952 = vmatpush1.bf16.msra.mxu1 %v2887_v4  ;;  %v2893_v8 = vld [vmem:[#allocation5 + $0xc8] ss:$16 sps:$4 sm:$0xff]   ;;  %v2894_v9 = vld [vmem:[#allocation5 + $0xa4] ss:$16 sps:$4 sm:$0xff]   ;;  %v2896_v10 = vld [vmem:[#allocation5 + $0xac] ss:$16 sps:$4 sm:$0xff]  }
  0x6d   : > { %600 = vmatprep.subr.bf16.mxu0 %v2888_v5  ;;  %953 = vmatprep.subr.bf16.mxu1 %v2890_v6  ;;  %v2898_v11 = vld [vmem:[#allocation5 + $0xa0] ss:$16 sps:$4 sm:$0xff]   ;;  %v2899_v12 = vld [vmem:[#allocation5 + $0xa8] ss:$16 sps:$4 sm:$0xff]   ;;  %v2900_v13 = vld [vmem:[#allocation5 + $0x84] ss:$16 sps:$4 sm:$0xff]  }
  0x6e   : > { %v2902_v14 = vld [vmem:[#allocation5 + $0x8c] ss:$16 sps:$4 sm:$0xff]   ;;  %v2904_v15 = vld [vmem:[#allocation5 + $0x80] ss:$16 sps:$4 sm:$0xff]   ;;  %v2905_v16 = vld [vmem:[#allocation5 + $0x88] ss:$16 sps:$4 sm:$0xff]  }
  0x6f   : > { %v2906_v17 = vld [vmem:[#allocation5 + $0x64] ss:$16 sps:$4 sm:$0xff]   ;;  %v2908_v18 = vld [vmem:[#allocation5 + $0x6c] ss:$16 sps:$4 sm:$0xff]   ;;  %v2910_v19 = vld [vmem:[#allocation5 + $0x60] ss:$16 sps:$4 sm:$0xff]  }
  0x70   : > { %601 = vmatpush1.bf16.msra.mxu0 %v2892_v7  ;;  %954 = vmatpush1.bf16.msra.mxu1 %v2893_v8  ;;  %v2911_v20 = vld [vmem:[#allocation5 + $0x68] ss:$16 sps:$4 sm:$0xff]   ;;  %v2912_v21 = vld [vmem:[#allocation5 + $0x44] ss:$16 sps:$4 sm:$0xff]   ;;  %v2914_v22 = vld [vmem:[#allocation5 + $0x4c] ss:$16 sps:$4 sm:$0xff]  }
  0x71   : > { %602 = vmatprep.subr.bf16.mxu0 %v2894_v9  ;;  %955 = vmatprep.subr.bf16.mxu1 %v2896_v10  ;;  %v2916_v23 = vld [vmem:[#allocation5 + $0x40] ss:$16 sps:$4 sm:$0xff]   ;;  %v2917_v24 = vld [vmem:[#allocation5 + $0x48] ss:$16 sps:$4 sm:$0xff]   ;;  %v2918_v25 = vld [vmem:[#allocation5 + $0x24] ss:$16 sps:$4 sm:$0xff]  }
  0x72   : > { %v2920_v26 = vld [vmem:[#allocation5 + $0x2c] ss:$16 sps:$4 sm:$0xff]   ;;  %v2922_v27 = vld [vmem:[#allocation5 + $0x20] ss:$16 sps:$4 sm:$0xff]   ;;  %v2923_v28 = vld [vmem:[#allocation5 + $0x28] ss:$16 sps:$4 sm:$0xff]  }
  0x73   : > { %v2924_v29 = vld [vmem:[#allocation5 + $0x4] ss:$16 sps:$4 sm:$0xff]   ;;  %v2926_v30 = vld [vmem:[#allocation5 + $0xc] ss:$16 sps:$4 sm:$0xff]   ;;  %v2928_v31 = vld [vmem:[#allocation5] ss:$16 sps:$4 sm:$0xff]  }
  0x74   : > { %603 = vmatpush1.bf16.msra.mxu0 %v2898_v11  ;;  %956 = vmatpush1.bf16.msra.mxu1 %v2899_v12  ;;  %v2929_v32 = vld [vmem:[#allocation5 + $0x8] ss:$16 sps:$4 sm:$0xff]   ;;  %v288_v33 = vld [vmem:[%s3328_s8] sm:$0xff]  ;;  %v290_v38 = vld [vmem:[%s3328_s8 + $0x10] sm:$0xff]  ;;  %s2795_s27 = sshll.u32 %s3208_s22, 13  ;;  %s2607_s29 = sshll.u32 %s4461_s15, 4  ;;  %s4682_s29 = int_to_ptr.vmem [resolvable:$true] %s2607_s29 }
  0x75   : > { %604 = vmatprep.subr.bf16.mxu0 %v2900_v13  ;;  %957 = vmatprep.subr.bf16.mxu1 %v2902_v14  ;;  %v289_v34 = vld [vmem:[%s3328_s8 + $0x8] sm:$0xff]  ;;  %v2930_v36 = vld [vmem:[#allocation8 + $0x38] sm:$0xff]   ;;  %v2932_v40 = vld [vmem:[#allocation8 + $0x30] sm:$0xff]   ;;  %s4680_s16 = scalar_lea.hbm %s4731_s5, %s2795_s27  ;;  %s2594_s22 = scalar_lea.sflag [#allocation4], %s3322_s7 }
  0x76   : > { %v352_v35 = vpack.c.bf16 %v289_v34, %v288_v33  ;;  %v2931_v37 = vld [vmem:[#allocation8 + $0xb8] sm:$0xff]   ;;  %v2933_v41 = vld [vmem:[#allocation8 + $0xb0] sm:$0xff]   ;;  %v2934_v43 = vld [vmem:[#allocation8 + $0x28] sm:$0xff]   ;;  %s3069_s28 = scalar_lea.vmem %s4682_s29, 8192  ;;  %p4839_p6 = scmp.ne.s32.totalorder %s4741_s11, 0 }
  0x77   : > { %v291_v39 = vld [vmem:[%s3328_s8 + $0x18] sm:$0xff]  ;;  %v2935_v44 = vld [vmem:[#allocation8 + $0xa8] sm:$0xff]   ;;  %v292_v45 = vld [vmem:[%s3328_s8 + $0x20] sm:$0xff]  ;;  %p3070_p4 = scmp.ne.s32.totalorder %s4682_s29, %s3069_s28  ;;  %s3154_s30 = smov [#allocation10]  }
  0x78   : > { %605 = vmatpush1.bf16.msra.mxu0 %v2904_v15  ;;  %958 = vmatpush1.bf16.msra.mxu1 %v2905_v16  ;;  %v353_v42 = vpack.c.bf16 %v291_v39, %v290_v38  ;;  %v293_v46 = vld [vmem:[%s3328_s8 + $0x28] sm:$0xff]  ;;  %v2938_v50 = vld [vmem:[#allocation8 + $0x18] sm:$0xff]   ;;  %v294_v52 = vld [vmem:[%s3328_s8 + $0x30] sm:$0xff]  ;;  %s3073_s9 = sshll.u32 %s3154_s30, 4  ;;  %s3074_s9 = int_to_ptr.vmem [resolvable:$false] %s3073_s9 }
  0x79   : > { %606 = vmatprep.subr.bf16.mxu0 %v2906_v17  ;;  %959 = vmatprep.subr.bf16.mxu1 %v2908_v18  ;;  %v2936_v47 = vld [vmem:[#allocation8 + $0x20] sm:$0xff]   ;;  %v354_v49 = vpack.c.bf16 %v293_v46, %v292_v45  ;;  %v2939_v51 = vld [vmem:[#allocation8 + $0x98] sm:$0xff]   ;;  %v2940_v54 = vld [vmem:[#allocation8 + $0x10] sm:$0xff]   ;;  %p3071_p12 = pnand %p3070_p4, %p4839_p6  ;;  %s3075_s12 = scalar_lea.vmem %s3074_s9, 16384 }
  0x7a   : > { %v2937_v48 = vld [vmem:[#allocation8 + $0xa0] sm:$0xff]   ;;  %v295_v53 = vld [vmem:[%s3328_s8 + $0x38] sm:$0xff]  ;;  %v2942_v57 = vld [vmem:[#allocation8 + $0x8] sm:$0xff]   ;;  %p3076_p5 = scmp.lt.s32.totalorder %s4682_s29, %s3074_s9  ;;  %p3077_p3 = scmp.lt.s32.totalorder %s3075_s12, %s3069_s28 }
  0x7b   : > { %v2941_v55 = vld [vmem:[#allocation8 + $0x90] sm:$0xff]   ;;  %v355_v56 = vpack.c.bf16 %v295_v53, %v294_v52  ;;  %v2943_v58 = vld [vmem:[#allocation8 + $0x88] sm:$0xff]   ;;  %v296_v59 = vld [vmem:[%s3328_s8 + $0x40] sm:$0xff]  ;;  %p3072_p0 = pneg %p3071_p12 }
  0x7c   : > { %607 = vmatpush1.bf16.msra.mxu0 %v2910_v19  ;;  %960 = vmatpush1.bf16.msra.mxu1 %v2911_v20  ;;  %v297_v60 = vld [vmem:[%s3328_s8 + $0x48] sm:$0xff]  ;;  %v2946_v1 = vld [vmem:[#allocation8 + $0x78] sm:$0xff]   ;;  %v298_v3 = vld [vmem:[%s3328_s8 + $0x50] sm:$0xff]  ;;  %p3078_p7 = por %p3077_p3, %p3076_p5 }
  0x7d   : > { %608 = vmatprep.subr.bf16.mxu0 %v2912_v21  ;;  %961 = vmatprep.subr.bf16.mxu1 %v2914_v22  ;;  %v2944_v61 = vld [vmem:[#allocation8] sm:$0xff]   ;;  %v356_v63 = vpack.c.bf16 %v297_v60, %v296_v59  ;;  %v2947_v2 = vld [vmem:[#allocation8 + $0xf8] sm:$0xff]   ;;  %v2948_v5 = vld [vmem:[#allocation8 + $0x70] sm:$0xff]  }
  0x7e   : > { %v2945_v62 = vld [vmem:[#allocation8 + $0x80] sm:$0xff]   ;;  %v299_v4 = vld [vmem:[%s3328_s8 + $0x58] sm:$0xff]  ;;  %v2950_v8 = vld [vmem:[#allocation8 + $0x68] sm:$0xff]   ;;  %p3079_p9 = pnand %p3078_p7, %p3072_p0 }
  0x7f   : > { %v2949_v6 = vld [vmem:[#allocation8 + $0xf0] sm:$0xff]   ;;  %v357_v7 = vpack.c.bf16 %v299_v4, %v298_v3  ;;  %v2951_v9 = vld [vmem:[#allocation8 + $0xe8] sm:$0xff]   ;;  %v300_v10 = vld [vmem:[%s3328_s8 + $0x60] sm:$0xff] }
  0x80   : > { %609 = vmatpush1.bf16.msra.mxu0 %v2916_v23  ;;  %962 = vmatpush1.bf16.msra.mxu1 %v2917_v24  ;;  %v301_v11 = vld [vmem:[%s3328_s8 + $0x68] sm:$0xff]  ;;  %v302_v15 = vld [vmem:[%s3328_s8 + $0x70] sm:$0xff]  ;;  %v303_v16 = vld [vmem:[%s3328_s8 + $0x78] sm:$0xff] }
  0x81   : > { %610 = vmatprep.subr.bf16.mxu0 %v2918_v25  ;;  %963 = vmatprep.subr.bf16.mxu1 %v2920_v26  ;;  %v358_v12 = vpack.c.bf16 %v301_v11, %v300_v10  ;;  %v2952_v13 = vld [vmem:[#allocation8 + $0x60] sm:$0xff]   ;;  %v359_v17 = vpack.c.bf16 %v303_v16, %v302_v15  ;;  %v306_v21 = vld [vmem:[%s3328_s8 + $0x90] sm:$0xff]  ;;  %v307_v22 = vld [vmem:[%s3328_s8 + $0x98] sm:$0xff] }
  0x82   : > { %v2953_v14 = vld [vmem:[#allocation8 + $0xe0] sm:$0xff]   ;;  %v2954_v23 = vld [vmem:[#allocation8 + $0x58] sm:$0xff]   ;;  %v361_v24 = vpack.c.bf16 %v307_v22, %v306_v21  ;;  %v2957_v33 = vld [vmem:[#allocation8 + $0xd0] sm:$0xff]  }
  0x83   : > { %v304_v18 = vld [vmem:[%s3328_s8 + $0x80] sm:$0xff]  ;;  %v305_v19 = vld [vmem:[%s3328_s8 + $0x88] sm:$0xff]  ;;  %v315_v38 = vld [vmem:[%s3328_s8 + $0xd8] sm:$0xff] }
  0x84   : > { %611 = vmatpush1.bf16.msra.mxu0 %v2922_v27  ;;  %964 = vmatpush1.bf16.msra.mxu1 %v2923_v28  ;;  %v360_v20 = vpack.c.bf16 %v305_v19, %v304_v18  ;;  %v2955_v25 = vld [vmem:[#allocation8 + $0xd8] sm:$0xff]   ;;  %v309_v27 = vld [vmem:[%s3328_s8 + $0xa8] sm:$0xff]  ;;  %v318_v45 = vld [vmem:[%s3328_s8 + $0xf0] sm:$0xff] }
  0x85   : > { %612 = vmatprep.subr.bf16.mxu0 %v2924_v29  ;;  %965 = vmatprep.subr.bf16.mxu1 %v2926_v30  ;;  %v308_v26 = vld [vmem:[%s3328_s8 + $0xa0] sm:$0xff]  ;;  %v310_v29 = vld [vmem:[%s3328_s8 + $0xb0] sm:$0xff]  ;;  %v311_v30 = vld [vmem:[%s3328_s8 + $0xb8] sm:$0xff] }
  0x86   : > { %v362_v28 = vpack.c.bf16 %v309_v27, %v308_v26  ;;  %v312_v34 = vld [vmem:[%s3328_s8 + $0xc0] sm:$0xff]  ;;  %v319_v46 = vld [vmem:[%s3328_s8 + $0xf8] sm:$0xff]  ;;  %v322_v53 = vld [vmem:[%s3328_s8 + $0x110] sm:$0xff] }
  0x87   : > { %v326_v59 = vld [vmem:[%s3328_s8 + $0x130] sm:$0xff]  ;;  %v327_v60 = vld [vmem:[%s3328_s8 + $0x138] sm:$0xff]  ;;  %v336_v11 = vld [vmem:[%s3328_s8 + $0x180] sm:$0xff] }
  0x88   : > { %613 = vmatpush1.bf16.msra.mxu0 %v2928_v31  ;;  %966 = vmatpush1.bf16.msra.mxu1 %v2929_v32  ;;  %v363_v31 = vpack.c.bf16 %v311_v30, %v310_v29  ;;  %v2956_v32 = vld [vmem:[#allocation8 + $0x50] sm:$0xff]   ;;  %v340_v27 = vld [vmem:[%s3328_s8 + $0x1a0] sm:$0xff] }
  0x89   : > { %1951 = vmatprep.subr.bf16.mxu0 %v3153_v0  ;;  %2240 = vmatprep.subr.bf16.mxu1 %v3153_v0  ;;  %v331_v3 = vld [vmem:[%s3328_s8 + $0x158] sm:$0xff]  ;;  %v338_v16 = vld [vmem:[%s3328_s8 + $0x190] sm:$0xff] }
  0x8b   : > { %631 = vmatmul.mubr.bf16.vlgmr.msra.gmra.mxu0 %v352_v35  ;;  %984 = vmatmul.mubr.bf16.vlgmr.msra.gmra.mxu1 %v352_v35  ;;  %v313_v35 = vld [vmem:[%s3328_s8 + $0xc8] sm:$0xff] }
  0x8c   : > { %1952 = vmatpush1.bf16.msra.mxu0 %v2930_v36  ;;  %2241 = vmatpush1.bf16.msra.mxu1 %v2931_v37  ;;  %v364_v36 = vpack.c.bf16 %v313_v35, %v312_v34  ;;  %v314_v37 = vld [vmem:[%s3328_s8 + $0xd0] sm:$0xff] }
  0x8d   : > { %640 = vmatprep.mubr.bf16.mxu0 %v3153_v0  ;;  %993 = vmatprep.mubr.bf16.mxu1 %v3153_v0  ;;  %v365_v39 = vpack.c.bf16 %v315_v38, %v314_v37  ;;  %v342_v38 = vld [vmem:[%s3328_s8 + $0x1b0] sm:$0xff] }
  0x8e   : > { %1953 = vmatprep.subr.bf16.mxu0 %v3153_v0  ;;  %2242 = vmatprep.subr.bf16.mxu1 %v3153_v0 }
  0x90   : > { %1954 = vmatpush1.bf16.msra.mxu0 %v2932_v40  ;;  %2243 = vmatpush1.bf16.msra.mxu1 %v2933_v41  ;;  %v2958_v40 = vld [vmem:[#allocation8 + $0x48] sm:$0xff]  }
  0x91   : > { %1955 = vmatprep.subr.bf16.mxu0 %v3153_v0  ;;  %2244 = vmatprep.subr.bf16.mxu1 %v3153_v0  ;;  %v2959_v41 = vld [vmem:[#allocation8 + $0xc8] sm:$0xff]  }
  0x93   : > { %641 = vmatmul.mubr.bf16.gmra.mxu0 %v353_v42  ;;  %994 = vmatmul.mubr.bf16.gmra.mxu1 %v353_v42  ;;  %v316_v42 = vld [vmem:[%s3328_s8 + $0xe0] sm:$0xff] }
  0x94   : > { %650 = vmatprep.mubr.bf16.mxu0 %v3153_v0  ;;  %1003 = vmatprep.mubr.bf16.mxu1 %v3153_v0 }
  0x95   : > { %1956 = vmatpush1.bf16.msra.mxu0 %v2934_v43  ;;  %2245 = vmatpush1.bf16.msra.mxu1 %v2935_v44  ;;  %v317_v43 = vld [vmem:[%s3328_s8 + $0xe8] sm:$0xff] }
  0x96   : > { %1957 = vmatprep.subr.bf16.mxu0 %v3153_v0  ;;  %2246 = vmatprep.subr.bf16.mxu1 %v3153_v0  ;;  %v366_v44 = vpack.c.bf16 %v317_v43, %v316_v42 }
  0x99   : > { %1958 = vmatpush1.bf16.msra.mxu0 %v2936_v47  ;;  %2247 = vmatpush1.bf16.msra.mxu1 %v2937_v48  ;;  %v367_v47 = vpack.c.bf16 %v319_v46, %v318_v45  ;;  %v2960_v48 = vld [vmem:[#allocation8 + $0x40] sm:$0xff]  }
  0x9a   : > { %1959 = vmatprep.subr.bf16.mxu0 %v3153_v0  ;;  %2248 = vmatprep.subr.bf16.mxu1 %v3153_v0 }
  0x9b   : > { %651 = vmatmul.mubr.bf16.gmra.mxu0 %v354_v49  ;;  %1004 = vmatmul.mubr.bf16.gmra.mxu1 %v354_v49  ;;  %v2961_v49 = vld [vmem:[#allocation8 + $0xc0] sm:$0xff]  }
  0x9c   : > { %660 = vmatprep.mubr.bf16.mxu0 %v3153_v0  ;;  %1013 = vmatprep.mubr.bf16.mxu1 %v3153_v0 }
  0x9d   : > { %1960 = vmatpush1.bf16.msra.mxu0 %v2938_v50  ;;  %2249 = vmatpush1.bf16.msra.mxu1 %v2939_v51  ;;  %v320_v50 = vld [vmem:[%s3328_s8 + $0x100] sm:$0xff]  ;;  %v321_v51 = vld [vmem:[%s3328_s8 + $0x108] sm:$0xff] }
  0x9e   : > { %1961 = vmatprep.subr.bf16.mxu0 %v3153_v0  ;;  %2250 = vmatprep.subr.bf16.mxu1 %v3153_v0  ;;  %v368_v52 = vpack.c.bf16 %v321_v51, %v320_v50  ;;  %v345_v50 = vld [vmem:[%s3328_s8 + $0x1c8] sm:$0xff] }
  0xa1   : > { %1962 = vmatpush1.bf16.msra.mxu0 %v2940_v54  ;;  %2251 = vmatpush1.bf16.msra.mxu1 %v2941_v55  ;;  %v323_v54 = vld [vmem:[%s3328_s8 + $0x118] sm:$0xff] }
  0xa2   : > { %1963 = vmatprep.subr.bf16.mxu0 %v3153_v0  ;;  %2252 = vmatprep.subr.bf16.mxu1 %v3153_v0  ;;  %v369_v55 = vpack.c.bf16 %v323_v54, %v322_v53 }
  0xa3   : > { %661 = vmatmul.mubr.bf16.gmra.mxu0 %v355_v56  ;;  %1014 = vmatmul.mubr.bf16.gmra.mxu1 %v355_v56  ;;  %v324_v56 = vld [vmem:[%s3328_s8 + $0x120] sm:$0xff] }
  0xa4   : > { %670 = vmatprep.mubr.bf16.mxu0 %v3153_v0  ;;  %1023 = vmatprep.mubr.bf16.mxu1 %v3153_v0 }
  0xa5   : > { %1964 = vmatpush1.bf16.msra.mxu0 %v2942_v57  ;;  %2253 = vmatpush1.bf16.msra.mxu1 %v2943_v58  ;;  %v325_v57 = vld [vmem:[%s3328_s8 + $0x128] sm:$0xff] }
  0xa6   : > { %1965 = vmatprep.subr.bf16.mxu0 %v3153_v0  ;;  %2254 = vmatprep.subr.bf16.mxu1 %v3153_v0  ;;  %v370_v58 = vpack.c.bf16 %v325_v57, %v324_v56 }
  0xa9   : > { %1966 = vmatpush1.bf16.msra.mxu0 %v2944_v61  ;;  %2255 = vmatpush1.bf16.msra.mxu1 %v2945_v62  ;;  %v371_v61 = vpack.c.bf16 %v327_v60, %v326_v59  ;;  %v328_v62 = vld [vmem:[%s3328_s8 + $0x140] sm:$0xff]  ;;  %v346_v60 = vld [vmem:[%s3328_s8 + $0x1d0] sm:$0xff] }
  0xaa   : > { %1967 = vmatprep.subr.bf16.mxu0 %v3153_v0  ;;  %2256 = vmatprep.subr.bf16.mxu1 %v3153_v0 }
  0xab   : > { %671 = vmatmul.mubr.bf16.gmra.mxu0 %v356_v63  ;;  %1024 = vmatmul.mubr.bf16.gmra.mxu1 %v356_v63  ;;  %v329_v63 = vld [vmem:[%s3328_s8 + $0x148] sm:$0xff] }
  0xac   : > { %680 = vmatprep.mubr.bf16.mxu0 %v3153_v0  ;;  %1033 = vmatprep.mubr.bf16.mxu1 %v3153_v0 }
  0xad   : > { %1968 = vmatpush2.bf16.msra.mxu0 %v2946_v1  ;;  %2257 = vmatpush2.bf16.msra.mxu1 %v2947_v2  ;;  %v372_v1 = vpack.c.bf16 %v329_v63, %v328_v62  ;;  %v330_v2 = vld [vmem:[%s3328_s8 + $0x150] sm:$0xff] }
  0xae   : > { %1969 = vmatprep.subr.bf16.mxu0 %v3153_v0  ;;  %2258 = vmatprep.subr.bf16.mxu1 %v3153_v0  ;;  %v373_v4 = vpack.c.bf16 %v331_v3, %v330_v2 }
  0xb1   : > { %1970 = vmatpush2.bf16.msra.mxu0 %v2948_v5  ;;  %2259 = vmatpush2.bf16.msra.mxu1 %v2949_v6  ;;  %v332_v5 = vld [vmem:[%s3328_s8 + $0x160] sm:$0xff]  ;;  %v333_v6 = vld [vmem:[%s3328_s8 + $0x168] sm:$0xff] }
  0xb2   : > { %1971 = vmatprep.subr.bf16.mxu0 %v3153_v0  ;;  %2260 = vmatprep.subr.bf16.mxu1 %v3153_v0 }
  0xb3   : > { %681 = vmatmul.mubr.bf16.gmra.mxu0 %v357_v7  ;;  %1034 = vmatmul.mubr.bf16.gmra.mxu1 %v357_v7  ;;  %v374_v7 = vpack.c.bf16 %v333_v6, %v332_v5 }
  0xb4   : > { %690 = vmatprep.mubr.bf16.mxu0 %v3153_v0  ;;  %1043 = vmatprep.mubr.bf16.mxu1 %v3153_v0 }
  0xb5   : > { %1972 = vmatpush2.bf16.msra.mxu0 %v2950_v8  ;;  %2261 = vmatpush2.bf16.msra.mxu1 %v2951_v9  ;;  %v334_v8 = vld [vmem:[%s3328_s8 + $0x170] sm:$0xff]  ;;  %v335_v9 = vld [vmem:[%s3328_s8 + $0x178] sm:$0xff] }
  0xb6   : > { %1973 = vmatprep.subr.bf16.mxu0 %v3153_v0  ;;  %2262 = vmatprep.subr.bf16.mxu1 %v3153_v0  ;;  %v375_v10 = vpack.c.bf16 %v335_v9, %v334_v8 }
  0xb9   : > { %1974 = vmatpush2.bf16.msra.mxu0 %v2952_v13  ;;  %2263 = vmatpush2.bf16.msra.mxu1 %v2953_v14 }
  0xba   : > { %1975 = vmatprep.subr.bf16.mxu0 %v3153_v0  ;;  %2264 = vmatprep.subr.bf16.mxu1 %v3153_v0 }
  0xbb   : > { %691 = vmatmul.mubr.bf16.gmra.mxu0 %v358_v12  ;;  %1044 = vmatmul.mubr.bf16.gmra.mxu1 %v358_v12  ;;  %v337_v12 = vld [vmem:[%s3328_s8 + $0x188] sm:$0xff] }
  0xbc   : > { %700 = vmatprep.mubr.bf16.mxu0 %v3153_v0  ;;  %1053 = vmatprep.mubr.bf16.mxu1 %v3153_v0  ;;  %v376_v13 = vpack.c.bf16 %v337_v12, %v336_v11  ;;  %v348_v12 = vld [vmem:[%s3328_s8 + $0x1e0] sm:$0xff] }
  0xbd   : > { %1976 = vmatpush2.bf16.msra.mxu0 %v2954_v23  ;;  %2265 = vmatpush2.bf16.msra.mxu1 %v2955_v25 }
  0xbe   : > { %1977 = vmatprep.subr.bf16.mxu0 %v3153_v0  ;;  %2266 = vmatprep.subr.bf16.mxu1 %v3153_v0 }
  0xc1   : > { %1978 = vmatpush2.bf16.msra.mxu0 %v2956_v32  ;;  %2267 = vmatpush2.bf16.msra.mxu1 %v2957_v33 }
  0xc2   : > { %1979 = vmatprep.subr.bf16.mxu0 %v3153_v0  ;;  %2268 = vmatprep.subr.bf16.mxu1 %v3153_v0 }
  0xc3   : > { %701 = vmatmul.mubr.bf16.gmra.mxu0 %v359_v17  ;;  %1054 = vmatmul.mubr.bf16.gmra.mxu1 %v359_v17  ;;  %v339_v17 = vld [vmem:[%s3328_s8 + $0x198] sm:$0xff] }
  0xc4   : > { %710 = vmatprep.mubr.bf16.mxu0 %v3153_v0  ;;  %1063 = vmatprep.mubr.bf16.mxu1 %v3153_v0  ;;  %v377_v22 = vpack.c.bf16 %v339_v17, %v338_v16 }
  0xc5   : > { %1980 = vmatpush2.bf16.msra.mxu0 %v2958_v40  ;;  %2269 = vmatpush2.bf16.msra.mxu1 %v2959_v41 }
  0xc6   : > { %1981 = vmatprep.subr.bf16.mxu0 %v3153_v0  ;;  %2270 = vmatprep.subr.bf16.mxu1 %v3153_v0 }
  0xc9   : > { %1982 = vmatpush2.bf16.msra.mxu0 %v2960_v48  ;;  %2271 = vmatpush2.bf16.msra.mxu1 %v2961_v49  ;;  %v344_v49 = vld [vmem:[%s3328_s8 + $0x1c0] sm:$0xff] }
  0xcb   : > { %711 = vmatmul.mubr.bf16.gmra.mxu0 %v360_v20  ;;  %1064 = vmatmul.mubr.bf16.gmra.mxu1 %v360_v20 }
  0xcc   : > { %720 = vmatprep.mubr.bf16.mxu0 %v3153_v0  ;;  %1073 = vmatprep.mubr.bf16.mxu1 %v3153_v0 }
  0xd3   : > { %721 = vmatmul.mubr.bf16.gmra.mxu0 %v361_v24  ;;  %1074 = vmatmul.mubr.bf16.gmra.mxu1 %v361_v24 }
  0xd4   : > { %730 = vmatprep.mubr.bf16.mxu0 %v3153_v0  ;;  %1083 = vmatprep.mubr.bf16.mxu1 %v3153_v0 }
  0xdb   : > { %731 = vmatmul.mubr.bf16.gmra.mxu0 %v362_v28  ;;  %1084 = vmatmul.mubr.bf16.gmra.mxu1 %v362_v28  ;;  %v341_v28 = vld [vmem:[%s3328_s8 + $0x1a8] sm:$0xff] }
  0xdc   : > { %740 = vmatprep.mubr.bf16.mxu0 %v3153_v0  ;;  %1093 = vmatprep.mubr.bf16.mxu1 %v3153_v0  ;;  %v378_v33 = vpack.c.bf16 %v341_v28, %v340_v27 }
  0xe3   : > { %741 = vmatmul.mubr.bf16.gmra.mxu0 %v363_v31  ;;  %1094 = vmatmul.mubr.bf16.gmra.mxu1 %v363_v31 }
  0xe4   : > { %750 = vmatprep.mubr.bf16.mxu0 %v3153_v0  ;;  %1103 = vmatprep.mubr.bf16.mxu1 %v3153_v0 }
  0xeb   : > { %751 = vmatmul.mubr.bf16.gmra.mxu0 %v364_v36  ;;  %1104 = vmatmul.mubr.bf16.gmra.mxu1 %v364_v36 }
  0xec   : > { %760 = vmatprep.mubr.bf16.mxu0 %v3153_v0  ;;  %1113 = vmatprep.mubr.bf16.mxu1 %v3153_v0 }
  0xf3   : > { %761 = vmatmul.mubr.bf16.gmra.mxu0 %v365_v39  ;;  %1114 = vmatmul.mubr.bf16.gmra.mxu1 %v365_v39  ;;  %v343_v39 = vld [vmem:[%s3328_s8 + $0x1b8] sm:$0xff] }
  0xf4   : > { %770 = vmatprep.mubr.bf16.mxu0 %v3153_v0  ;;  %1123 = vmatprep.mubr.bf16.mxu1 %v3153_v0 }
  0xfb   : > { %771 = vmatmul.mubr.bf16.gmra.mxu0 %v366_v44  ;;  %1124 = vmatmul.mubr.bf16.gmra.mxu1 %v366_v44  ;;  %v379_v44 = vpack.c.bf16 %v343_v39, %v342_v38 }
  0xfc   : > { %780 = vmatprep.mubr.bf16.mxu0 %v3153_v0  ;;  %1133 = vmatprep.mubr.bf16.mxu1 %v3153_v0 }
 0x103   : > { %781 = vmatmul.mubr.bf16.gmra.mxu0 %v367_v47  ;;  %1134 = vmatmul.mubr.bf16.gmra.mxu1 %v367_v47 }
 0x104   : > { %790 = vmatprep.mubr.bf16.mxu0 %v3153_v0  ;;  %1143 = vmatprep.mubr.bf16.mxu1 %v3153_v0 }
 0x10b   : > { %791 = vmatmul.mubr.bf16.gmra.mxu0 %v368_v52  ;;  %1144 = vmatmul.mubr.bf16.gmra.mxu1 %v368_v52 }
 0x10c   : > { %800 = vmatprep.mubr.bf16.mxu0 %v3153_v0  ;;  %1153 = vmatprep.mubr.bf16.mxu1 %v3153_v0 }
 0x113   : > { %801 = vmatmul.mubr.bf16.gmra.mxu0 %v369_v55  ;;  %1154 = vmatmul.mubr.bf16.gmra.mxu1 %v369_v55  ;;  %v380_v55 = vpack.c.bf16 %v345_v50, %v344_v49 }
 0x114   : > { %810 = vmatprep.mubr.bf16.mxu0 %v3153_v0  ;;  %1163 = vmatprep.mubr.bf16.mxu1 %v3153_v0 }
 0x11b   : > { %811 = vmatmul.mubr.bf16.gmra.mxu0 %v370_v58  ;;  %1164 = vmatmul.mubr.bf16.gmra.mxu1 %v370_v58 }
 0x11c   : > { %820 = vmatprep.mubr.bf16.mxu0 %v3153_v0  ;;  %1173 = vmatprep.mubr.bf16.mxu1 %v3153_v0 }
 0x123   : > { %821 = vmatmul.mubr.bf16.gmra.mxu0 %v371_v61  ;;  %1174 = vmatmul.mubr.bf16.gmra.mxu1 %v371_v61  ;;  %v347_v61 = vld [vmem:[%s3328_s8 + $0x1d8] sm:$0xff] }
 0x124   : > { %830 = vmatprep.mubr.bf16.mxu0 %v3153_v0  ;;  %1183 = vmatprep.mubr.bf16.mxu1 %v3153_v0 }
 0x12b   : > { %831 = vmatmul.mubr.bf16.gmra.mxu0 %v372_v1  ;;  %1184 = vmatmul.mubr.bf16.gmra.mxu1 %v372_v1  ;;  %v418_v1 = vlaneseq }
 0x12c   : > { %840 = vmatprep.mubr.bf16.mxu0 %v3153_v0  ;;  %1193 = vmatprep.mubr.bf16.mxu1 %v3153_v0 }
 0x133   : > { %841 = vmatmul.mubr.bf16.gmra.mxu0 %v373_v4  ;;  %1194 = vmatmul.mubr.bf16.gmra.mxu1 %v373_v4  ;;  %v381_v4 = vpack.c.bf16 %v347_v61, %v346_v60 }
 0x134   : > { %850 = vmatprep.mubr.bf16.mxu0 %v3153_v0  ;;  %1203 = vmatprep.mubr.bf16.mxu1 %v3153_v0 }
 0x13b   : > { %851 = vmatmul.mubr.bf16.gmra.mxu0 %v374_v7  ;;  %1204 = vmatmul.mubr.bf16.gmra.mxu1 %v374_v7  ;;  %v419_v7 = vshrl.u32 %v418_v1, 7 }
 0x13c   : > { %860 = vmatprep.mubr.bf16.mxu0 %v3153_v0  ;;  %1213 = vmatprep.mubr.bf16.mxu1 %v3153_v0 }
 0x13d   : > { %v432_v11 = vsub.s32 3, %v419_v7  ;;  %v420_v60 = vsub.s32 0, %v419_v7  ;;  %v428_v61 = vsub.s32 2, %v419_v7 }
 0x143   : > { %861 = vmatmul.mubr.bf16.gmra.mxu0 %v375_v10  ;;  %1214 = vmatmul.mubr.bf16.gmra.mxu1 %v375_v10  ;;  %v424_v10 = vsub.s32 1, %v419_v7 }
 0x144   : > { %870 = vmatprep.mubr.bf16.mxu0 %v3153_v0  ;;  %1223 = vmatprep.mubr.bf16.mxu1 %v3153_v0 }
 0x14b   : > { %v3474_v14 = vpop.f32.mrf.mxu0  ;;  %871 = vmatmul.mubr.bf16.gmra.mxu0 %v376_v13  ;;  %v3476_v15 = vpop.f32.mrf.mxu1  ;;  %1224 = vmatmul.mubr.bf16.gmra.mxu1 %v376_v13  ;;  %v349_v13 = vld [vmem:[%s3328_s8 + $0x1e8] sm:$0xff] }
 0x14c   : > { %880 = vmatprep.mubr.bf16.mxu0 %v3153_v0  ;;  %1233 = vmatprep.mubr.bf16.mxu1 %v3153_v0 }
 0x14d   : > { %v3482_v18 = vpop.f32.mrf.mxu0  ;;  %v3484_v19 = vpop.f32.mrf.mxu1 }
 0x14f   : > { %v3486_v20 = vpop.f32.mrf.mxu0  ;;  %v3488_v21 = vpop.f32.mrf.mxu1 }
 0x151   : > { %v3490_v23 = vpop.f32.mrf.mxu0  ;;  %v3492_v24 = vpop.f32.mrf.mxu1 }
 0x153   : > { %v3494_v25 = vpop.f32.mrf.mxu0  ;;  %881 = vmatmul.mubr.bf16.gmra.mxu0 %v377_v22  ;;  %v3496_v26 = vpop.f32.mrf.mxu1  ;;  %1234 = vmatmul.mubr.bf16.gmra.mxu1 %v377_v22  ;;  %v416_v22 = vld [vmem:[#allocation7] sm:$0xf] }
 0x154   : > { %890 = vmatprep.mubr.bf16.mxu0 %v3153_v0  ;;  %1243 = vmatprep.mubr.bf16.mxu1 %v3153_v0  ;;  %v3590_v38 = vrot.slane %v416_v22, %v424_v10  ;;  %v3592_v39 = vrot.slane %v416_v22, %v432_v11 }
 0x155   : > { %v3502_v29 = vpop.f32.mrf.mxu0  ;;  %v3504_v30 = vpop.f32.mrf.mxu1 }
 0x156   : > { %v639_v50 = vadd.f32 %v3490_v23, %v3590_v38  ;;  %v635_v10 = vadd.f32 %v3482_v18, %v3590_v38  ;;  %v988_v11 = vadd.f32 %v3484_v19, %v3592_v39  ;;  %v350_v23 = vld [vmem:[%s3328_s8 + $0x1f0] sm:$0xff] }
 0x157   : > { %v3506_v31 = vpop.f32.mrf.mxu0  ;;  %v3508_v32 = vpop.f32.mrf.mxu1 }
 0x159   : > { %v3510_v34 = vpop.f32.mrf.mxu0  ;;  %v3512_v35 = vpop.f32.mrf.mxu1 }
 0x15b   : > { %v3514_v36 = vpop.f32.mrf.mxu0  ;;  %891 = vmatmul.mubr.bf16.gmra.mxu0 %v378_v33  ;;  %v3516_v37 = vpop.f32.mrf.mxu1  ;;  %1244 = vmatmul.mubr.bf16.gmra.mxu1 %v378_v33  ;;  %v382_v33 = vpack.c.bf16 %v349_v13, %v348_v12  ;;  %v1309_v13 = vmax.f32 %v639_v50, 0.0 }
 0x15c   : > { %900 = vmatprep.mubr.bf16.mxu0 %v3153_v0  ;;  %1253 = vmatprep.mubr.bf16.mxu1 %v3153_v0 }
 0x15d   : > { %v3522_v40 = vpop.f32.mrf.mxu0  ;;  %v3524_v41 = vpop.f32.mrf.mxu1 }
 0x15f   : > { %v3526_v42 = vpop.f32.mrf.mxu0  ;;  %v3528_v43 = vpop.f32.mrf.mxu1 }
 0x161   : > { %v3530_v45 = vpop.f32.mrf.mxu0  ;;  %v3532_v46 = vpop.f32.mrf.mxu1 }
 0x163   : > { %v3534_v47 = vpop.f32.mrf.mxu0  ;;  %901 = vmatmul.mubr.bf16.gmra.mxu0 %v379_v44  ;;  %v3536_v48 = vpop.f32.mrf.mxu1  ;;  %1254 = vmatmul.mubr.bf16.gmra.mxu1 %v379_v44 }
 0x164   : > { %910 = vmatprep.mubr.bf16.mxu0 %v3153_v0  ;;  %1263 = vmatprep.mubr.bf16.mxu1 %v3153_v0 }
 0x165   : > { %v3542_v51 = vpop.f32.mrf.mxu0  ;;  %v3544_v52 = vpop.f32.mrf.mxu1 }
 0x167   : > { %v3546_v53 = vpop.f32.mrf.mxu0  ;;  %v3548_v54 = vpop.f32.mrf.mxu1 }
 0x169   : > { %v3550_v56 = vpop.f32.mrf.mxu0  ;;  %v3552_v57 = vpop.f32.mrf.mxu1 }
 0x16b   : > { %v3554_v58 = vpop.f32.mrf.mxu0  ;;  %911 = vmatmul.mubr.bf16.gmra.mxu0 %v380_v55  ;;  %v3556_v59 = vpop.f32.mrf.mxu1  ;;  %1264 = vmatmul.mubr.bf16.gmra.mxu1 %v380_v55  ;;  %v992_v55 = vadd.f32 %v3492_v24, %v3592_v39  ;;  %v351_v24 = vld [vmem:[%s3328_s8 + $0x1f8] sm:$0xff] }
 0x16c   : > { %920 = vmatprep.mubr.bf16.mxu0 %v3153_v0  ;;  %1273 = vmatprep.mubr.bf16.mxu1 %v3153_v0  ;;  %v383_v19 = vpack.c.bf16 %v351_v24, %v350_v23 }
 0x16d   : > { %v3562_v62 = vpop.f32.mrf.mxu0  ;;  %v3564_v63 = vpop.f32.mrf.mxu1 }
 0x16f   : > { %v3566_v2 = vpop.f32.mrf.mxu0  ;;  %v3568_v3 = vpop.f32.mrf.mxu1 }
 0x171   : > { %v3570_v5 = vpop.f32.mrf.mxu0  ;;  %v3572_v6 = vpop.f32.mrf.mxu1 }
 0x173   : > { %v3574_v8 = vpop.f32.mrf.mxu0  ;;  %921 = vmatmul.mubr.bf16.gmra.mxu0 %v381_v4  ;;  %v3576_v9 = vpop.f32.mrf.mxu1  ;;  %1274 = vmatmul.mubr.bf16.gmra.mxu1 %v381_v4 }
 0x174   : > { %4749 = vst [vmem:[#allocation15_spill] sm:$0xff] %v3574_v8  ;;  %4750 = vst [vmem:[#allocation16_spill] sm:$0xff] %v3576_v9  ;;  %930 = vmatprep.mubr.bf16.mxu0 %v3153_v0  ;;  %1283 = vmatprep.mubr.bf16.mxu1 %v3153_v0  ;;  %v1305_v8 = vmax.f32 %v635_v10, 0.0 }
 0x175   : > { %v3582_v16 = vpop.f32.mrf.mxu0  ;;  %v3584_v17 = vpop.f32.mrf.mxu1 }
 0x177   : > { %v3586_v27 = vpop.f32.mrf.mxu0  ;;  %v3588_v28 = vpop.f32.mrf.mxu1 }
 0x178   : > { %4751 = vst [vmem:[#allocation17_spill] sm:$0xff] %v3588_v28  ;;  %v1307_v28 = vmax.f32 %v988_v11, 0.0 }
 0x179   : > { %v3594_v44 = vpop.f32.mrf.mxu0  ;;  %v3596_v49 = vpop.f32.mrf.mxu1 }
 0x17b   : > { %v3602_v1 = vpop.f32.mrf.mxu0  ;;  %931 = vmatmul.mubr.bf16.gmra.mxu0 %v382_v33  ;;  %v3604_v4 = vpop.f32.mrf.mxu1  ;;  %1284 = vmatmul.mubr.bf16.gmra.mxu1 %v382_v33  ;;  %v3620_v33 = vrot.slane %v416_v22, %v428_v61 }
 0x17c   : > { %4752 = vst [vmem:[#allocation18_spill] sm:$0xff] %v3602_v1  ;;  %4753 = vst [vmem:[#allocation19_spill] sm:$0xff] %v3604_v4  ;;  %940 = vmatprep.mubr.bf16.mxu0 %v3153_v0  ;;  %1293 = vmatprep.mubr.bf16.mxu1 %v3153_v0  ;;  %v1311_v1 = vmax.f32 %v992_v55, 0.0  ;;  %v3618_v4 = vrot.slane %v416_v22, %v420_v60  ;;  %v649_v22 = vadd.f32 %v3510_v34, %v3590_v38 }
 0x17d   : > { %v3614_v12 = vpop.f32.mrf.mxu0  ;;  %v3616_v7 = vpop.f32.mrf.mxu1  ;;  %v1002_v55 = vadd.f32 %v3512_v35, %v3592_v39  ;;  %v1561_v60 = vpack.c.bf16 %v1309_v13, %v1305_v8  ;;  %v645_v34 = vadd.f32 %v3502_v29, %v3590_v38  ;;  %v998_v35 = vadd.f32 %v3504_v30, %v3592_v39 }
 0x17e   : > { %4754 = vst [vmem:[#allocation20_spill] sm:$0xff] %v3614_v12  ;;  %4755 = vst [vmem:[#allocation21_spill] sm:$0xff] %v3616_v7  ;;  %v637_v0 = vadd.f32 %v3486_v20, %v3618_v4  ;;  %v990_v12 = vadd.f32 %v3488_v21, %v3620_v33  ;;  %v1563_v61 = vpack.c.bf16 %v1311_v1, %v1307_v28 }
 0x17f   : > { %v3622_v18 = vpop.f32.mrf.mxu0  ;;  %v3624_v9 = vpop.f32.mrf.mxu1  ;;  %v633_v10 = vadd.f32 %v3474_v14, %v3618_v4  ;;  %v986_v20 = vadd.f32 %v3476_v15, %v3620_v33  ;;  %v1317_v15 = vmax.f32 %v649_v22, 0.0  ;;  %v1319_v23 = vmax.f32 %v1002_v55, 0.0 }
 0x180   : > { %4756 = vst [vmem:[#allocation22_spill] sm:$0xff] %v3624_v9  ;;  %v1308_v8 = vmax.f32 %v637_v0, 0.0  ;;  %v1310_v28 = vmax.f32 %v990_v12, 0.0  ;;  %v1313_v29 = vmax.f32 %v645_v34, 0.0  ;;  %v647_v0 = vadd.f32 %v3506_v31, %v3618_v4 }
 0x181   : > { %v3630_v7 = vpop.f32.mrf.mxu0  ;;  %v3632_v50 = vpop.f32.mrf.mxu1  ;;  %v1304_v24 = vmax.f32 %v633_v10, 0.0  ;;  %v1306_v13 = vmax.f32 %v986_v20, 0.0  ;;  %v1000_v12 = vadd.f32 %v3508_v32, %v3620_v33  ;;  %v659_v55 = vadd.f32 %v3530_v45, %v3590_v38 }
 0x182   : > { %v1565_v10 = vpack.c.bf16 %v1317_v15, %v1313_v29  ;;  %v643_v34 = vadd.f32 %v3494_v25, %v3618_v4  ;;  %v996_v31 = vadd.f32 %v3496_v26, %v3620_v33  ;;  %v655_v45 = vadd.f32 %v3522_v40, %v3590_v38 }
 0x183   : > { %v3642_v11 = vpop.f32.mrf.mxu0  ;;  %941 = vmatmul.mubr.bf16.gmra.mxu0 %v383_v19  ;;  %v3644_v21 = vpop.f32.mrf.mxu1  ;;  %1294 = vmatmul.mubr.bf16.gmra.mxu1 %v383_v19  ;;  %v1560_v9 = vpack.c.bf16 %v1308_v8, %v1304_v24  ;;  %v1562_v30 = vpack.c.bf16 %v1310_v28, %v1306_v13  ;;  %v1318_v8 = vmax.f32 %v1000_v12, 0.0  ;;  %v1325_v26 = vmax.f32 %v659_v55, 0.0 }
 0x184   : > { %4757 = vst [vmem:[#allocation23_spill] sm:$0xff] %v3642_v11  ;;  %4758 = vst [vmem:[#allocation24_spill] sm:$0xff] %v3644_v21  ;;  %1983 = vmatprep.mubr.bf16.mxu0 %v1561_v60  ;;  %2272 = vmatprep.mubr.bf16.mxu1 %v1563_v61  ;;  %v1315_v11 = vmax.f32 %v998_v35, 0.0  ;;  %v1012_v61 = vadd.f32 %v3532_v46, %v3592_v39  ;;  %v1008_v46 = vadd.f32 %v3524_v41, %v3592_v39 }
 0x185   : > { %v3650_v14 = vpop.f32.mrf.mxu0  ;;  %v3652_v1 = vpop.f32.mrf.mxu1  ;;  %v1314_v24 = vmax.f32 %v996_v31, 0.0  ;;  %v1321_v40 = vmax.f32 %v655_v45, 0.0  ;;  %v1010_v12 = vadd.f32 %v3528_v43, %v3620_v33  ;;  %v653_v45 = vadd.f32 %v3514_v36, %v3618_v4 }
 0x186   : > { %v1567_v20 = vpack.c.bf16 %v1319_v23, %v1315_v11  ;;  %v1316_v11 = vmax.f32 %v647_v0, 0.0  ;;  %v1327_v15 = vmax.f32 %v1012_v61, 0.0  ;;  %v1312_v23 = vmax.f32 %v643_v34, 0.0 }
 0x187   : > { %v3654_v21 = vpop.f32.mrf.mxu0  ;;  %v3656_v19 = vpop.f32.mrf.mxu1  ;;  %v1323_v29 = vmax.f32 %v1008_v46, 0.0  ;;  %v1566_v41 = vpack.c.bf16 %v1318_v8, %v1314_v24  ;;  %v657_v0 = vadd.f32 %v3526_v42, %v3618_v4  ;;  %v669_v61 = vadd.f32 %v3550_v56, %v3590_v38 }
 0x188   : > { %v1569_v34 = vpack.c.bf16 %v1325_v26, %v1321_v40  ;;  %v1006_v42 = vadd.f32 %v3516_v37, %v3620_v33  ;;  %v665_v56 = vadd.f32 %v3542_v51, %v3590_v38  ;;  %v1326_v8 = vmax.f32 %v1010_v12, 0.0 }
 0x189   : > { %v3662_v60 = vpop.f32.mrf.mxu0  ;;  %v3664_v22 = vpop.f32.mrf.mxu1  ;;  %v1571_v31 = vpack.c.bf16 %v1327_v15, %v1323_v29  ;;  %v1333_v37 = vmax.f32 %v669_v61, 0.0  ;;  %v1020_v12 = vadd.f32 %v3548_v54, %v3620_v33 }
 0x18a   : > { %v1322_v24 = vmax.f32 %v1006_v42, 0.0  ;;  %v1329_v51 = vmax.f32 %v665_v56, 0.0  ;;  %v663_v56 = vadd.f32 %v3534_v47, %v3618_v4 }
 0x18b   : > { %v3674_v35 = vpop.f32.mrf.mxu0  ;;  %v3676_v32 = vpop.f32.mrf.mxu1  ;;  %1984 = vmatmul.mubr.bf16.vlgmr.msra.gmra.mxu0 %v1560_v9  ;;  %2273 = vmatmul.mubr.bf16.vlgmr.msra.gmra.mxu1 %v1562_v30  ;;  %v1564_v30 = vpack.c.bf16 %v1316_v11, %v1312_v23  ;;  %v1324_v11 = vmax.f32 %v657_v0, 0.0  ;;  %v1320_v23 = vmax.f32 %v653_v45, 0.0  ;;  %v667_v0 = vadd.f32 %v3546_v53, %v3618_v4 }
 0x18c   : > { %1991 = vmatprep.mubr.bf16.mxu0 %v1565_v10  ;;  %2280 = vmatprep.mubr.bf16.mxu1 %v1567_v20  ;;  %v1022_v20 = vadd.f32 %v3552_v57, %v3592_v39  ;;  %v1018_v57 = vadd.f32 %v3544_v52, %v3592_v39  ;;  %v1570_v52 = vpack.c.bf16 %v1326_v8, %v1322_v24  ;;  %v1334_v8 = vmax.f32 %v1020_v12, 0.0 }
 0x18d   : > { %v3682_v25 = vpop.f32.mrf.mxu0  ;;  %v3684_v28 = vpop.f32.mrf.mxu1  ;;  %v1573_v45 = vpack.c.bf16 %v1333_v37, %v1329_v51  ;;  %v1016_v53 = vadd.f32 %v3536_v48, %v3620_v33  ;;  %v1030_v12 = vadd.f32 %v3568_v3, %v3620_v33 }
 0x18e   : > { %v1335_v15 = vmax.f32 %v1022_v20, 0.0  ;;  %v679_v20 = vadd.f32 %v3570_v5, %v3590_v38  ;;  %v675_v5 = vadd.f32 %v3562_v62, %v3590_v38 }
 0x18f   : > { %v3686_v9 = vpop.f32.mrf.mxu0  ;;  %v3688_v13 = vpop.f32.mrf.mxu1  ;;  %v1330_v24 = vmax.f32 %v1016_v53, 0.0 }
 0x190   : > { %v1341_v48 = vmax.f32 %v679_v20, 0.0  ;;  %v1337_v62 = vmax.f32 %v675_v5, 0.0  ;;  %v673_v5 = vadd.f32 %v3554_v58, %v3618_v4 }
 0x191   : > { %v3694_v10 = vpop.f32.mrf.mxu0  ;;  %v3696_v55 = vpop.f32.mrf.mxu1 }
 0x193   : > { %v3706_v46 = vpop.f32.mrf.mxu0  ;;  %v3708_v43 = vpop.f32.mrf.mxu1  ;;  %1992 = vmatmul.mubr.bf16.gmra.mxu0 %v1564_v30  ;;  %2281 = vmatmul.mubr.bf16.gmra.mxu1 %v1566_v41  ;;  %v1331_v30 = vmax.f32 %v1018_v57, 0.0  ;;  %v1568_v41 = vpack.c.bf16 %v1324_v11, %v1320_v23  ;;  %v1332_v11 = vmax.f32 %v667_v0, 0.0  ;;  %v1328_v23 = vmax.f32 %v663_v56, 0.0 }
 0x194   : > { %1999 = vmatprep.mubr.bf16.mxu0 %v1569_v34  ;;  %2288 = vmatprep.mubr.bf16.mxu1 %v1571_v31  ;;  %v1032_v31 = vadd.f32 %v3572_v6, %v3592_v39  ;;  %v1028_v6 = vadd.f32 %v3564_v63, %v3592_v39  ;;  %v1574_v63 = vpack.c.bf16 %v1334_v8, %v1330_v24  ;;  %v1342_v8 = vmax.f32 %v1030_v12, 0.0  ;;  %v4762_v12 = vld [vmem:[#allocation17_spill] sm:$0xff] }
 0x195   : > { %v3714_v36 = vpop.f32.mrf.mxu0  ;;  %v3716_v26 = vpop.f32.mrf.mxu1  ;;  %v1575_v42 = vpack.c.bf16 %v1335_v15, %v1331_v30  ;;  %v677_v0 = vadd.f32 %v3566_v2, %v3618_v4  ;;  %v1577_v56 = vpack.c.bf16 %v1341_v48, %v1337_v62  ;;  %v1026_v2 = vadd.f32 %v3556_v59, %v3620_v33 }
 0x196   : > { %v1343_v15 = vmax.f32 %v1032_v31, 0.0  ;;  %v689_v31 = vadd.f32 %v3594_v44, %v3590_v38  ;;  %v685_v44 = vadd.f32 %v3582_v16, %v3590_v38 }
 0x197   : > { %v3718_v40 = vpop.f32.mrf.mxu0  ;;  %v3720_v29 = vpop.f32.mrf.mxu1  ;;  %v1338_v24 = vmax.f32 %v1026_v2, 0.0 }
 0x198   : > { %v1349_v59 = vmax.f32 %v689_v31, 0.0  ;;  %v1345_v16 = vmax.f32 %v685_v44, 0.0 }
 0x199   : > { %v3726_v34 = vpop.f32.mrf.mxu0  ;;  %v3728_v61 = vpop.f32.mrf.mxu1 }
 0x19a   : > { %v1581_v2 = vpack.c.bf16 %v1349_v59, %v1345_v16 }
 0x19b   : > { %v3738_v57 = vpop.f32.mrf.mxu0  ;;  %v3740_v54 = vpop.f32.mrf.mxu1  ;;  %2000 = vmatmul.mubr.bf16.gmra.mxu0 %v1568_v41  ;;  %2289 = vmatmul.mubr.bf16.gmra.mxu1 %v1570_v52  ;;  %v1339_v41 = vmax.f32 %v1028_v6, 0.0  ;;  %v1572_v52 = vpack.c.bf16 %v1332_v11, %v1328_v23  ;;  %v1340_v11 = vmax.f32 %v677_v0, 0.0  ;;  %v1336_v23 = vmax.f32 %v673_v5, 0.0 }
 0x19c   : > { %2007 = vmatprep.mubr.bf16.mxu0 %v1573_v45  ;;  %2296 = vmatprep.mubr.bf16.mxu1 %v1575_v42  ;;  %v1042_v42 = vadd.f32 %v3596_v49, %v3592_v39  ;;  %v1038_v49 = vadd.f32 %v3584_v17, %v3592_v39  ;;  %v1578_v17 = vpack.c.bf16 %v1342_v8, %v1338_v24 }
 0x19d   : > { %v3746_v47 = vpop.f32.mrf.mxu0  ;;  %v3748_v37 = vpop.f32.mrf.mxu1  ;;  %v1579_v53 = vpack.c.bf16 %v1343_v15, %v1339_v41  ;;  %v687_v0 = vadd.f32 %v3586_v27, %v3618_v4  ;;  %v1052_v5 = vadd.f32 %v3632_v50, %v3592_v39  ;;  %v4764_v27 = vld [vmem:[#allocation16_spill] sm:$0xff] }
 0x19e   : > { %v1351_v15 = vmax.f32 %v1042_v42, 0.0  ;;  %v699_v42 = vadd.f32 %v3630_v7, %v3590_v38  ;;  %v1036_v8 = vadd.f32 %v4764_v27, %v3620_v33 }
 0x19f   : > { %v3750_v51 = vpop.f32.mrf.mxu0  ;;  %v3752_v30 = vpop.f32.mrf.mxu1  ;;  %v1348_v59 = vmax.f32 %v687_v0, 0.0  ;;  %v1359_v27 = vmax.f32 %v1052_v5, 0.0  ;;  %v697_v0 = vadd.f32 %v3622_v18, %v3618_v4  ;;  %v709_v5 = vadd.f32 %v3662_v60, %v3590_v38  ;;  %v4772_v18 = vld [vmem:[#allocation19_spill] sm:$0xff] }
 0x1a0   : > { %v705_v60 = vadd.f32 %v3650_v14, %v3590_v38 }
 0x1a1   : > { %v3758_v45 = vpop.f32.mrf.mxu0  ;;  %v3760_v20 = vpop.f32.mrf.mxu1 }
 0x1a2   : > { %v1361_v14 = vmax.f32 %v705_v60, 0.0 }
 0x1a3   : > { %v3770_v6 = vpop.f32.mrf.mxu0  ;;  %v3772_v3 = vpop.f32.mrf.mxu1  ;;  %2008 = vmatmul.mubr.bf16.gmra.mxu0 %v1572_v52  ;;  %2297 = vmatmul.mubr.bf16.gmra.mxu1 %v1574_v63  ;;  %v1347_v52 = vmax.f32 %v1038_v49, 0.0  ;;  %v1576_v63 = vpack.c.bf16 %v1340_v11, %v1336_v23  ;;  %v4763_v49 = vld [vmem:[#allocation15_spill] sm:$0xff] }
 0x1a4   : > { %4759 = vst [vmem:[#allocation25_spill] sm:$0xff] %v3770_v6  ;;  %4760 = vst [vmem:[#allocation26_spill] sm:$0xff] %v3772_v3  ;;  %2015 = vmatprep.mubr.bf16.mxu0 %v1577_v56  ;;  %2304 = vmatprep.mubr.bf16.mxu1 %v1579_v53  ;;  %v1040_v56 = vadd.f32 %v4762_v12, %v3620_v33  ;;  %v683_v11 = vadd.f32 %v4763_v49, %v3618_v4  ;;  %v4767_v12 = vld [vmem:[#allocation20_spill] sm:$0xff]  ;;  %v4768_v3 = vld [vmem:[#allocation21_spill] sm:$0xff]  ;;  %v1357_v49 = vmax.f32 %v699_v42, 0.0 }
 0x1a5   : > { %v3778_v58 = vpop.f32.mrf.mxu0  ;;  %v3780_v48 = vpop.f32.mrf.mxu1  ;;  %v1583_v44 = vpack.c.bf16 %v1351_v15, %v1347_v52  ;;  %v695_v7 = vadd.f32 %v4767_v12, %v3590_v38  ;;  %v1048_v50 = vadd.f32 %v4768_v3, %v3592_v39 }
 0x1a6   : > { %v1350_v15 = vmax.f32 %v1040_v56, 0.0  ;;  %v4770_v56 = vld [vmem:[#allocation22_spill] sm:$0xff] }
 0x1a7   : > { %v3782_v62 = vpop.f32.mrf.mxu0  ;;  %v3784_v41 = vpop.f32.mrf.mxu1  ;;  %v1353_v12 = vmax.f32 %v695_v7, 0.0  ;;  %v1355_v6 = vmax.f32 %v1048_v50, 0.0  ;;  %v1046_v50 = vadd.f32 %v4772_v18, %v3620_v33 }
 0x1a8   : > { %4761 = vst [vmem:[#allocation27_spill] sm:$0xff] %v3784_v41 }
 0x1a9   : > { %v3790_v53 = vpop.f32.mrf.mxu0  ;;  %v3792_v31 = vpop.f32.mrf.mxu1  ;;  %v1587_v7 = vpack.c.bf16 %v1359_v27, %v1355_v6  ;;  %v1356_v6 = vmax.f32 %v697_v0, 0.0  ;;  %v707_v0 = vadd.f32 %v3654_v21, %v3618_v4  ;;  %v4776_v21 = vld [vmem:[#allocation24_spill] sm:$0xff] }
 0x1ab   : > { %v3802_v23 = vpop.f32.mrf.mxu0  ;;  %v3804_v24 = vpop.f32.mrf.mxu1  ;;  %2016 = vmatmul.mubr.bf16.gmra.mxu0 %v1576_v63  ;;  %2305 = vmatmul.mubr.bf16.gmra.mxu1 %v1578_v17 }
 0x1ac   : > { %4765 = vst [vmem:[#allocation17_spill] sm:$0xff] %v3802_v23  ;;  %4766 = vst [vmem:[#allocation15_spill] sm:$0xff] %v3804_v24  ;;  %2023 = vmatprep.mubr.bf16.mxu0 %v1581_v2  ;;  %2312 = vmatprep.mubr.bf16.mxu1 %v1583_v44  ;;  %v1344_v23 = vmax.f32 %v683_v11, 0.0  ;;  %v1346_v24 = vmax.f32 %v1036_v8, 0.0  ;;  %v1050_v2 = vadd.f32 %v4770_v56, %v3620_v33  ;;  %v1365_v56 = vmax.f32 %v709_v5, 0.0 }
 0x1ad   : > { %v3810_v16 = vpop.f32.mrf.mxu0  ;;  %v3812_v52 = vpop.f32.mrf.mxu1  ;;  %v1062_v11 = vadd.f32 %v3664_v22, %v3592_v39  ;;  %v1585_v8 = vpack.c.bf16 %v1357_v49, %v1353_v12  ;;  %v1058_v22 = vadd.f32 %v3652_v1, %v3592_v39 }
 0x1ae   : > { %v1580_v41 = vpack.c.bf16 %v1348_v59, %v1344_v23  ;;  %v1582_v3 = vpack.c.bf16 %v1350_v15, %v1346_v24  ;;  %v4771_v23 = vld [vmem:[#allocation18_spill] sm:$0xff]  ;;  %v1358_v49 = vmax.f32 %v1050_v2, 0.0  ;;  %v1060_v2 = vadd.f32 %v3656_v19, %v3620_v33 }
 0x1af   : > { %v3814_v63 = vpop.f32.mrf.mxu0  ;;  %v3816_v17 = vpop.f32.mrf.mxu1  ;;  %v693_v24 = vadd.f32 %v4771_v23, %v3618_v4  ;;  %v1367_v23 = vmax.f32 %v1062_v11, 0.0  ;;  %v719_v11 = vadd.f32 %v3694_v10, %v3590_v38  ;;  %v715_v10 = vadd.f32 %v3682_v25, %v3590_v38 }
 0x1b0   : > { %4769 = vst [vmem:[#allocation16_spill] sm:$0xff] %v3816_v17 }
 0x1b1   : > { %v3822_v44 = vpop.f32.mrf.mxu0  ;;  %v3824_v42 = vpop.f32.mrf.mxu1  ;;  %v1352_v18 = vmax.f32 %v693_v24, 0.0  ;;  %v1589_v24 = vpack.c.bf16 %v1365_v56, %v1361_v14  ;;  %v1369_v25 = vmax.f32 %v715_v10, 0.0  ;;  %v713_v10 = vadd.f32 %v3674_v35, %v3618_v4 }
 0x1b3   : > { %v3834_v59 = vpop.f32.mrf.mxu0  ;;  %v3836_v15 = vpop.f32.mrf.mxu1  ;;  %2024 = vmatmul.mubr.bf16.gmra.mxu0 %v1580_v41  ;;  %2313 = vmatmul.mubr.bf16.gmra.mxu1 %v1582_v3  ;;  %v1584_v17 = vpack.c.bf16 %v1356_v6, %v1352_v18  ;;  %v1373_v18 = vmax.f32 %v719_v11, 0.0 }
 0x1b4   : > { %4773 = vst [vmem:[#allocation20_spill] sm:$0xff] %v3834_v59  ;;  %4774 = vst [vmem:[#allocation21_spill] sm:$0xff] %v3836_v15  ;;  %2031 = vmatprep.mubr.bf16.mxu0 %v1585_v8  ;;  %2320 = vmatprep.mubr.bf16.mxu1 %v1587_v7  ;;  %v1354_v15 = vmax.f32 %v1046_v50, 0.0  ;;  %v1363_v59 = vmax.f32 %v1058_v22, 0.0  ;;  %v1072_v7 = vadd.f32 %v3696_v55, %v3592_v39 }
 0x1b5   : > { %v3842_v27 = vpop.f32.mrf.mxu0  ;;  %v3844_v12 = vpop.f32.mrf.mxu1  ;;  %v1056_v22 = vadd.f32 %v4776_v21, %v3620_v33  ;;  %v1068_v55 = vadd.f32 %v3684_v28, %v3592_v39 }
 0x1b6   : > { %v1586_v1 = vpack.c.bf16 %v1358_v49, %v1354_v15  ;;  %v1591_v50 = vpack.c.bf16 %v1367_v23, %v1363_v59  ;;  %v4775_v15 = vld [vmem:[#allocation23_spill] sm:$0xff]  ;;  %v1364_v59 = vmax.f32 %v707_v0, 0.0  ;;  %v1366_v49 = vmax.f32 %v1060_v2, 0.0 }
 0x1b7   : > { %v3846_v41 = vpop.f32.mrf.mxu0  ;;  %v3848_v3 = vpop.f32.mrf.mxu1  ;;  %v703_v60 = vadd.f32 %v4775_v15, %v3618_v4  ;;  %v1375_v14 = vmax.f32 %v1072_v7, 0.0  ;;  %v1362_v21 = vmax.f32 %v1056_v22, 0.0  ;;  %v717_v0 = vadd.f32 %v3686_v9, %v3618_v4 }
 0x1b8   : > { %v1070_v2 = vadd.f32 %v3688_v13, %v3620_v33  ;;  %v729_v7 = vadd.f32 %v3726_v34, %v3590_v38  ;;  %v1066_v9 = vadd.f32 %v3676_v32, %v3620_v33  ;;  %v725_v34 = vadd.f32 %v3714_v36, %v3590_v38 }
 0x1b9   : > { %v3854_v8 = vpop.f32.mrf.mxu0  ;;  %v3856_v5 = vpop.f32.mrf.mxu1  ;;  %v1360_v15 = vmax.f32 %v703_v60, 0.0  ;;  %v1590_v28 = vpack.c.bf16 %v1366_v49, %v1362_v21  ;;  %v1593_v60 = vpack.c.bf16 %v1373_v18, %v1369_v25 }
 0x1ba   : > { %v1381_v32 = vmax.f32 %v729_v7, 0.0  ;;  %v1377_v36 = vmax.f32 %v725_v34, 0.0  ;;  %v723_v34 = vadd.f32 %v3706_v46, %v3618_v4 }
 0x1bb   : > { %v3866_v6 = vpop.f32.mrf.mxu0  ;;  %v3868_v19 = vpop.f32.mrf.mxu1  ;;  %2032 = vmatmul.mubr.bf16.gmra.mxu0 %v1584_v17  ;;  %2321 = vmatmul.mubr.bf16.gmra.mxu1 %v1586_v1 }
 0x1bc   : > { %4777 = vst [vmem:[#allocation22_spill] sm:$0xff] %v3866_v6  ;;  %4778 = vst [vmem:[#allocation18_spill] sm:$0xff] %v3868_v19  ;;  %2039 = vmatprep.mubr.bf16.mxu0 %v1589_v24  ;;  %2328 = vmatprep.mubr.bf16.mxu1 %v1591_v50  ;;  %v1371_v19 = vmax.f32 %v1068_v55, 0.0  ;;  %v1588_v6 = vpack.c.bf16 %v1364_v59, %v1360_v15  ;;  %v1082_v50 = vadd.f32 %v3728_v61, %v3592_v39 }
 0x1bd   : > { %v3874_v56 = vpop.f32.mrf.mxu0  ;;  %v3876_v23 = vpop.f32.mrf.mxu1  ;;  %v1078_v61 = vadd.f32 %v3716_v26, %v3592_v39  ;;  %v1374_v59 = vmax.f32 %v1070_v2, 0.0  ;;  %v1370_v15 = vmax.f32 %v1066_v9, 0.0  ;;  %v1080_v2 = vadd.f32 %v3720_v29, %v3620_v33 }
 0x1be   : > { %v1595_v22 = vpack.c.bf16 %v1375_v14, %v1371_v19  ;;  %v1372_v19 = vmax.f32 %v717_v0, 0.0  ;;  %v1383_v18 = vmax.f32 %v1082_v50, 0.0  ;;  %v1368_v14 = vmax.f32 %v713_v10, 0.0 }
 0x1bf   : > { %v3878_v17 = vpop.f32.mrf.mxu0  ;;  %v3880_v1 = vpop.f32.mrf.mxu1  ;;  %v1379_v25 = vmax.f32 %v1078_v61, 0.0  ;;  %v1594_v26 = vpack.c.bf16 %v1374_v59, %v1370_v15  ;;  %v727_v0 = vadd.f32 %v3718_v40, %v3618_v4  ;;  %v739_v50 = vadd.f32 %v3758_v45, %v3590_v38 }
 0x1c0   : > { %v1597_v10 = vpack.c.bf16 %v1381_v32, %v1377_v36  ;;  %v1076_v40 = vadd.f32 %v3708_v43, %v3620_v33  ;;  %v735_v45 = vadd.f32 %v3746_v47, %v3590_v38  ;;  %v1382_v59 = vmax.f32 %v1080_v2, 0.0 }
 0x1c1   : > { %v3886_v24 = vpop.f32.mrf.mxu0  ;;  %v3888_v11 = vpop.f32.mrf.mxu1  ;;  %v1599_v9 = vpack.c.bf16 %v1383_v18, %v1379_v25  ;;  %v1389_v43 = vmax.f32 %v739_v50, 0.0  ;;  %v1090_v2 = vadd.f32 %v3752_v30, %v3620_v33 }
 0x1c2   : > { %v1378_v15 = vmax.f32 %v1076_v40, 0.0  ;;  %v1385_v47 = vmax.f32 %v735_v45, 0.0  ;;  %v733_v45 = vadd.f32 %v3738_v57, %v3618_v4 }
 0x1c3   : > { %v3898_v55 = vpop.f32.mrf.mxu0  ;;  %v3900_v13 = vpop.f32.mrf.mxu1  ;;  %2040 = vmatmul.mubr.bf16.gmra.mxu0 %v1588_v6  ;;  %2329 = vmatmul.mubr.bf16.gmra.mxu1 %v1590_v28  ;;  %v1592_v28 = vpack.c.bf16 %v1372_v19, %v1368_v14  ;;  %v1380_v19 = vmax.f32 %v727_v0, 0.0  ;;  %v1376_v14 = vmax.f32 %v723_v34, 0.0  ;;  %v737_v0 = vadd.f32 %v3750_v51, %v3618_v4 }
 0x1c4   : > { %2047 = vmatprep.mubr.bf16.mxu0 %v1593_v60  ;;  %2336 = vmatprep.mubr.bf16.mxu1 %v1595_v22  ;;  %v1092_v22 = vadd.f32 %v3760_v20, %v3592_v39  ;;  %v1088_v20 = vadd.f32 %v3748_v37, %v3592_v39  ;;  %v1598_v37 = vpack.c.bf16 %v1382_v59, %v1378_v15  ;;  %v1390_v59 = vmax.f32 %v1090_v2, 0.0  ;;  %v4780_v2 = vld [vmem:[#allocation27_spill] sm:$0xff] }
 0x1c5   : > { %v3906_v35 = vpop.f32.mrf.mxu0  ;;  %v3908_v49 = vpop.f32.mrf.mxu1  ;;  %v1601_v34 = vpack.c.bf16 %v1389_v43, %v1385_v47  ;;  %v1086_v51 = vadd.f32 %v3740_v54, %v3620_v33 }
 0x1c6   : > { %v1391_v18 = vmax.f32 %v1092_v22, 0.0  ;;  %v749_v22 = vadd.f32 %v3790_v53, %v3590_v38  ;;  %v745_v53 = vadd.f32 %v3778_v58, %v3590_v38 }
 0x1c7   : > { %v3910_v6 = vpop.f32.mrf.mxu0  ;;  %v3912_v21 = vpop.f32.mrf.mxu1  ;;  %v1386_v15 = vmax.f32 %v1086_v51, 0.0 }
 0x1c8   : > { %v1397_v54 = vmax.f32 %v749_v22, 0.0  ;;  %v1393_v58 = vmax.f32 %v745_v53, 0.0 }
 0x1c9   : > { %v3918_v60 = vpop.f32.mrf.mxu0  ;;  %v3920_v7 = vpop.f32.mrf.mxu1 }
 0x1ca   : > { %v1605_v51 = vpack.c.bf16 %v1397_v54, %v1393_v58 }
 0x1cb   : > { %v3930_v61 = vpop.f32.mrf.mxu0  ;;  %v3932_v29 = vpop.f32.mrf.mxu1  ;;  %2048 = vmatmul.mubr.bf16.gmra.mxu0 %v1592_v28  ;;  %2337 = vmatmul.mubr.bf16.gmra.mxu1 %v1594_v26  ;;  %v1387_v28 = vmax.f32 %v1088_v20, 0.0  ;;  %v1596_v26 = vpack.c.bf16 %v1380_v19, %v1376_v14  ;;  %v1388_v19 = vmax.f32 %v737_v0, 0.0  ;;  %v1384_v14 = vmax.f32 %v733_v45, 0.0 }
 0x1cc   : > { %2055 = vmatprep.mubr.bf16.mxu0 %v1597_v10  ;;  %2344 = vmatprep.mubr.bf16.mxu1 %v1599_v9  ;;  %v1102_v9 = vadd.f32 %v3792_v31, %v3592_v39  ;;  %v1098_v31 = vadd.f32 %v3780_v48, %v3592_v39  ;;  %v1602_v48 = vpack.c.bf16 %v1390_v59, %v1386_v15 }
 0x1cd   : > { %v3938_v46 = vpop.f32.mrf.mxu0  ;;  %v3940_v32 = vpop.f32.mrf.mxu1  ;;  %v1603_v40 = vpack.c.bf16 %v1391_v18, %v1387_v28  ;;  %v747_v0 = vadd.f32 %v3782_v62, %v3618_v4  ;;  %v1112_v45 = vadd.f32 %v3824_v42, %v3592_v39  ;;  %v4782_v62 = vld [vmem:[#allocation26_spill] sm:$0xff]  ;;  %v1108_v42 = vadd.f32 %v3812_v52, %v3592_v39 }
 0x1ce   : > { %v1399_v18 = vmax.f32 %v1102_v9, 0.0  ;;  %v759_v9 = vadd.f32 %v3822_v44, %v3590_v38  ;;  %v1096_v59 = vadd.f32 %v4782_v62, %v3620_v33  ;;  %v755_v44 = vadd.f32 %v3810_v16, %v3590_v38 }
 0x1cf   : > { %v3942_v36 = vpop.f32.mrf.mxu0  ;;  %v3944_v25 = vpop.f32.mrf.mxu1  ;;  %v1396_v54 = vmax.f32 %v747_v0, 0.0  ;;  %v757_v0 = vadd.f32 %v3814_v63, %v3618_v4  ;;  %v4788_v63 = vld [vmem:[#allocation15_spill] sm:$0xff] }
 0x1d0   : > { %v1401_v16 = vmax.f32 %v755_v44, 0.0 }
 0x1d1   : > { %v3950_v10 = vpop.f32.mrf.mxu0  ;;  %v3952_v50 = vpop.f32.mrf.mxu1 }
 0x1d3   : > { %v3962_v20 = vpop.f32.mrf.mxu0  ;;  %v3964_v30 = vpop.f32.mrf.mxu1  ;;  %2056 = vmatmul.mubr.bf16.gmra.mxu0 %v1596_v26  ;;  %2345 = vmatmul.mubr.bf16.gmra.mxu1 %v1598_v37  ;;  %v1395_v26 = vmax.f32 %v1098_v31, 0.0  ;;  %v1600_v37 = vpack.c.bf16 %v1388_v19, %v1384_v14  ;;  %v4781_v31 = vld [vmem:[#allocation25_spill] sm:$0xff] }
 0x1d4   : > { %4779 = vst [vmem:[#allocation19_spill] sm:$0xff] %v3964_v30  ;;  %2063 = vmatprep.mubr.bf16.mxu0 %v1601_v34  ;;  %2352 = vmatprep.mubr.bf16.mxu1 %v1603_v40  ;;  %v1100_v34 = vadd.f32 %v4780_v2, %v3620_v33  ;;  %v743_v19 = vadd.f32 %v4781_v31, %v3618_v4  ;;  %v1405_v2 = vmax.f32 %v759_v9, 0.0  ;;  %v1407_v31 = vmax.f32 %v1112_v45, 0.0 }
 0x1d5   : > { %v3970_v57 = vpop.f32.mrf.mxu0  ;;  %v3972_v43 = vpop.f32.mrf.mxu1  ;;  %v1607_v53 = vpack.c.bf16 %v1399_v18, %v1395_v26  ;;  %v769_v45 = vadd.f32 %v3854_v8, %v3590_v38  ;;  %v765_v8 = vadd.f32 %v3842_v27, %v3590_v38 }
 0x1d6   : > { %v1398_v18 = vmax.f32 %v1100_v34, 0.0  ;;  %v1392_v62 = vmax.f32 %v743_v19, 0.0  ;;  %v4786_v34 = vld [vmem:[#allocation16_spill] sm:$0xff]  ;;  %v1122_v19 = vadd.f32 %v3856_v5, %v3592_v39  ;;  %v1118_v5 = vadd.f32 %v3844_v12, %v3592_v39 }
 0x1d7   : > { %v3974_v47 = vpop.f32.mrf.mxu0  ;;  %v3976_v28 = vpop.f32.mrf.mxu1  ;;  %v1409_v27 = vmax.f32 %v765_v8, 0.0 }
 0x1d8   : > { %v1604_v30 = vpack.c.bf16 %v1396_v54, %v1392_v62  ;;  %v1106_v54 = vadd.f32 %v4788_v63, %v3620_v33 }
 0x1d9   : > { %v3982_v40 = vpop.f32.mrf.mxu0  ;;  %v3984_v22 = vpop.f32.mrf.mxu1 }
 0x1db   : > { %v3994_v14 = vpop.f32.mrf.mxu0  ;;  %v3996_v15 = vpop.f32.mrf.mxu1  ;;  %2064 = vmatmul.mubr.bf16.gmra.mxu0 %v1600_v37  ;;  %2353 = vmatmul.mubr.bf16.gmra.mxu1 %v1602_v48 }
 0x1dc   : > { %4783 = vst [vmem:[#allocation23_spill] sm:$0xff] %v3994_v14  ;;  %4784 = vst [vmem:[#allocation24_spill] sm:$0xff] %v3996_v15  ;;  %2071 = vmatprep.mubr.bf16.mxu0 %v1605_v51  ;;  %2360 = vmatprep.mubr.bf16.mxu1 %v1607_v53  ;;  %v1394_v15 = vmax.f32 %v1096_v59, 0.0  ;;  %v1403_v14 = vmax.f32 %v1108_v42, 0.0  ;;  %v1110_v51 = vadd.f32 %v4786_v34, %v3620_v33  ;;  %v1413_v34 = vmax.f32 %v769_v45, 0.0 }
 0x1dd   : > { %v4002_v58 = vpop.f32.mrf.mxu0  ;;  %v4004_v26 = vpop.f32.mrf.mxu1  ;;  %v1609_v59 = vpack.c.bf16 %v1405_v2, %v1401_v16 }
 0x1de   : > { %v1606_v52 = vpack.c.bf16 %v1398_v18, %v1394_v15  ;;  %v1611_v44 = vpack.c.bf16 %v1407_v31, %v1403_v14  ;;  %v4787_v15 = vld [vmem:[#allocation17_spill] sm:$0xff]  ;;  %v1404_v14 = vmax.f32 %v757_v0, 0.0  ;;  %v1406_v2 = vmax.f32 %v1110_v51, 0.0 }
 0x1df   : > { %v4006_v37 = vpop.f32.mrf.mxu0  ;;  %v4008_v48 = vpop.f32.mrf.mxu1  ;;  %v753_v42 = vadd.f32 %v4787_v15, %v3618_v4  ;;  %v1415_v15 = vmax.f32 %v1122_v19, 0.0  ;;  %v767_v0 = vadd.f32 %v3846_v41, %v3618_v4  ;;  %v1120_v51 = vadd.f32 %v3848_v3, %v3620_v33  ;;  %v4792_v41 = vld [vmem:[#allocation21_spill] sm:$0xff] }
 0x1e0   : > { %4785 = vst [vmem:[#allocation27_spill] sm:$0xff] %v4008_v48  ;;  %v779_v19 = vadd.f32 %v3886_v24, %v3590_v38  ;;  %v775_v24 = vadd.f32 %v3874_v56, %v3590_v38 }
 0x1e1   : > { %v4014_v53 = vpop.f32.mrf.mxu0  ;;  %v4016_v9 = vpop.f32.mrf.mxu1  ;;  %v1400_v63 = vmax.f32 %v753_v42, 0.0  ;;  %v1613_v42 = vpack.c.bf16 %v1413_v34, %v1409_v27 }
 0x1e2   : > { %v1417_v56 = vmax.f32 %v775_v24, 0.0  ;;  %v4795_v24 = vld [vmem:[#allocation22_spill] sm:$0xff] }
 0x1e3   : > { %v4026_v18 = vpop.f32.mrf.mxu0  ;;  %v4028_v62 = vpop.f32.mrf.mxu1  ;;  %2072 = vmatmul.mubr.bf16.gmra.mxu0 %v1604_v30  ;;  %2361 = vmatmul.mubr.bf16.gmra.mxu1 %v1606_v52  ;;  %v1608_v48 = vpack.c.bf16 %v1404_v14, %v1400_v63  ;;  %v1421_v63 = vmax.f32 %v779_v19, 0.0 }
 0x1e4   : > { %4789 = vst [vmem:[#allocation25_spill] sm:$0xff] %v4026_v18  ;;  %4790 = vst [vmem:[#allocation26_spill] sm:$0xff] %v4028_v62  ;;  %2079 = vmatprep.mubr.bf16.mxu0 %v1609_v59  ;;  %2368 = vmatprep.mubr.bf16.mxu1 %v1611_v44  ;;  %v1402_v62 = vmax.f32 %v1106_v54, 0.0  ;;  %v1411_v18 = vmax.f32 %v1118_v5, 0.0  ;;  %v1132_v44 = vadd.f32 %v3888_v11, %v3592_v39 }
 0x1e5   : > { %v4034_v31 = vpop.f32.mrf.mxu0  ;;  %v4036_v16 = vpop.f32.mrf.mxu1  ;;  %v1116_v5 = vadd.f32 %v4792_v41, %v3620_v33  ;;  %v1128_v11 = vadd.f32 %v3876_v23, %v3592_v39 }
 0x1e6   : > { %v1610_v12 = vpack.c.bf16 %v1406_v2, %v1402_v62  ;;  %v1615_v54 = vpack.c.bf16 %v1415_v15, %v1411_v18  ;;  %v4791_v62 = vld [vmem:[#allocation20_spill] sm:$0xff]  ;;  %v1412_v18 = vmax.f32 %v767_v0, 0.0  ;;  %v1414_v2 = vmax.f32 %v1120_v51, 0.0 }
 0x1e7   : > { %v4038_v30 = vpop.f32.mrf.mxu0  ;;  %v4040_v52 = vpop.f32.mrf.mxu1  ;;  %v763_v8 = vadd.f32 %v4791_v62, %v3618_v4  ;;  %v1423_v27 = vmax.f32 %v1132_v44, 0.0  ;;  %v1410_v41 = vmax.f32 %v1116_v5, 0.0  ;;  %v777_v0 = vadd.f32 %v3878_v17, %v3618_v4  ;;  %v4796_v17 = vld [vmem:[#allocation18_spill] sm:$0xff] }
 0x1e8   : > { %v1130_v51 = vadd.f32 %v3880_v1, %v3620_v33  ;;  %v789_v44 = vadd.f32 %v3918_v60, %v3590_v38  ;;  %v785_v60 = vadd.f32 %v3906_v35, %v3590_v38 }
 0x1e9   : > { %v4046_v59 = vpop.f32.mrf.mxu0  ;;  %v4048_v45 = vpop.f32.mrf.mxu1  ;;  %v1408_v62 = vmax.f32 %v763_v8, 0.0  ;;  %v1614_v23 = vpack.c.bf16 %v1414_v2, %v1410_v41  ;;  %v1617_v8 = vpack.c.bf16 %v1421_v63, %v1417_v56 }
 0x1ea   : > { %v1422_v63 = vmax.f32 %v1130_v51, 0.0  ;;  %v1429_v41 = vmax.f32 %v789_v44, 0.0  ;;  %v1425_v35 = vmax.f32 %v785_v60, 0.0  ;;  %v1140_v51 = vadd.f32 %v3912_v21, %v3620_v33 }
 0x1eb   : > { %v4058_v14 = vpop.f32.mrf.mxu0  ;;  %v4060_v3 = vpop.f32.mrf.mxu1  ;;  %2080 = vmatmul.mubr.bf16.gmra.mxu0 %v1608_v48  ;;  %2369 = vmatmul.mubr.bf16.gmra.mxu1 %v1610_v12  ;;  %v783_v60 = vadd.f32 %v3898_v55, %v3618_v4 }
 0x1ec   : > { %4793 = vst [vmem:[#allocation16_spill] sm:$0xff] %v4058_v14  ;;  %4794 = vst [vmem:[#allocation17_spill] sm:$0xff] %v4060_v3  ;;  %2087 = vmatprep.mubr.bf16.mxu0 %v1613_v42  ;;  %2376 = vmatprep.mubr.bf16.mxu1 %v1615_v54  ;;  %v1419_v3 = vmax.f32 %v1128_v11, 0.0  ;;  %v1612_v14 = vpack.c.bf16 %v1412_v18, %v1408_v62  ;;  %v1142_v54 = vadd.f32 %v3920_v7, %v3592_v39 }
 0x1ed   : > { %v4066_v34 = vpop.f32.mrf.mxu0  ;;  %v4068_v15 = vpop.f32.mrf.mxu1  ;;  %v773_v11 = vadd.f32 %v4795_v24, %v3618_v4  ;;  %v1126_v18 = vadd.f32 %v4796_v17, %v3620_v33  ;;  %v1138_v7 = vadd.f32 %v3908_v49, %v3592_v39 }
 0x1ee   : > { %v1619_v5 = vpack.c.bf16 %v1423_v27, %v1419_v3  ;;  %v1420_v3 = vmax.f32 %v777_v0, 0.0  ;;  %v1431_v56 = vmax.f32 %v1142_v54, 0.0  ;;  %v787_v0 = vadd.f32 %v3910_v6, %v3618_v4 }
 0x1ef   : > { %v4070_v48 = vpop.f32.mrf.mxu0  ;;  %v4072_v12 = vpop.f32.mrf.mxu1  ;;  %v1416_v24 = vmax.f32 %v773_v11, 0.0  ;;  %v1418_v17 = vmax.f32 %v1126_v18, 0.0  ;;  %v799_v54 = vadd.f32 %v3950_v10, %v3590_v38  ;;  %v1621_v11 = vpack.c.bf16 %v1429_v41, %v1425_v35 }
 0x1f0   : > { %v1136_v6 = vadd.f32 %v3900_v13, %v3620_v33  ;;  %v795_v10 = vadd.f32 %v3938_v46, %v3590_v38 }
 0x1f1   : > { %v4078_v42 = vpop.f32.mrf.mxu0  ;;  %v4080_v19 = vpop.f32.mrf.mxu1  ;;  %v1618_v49 = vpack.c.bf16 %v1422_v63, %v1418_v17  ;;  %v1437_v13 = vmax.f32 %v799_v54, 0.0 }
 0x1f2   : > { %v1433_v46 = vmax.f32 %v795_v10, 0.0  ;;  %v793_v10 = vadd.f32 %v3930_v61, %v3618_v4 }
 0x1f3   : > { %v4090_v2 = vpop.f32.mrf.mxu0  ;;  %v4092_v1 = vpop.f32.mrf.mxu1  ;;  %2088 = vmatmul.mubr.bf16.gmra.mxu0 %v1612_v14  ;;  %2377 = vmatmul.mubr.bf16.gmra.mxu1 %v1614_v23 }
 0x1f4   : > { %4797 = vst [vmem:[#allocation15_spill] sm:$0xff] %v4090_v2  ;;  %4798 = vst [vmem:[#allocation20_spill] sm:$0xff] %v4092_v1  ;;  %2095 = vmatprep.mubr.bf16.mxu0 %v1617_v8  ;;  %2384 = vmatprep.mubr.bf16.mxu1 %v1619_v5  ;;  %v1427_v1 = vmax.f32 %v1138_v7, 0.0  ;;  %v1616_v2 = vpack.c.bf16 %v1420_v3, %v1416_v24  ;;  %v1152_v5 = vadd.f32 %v3952_v50, %v3592_v39 }
 0x1f5   : > { %v4098_v27 = vpop.f32.mrf.mxu0  ;;  %v4100_v62 = vpop.f32.mrf.mxu1  ;;  %v1148_v50 = vadd.f32 %v3940_v32, %v3592_v39  ;;  %v1430_v3 = vmax.f32 %v1140_v51, 0.0  ;;  %v1426_v24 = vmax.f32 %v1136_v6, 0.0  ;;  %v1150_v51 = vadd.f32 %v3944_v25, %v3620_v33 }
 0x1f6   : > { %v1623_v18 = vpack.c.bf16 %v1431_v56, %v1427_v1  ;;  %v1428_v1 = vmax.f32 %v787_v0, 0.0  ;;  %v1439_v41 = vmax.f32 %v1152_v5, 0.0  ;;  %v1424_v56 = vmax.f32 %v783_v60, 0.0 }
 0x1f7   : > { %v4102_v14 = vpop.f32.mrf.mxu0  ;;  %v4104_v23 = vpop.f32.mrf.mxu1  ;;  %v1435_v35 = vmax.f32 %v1148_v50, 0.0  ;;  %v1622_v32 = vpack.c.bf16 %v1430_v3, %v1426_v24  ;;  %v797_v0 = vadd.f32 %v3942_v36, %v3618_v4  ;;  %v809_v5 = vadd.f32 %v3982_v40, %v3590_v38 }
 0x1f8   : > { %v1625_v60 = vpack.c.bf16 %v1437_v13, %v1433_v46  ;;  %v1146_v36 = vadd.f32 %v3932_v29, %v3620_v33  ;;  %v805_v40 = vadd.f32 %v3970_v57, %v3590_v38  ;;  %v1438_v3 = vmax.f32 %v1150_v51, 0.0 }
 0x1f9   : > { %v4110_v8 = vpop.f32.mrf.mxu0  ;;  %v4112_v44 = vpop.f32.mrf.mxu1  ;;  %v1627_v6 = vpack.c.bf16 %v1439_v41, %v1435_v35  ;;  %v1445_v29 = vmax.f32 %v809_v5, 0.0  ;;  %v1160_v51 = vadd.f32 %v3976_v28, %v3620_v33 }
 0x1fa   : > { %v1434_v24 = vmax.f32 %v1146_v36, 0.0  ;;  %v1441_v57 = vmax.f32 %v805_v40, 0.0  ;;  %v803_v40 = vadd.f32 %v3962_v20, %v3618_v4 }
 0x1fb   : > { %v4122_v7 = vpop.f32.mrf.mxu0  ;;  %v4124_v21 = vpop.f32.mrf.mxu1  ;;  %2096 = vmatmul.mubr.bf16.gmra.mxu0 %v1616_v2  ;;  %2385 = vmatmul.mubr.bf16.gmra.mxu1 %v1618_v49  ;;  %v1620_v49 = vpack.c.bf16 %v1428_v1, %v1424_v56  ;;  %v1436_v1 = vmax.f32 %v797_v0, 0.0  ;;  %v1432_v56 = vmax.f32 %v793_v10, 0.0  ;;  %v807_v0 = vadd.f32 %v3974_v47, %v3618_v4  ;;  %v4799_v47 = vld [vmem:[#allocation19_spill] sm:$0xff] }
 0x1fc   : > { %2103 = vmatprep.mubr.bf16.mxu0 %v1621_v11  ;;  %2392 = vmatprep.mubr.bf16.mxu1 %v1623_v18  ;;  %v1162_v18 = vadd.f32 %v3984_v22, %v3592_v39  ;;  %v1158_v22 = vadd.f32 %v3972_v43, %v3592_v39  ;;  %v1626_v43 = vpack.c.bf16 %v1438_v3, %v1434_v24 }
 0x1fd   : > { %v4130_v55 = vpop.f32.mrf.mxu0  ;;  %v4132_v63 = vpop.f32.mrf.mxu1  ;;  %v1629_v10 = vpack.c.bf16 %v1445_v29, %v1441_v57  ;;  %v1444_v3 = vmax.f32 %v807_v0, 0.0  ;;  %v1446_v29 = vmax.f32 %v1160_v51, 0.0  ;;  %v1440_v57 = vmax.f32 %v803_v40, 0.0  ;;  %v4802_v51 = vld [vmem:[#allocation27_spill] sm:$0xff] }
 0x1fe   : > { %v1447_v41 = vmax.f32 %v1162_v18, 0.0  ;;  %v819_v18 = vadd.f32 %v4014_v53, %v3590_v38  ;;  %v815_v53 = vadd.f32 %v4002_v58, %v3590_v38  ;;  %v817_v0 = vadd.f32 %v4006_v37, %v3618_v4  ;;  %v4804_v37 = vld [vmem:[#allocation24_spill] sm:$0xff] }
 0x1ff   : > { %v4134_v2 = vpop.f32.mrf.mxu0  ;;  %v4136_v17 = vpop.f32.mrf.mxu1  ;;  %v1182_v40 = vadd.f32 %v4048_v45, %v3592_v39  ;;  %v1178_v45 = vadd.f32 %v4036_v16, %v3592_v39 }
 0x200   : > { %v1449_v58 = vmax.f32 %v815_v53, 0.0 }
 0x201   : > { %v4142_v11 = vpop.f32.mrf.mxu0  ;;  %v4144_v54 = vpop.f32.mrf.mxu1 }
 0x203   : > { %v4154_v50 = vpop.f32.mrf.mxu0  ;;  %v4156_v25 = vpop.f32.mrf.mxu1  ;;  %2104 = vmatmul.mubr.bf16.gmra.mxu0 %v1620_v49  ;;  %2393 = vmatmul.mubr.bf16.gmra.mxu1 %v1622_v32  ;;  %v1443_v49 = vmax.f32 %v1158_v22, 0.0  ;;  %v1624_v32 = vpack.c.bf16 %v1436_v1, %v1432_v56  ;;  %v1156_v22 = vadd.f32 %v4799_v47, %v3620_v33  ;;  %v1453_v56 = vmax.f32 %v819_v18, 0.0 }
 0x204   : > { %2111 = vmatprep.mubr.bf16.mxu0 %v1625_v60  ;;  %2400 = vmatprep.mubr.bf16.mxu1 %v1627_v6  ;;  %v1172_v6 = vadd.f32 %v4016_v9, %v3592_v39  ;;  %v1168_v9 = vadd.f32 %v4004_v26, %v3592_v39 }
 0x205   : > { %v4162_v61 = vpop.f32.mrf.mxu0  ;;  %v4164_v13 = vpop.f32.mrf.mxu1  ;;  %v1631_v36 = vpack.c.bf16 %v1447_v41, %v1443_v49  ;;  %v1442_v49 = vmax.f32 %v1156_v22, 0.0  ;;  %v1633_v22 = vpack.c.bf16 %v1453_v56, %v1449_v58  ;;  %v1452_v56 = vmax.f32 %v817_v0, 0.0 }
 0x206   : > { %v1455_v24 = vmax.f32 %v1172_v6, 0.0  ;;  %v1451_v47 = vmax.f32 %v1168_v9, 0.0  ;;  %v829_v6 = vadd.f32 %v4046_v59, %v3590_v38  ;;  %v4803_v9 = vld [vmem:[#allocation23_spill] sm:$0xff]  ;;  %v825_v59 = vadd.f32 %v4034_v31, %v3590_v38 }
 0x207   : > { %v4166_v46 = vpop.f32.mrf.mxu0  ;;  %v4168_v35 = vpop.f32.mrf.mxu1  ;;  %v1630_v26 = vpack.c.bf16 %v1446_v29, %v1442_v49  ;;  %v1166_v29 = vadd.f32 %v4804_v37, %v3620_v33  ;;  %v827_v0 = vadd.f32 %v4038_v30, %v3618_v4  ;;  %v4808_v30 = vld [vmem:[#allocation26_spill] sm:$0xff] }
 0x208   : > { %v1635_v53 = vpack.c.bf16 %v1455_v24, %v1451_v47  ;;  %v1457_v31 = vmax.f32 %v825_v59, 0.0 }
 0x209   : > { %v4174_v60 = vpop.f32.mrf.mxu0  ;;  %v4176_v5 = vpop.f32.mrf.mxu1 }
 0x20b   : > { %v4186_v1 = vpop.f32.mrf.mxu0  ;;  %v4188_v28 = vpop.f32.mrf.mxu1  ;;  %2112 = vmatmul.mubr.bf16.gmra.mxu0 %v1624_v32  ;;  %2401 = vmatmul.mubr.bf16.gmra.mxu1 %v1626_v43 }
 0x20c   : > { %4800 = vst [vmem:[#allocation21_spill] sm:$0xff] %v4186_v1  ;;  %4801 = vst [vmem:[#allocation22_spill] sm:$0xff] %v4188_v28  ;;  %2119 = vmatprep.mubr.bf16.mxu0 %v1629_v10  ;;  %2408 = vmatprep.mubr.bf16.mxu1 %v1631_v36  ;;  %v1628_v28 = vpack.c.bf16 %v1444_v3, %v1440_v57  ;;  %v1170_v10 = vadd.f32 %v4802_v51, %v3620_v33  ;;  %v1461_v51 = vmax.f32 %v829_v6, 0.0 }
 0x20d   : > { %v4194_v20 = vpop.f32.mrf.mxu0  ;;  %v4196_v41 = vpop.f32.mrf.mxu1  ;;  %v813_v3 = vadd.f32 %v4803_v9, %v3618_v4  ;;  %v1463_v9 = vmax.f32 %v1182_v40, 0.0  ;;  %v839_v40 = vadd.f32 %v4078_v42, %v3590_v38  ;;  %v835_v42 = vadd.f32 %v4066_v34, %v3590_v38 }
 0x20e   : > { %v1454_v24 = vmax.f32 %v1170_v10, 0.0  ;;  %v1180_v10 = vadd.f32 %v4040_v52, %v3620_v33 }
 0x20f   : > { %v4198_v32 = vpop.f32.mrf.mxu0  ;;  %v4200_v43 = vpop.f32.mrf.mxu1  ;;  %v1448_v37 = vmax.f32 %v813_v3, 0.0  ;;  %v1637_v3 = vpack.c.bf16 %v1461_v51, %v1457_v31  ;;  %v1465_v34 = vmax.f32 %v835_v42, 0.0  ;;  %v4811_v42 = vld [vmem:[#allocation16_spill] sm:$0xff] }
 0x211   : > { %v4206_v36 = vpop.f32.mrf.mxu0  ;;  %v4208_v18 = vpop.f32.mrf.mxu1  ;;  %v1632_v1 = vpack.c.bf16 %v1452_v56, %v1448_v37  ;;  %v1469_v37 = vmax.f32 %v839_v40, 0.0 }
 0x213   : > { %v4218_v57 = vpop.f32.mrf.mxu0  ;;  %v4220_v49 = vpop.f32.mrf.mxu1  ;;  %2120 = vmatmul.mubr.bf16.gmra.mxu0 %v1628_v28  ;;  %2409 = vmatmul.mubr.bf16.gmra.mxu1 %v1630_v26 }
 0x214   : > { %4805 = vst [vmem:[#allocation18_spill] sm:$0xff] %v4218_v57  ;;  %4806 = vst [vmem:[#allocation19_spill] sm:$0xff] %v4220_v49  ;;  %2127 = vmatprep.mubr.bf16.mxu0 %v1633_v22  ;;  %2416 = vmatprep.mubr.bf16.mxu1 %v1635_v53  ;;  %v1450_v49 = vmax.f32 %v1166_v29, 0.0  ;;  %v1459_v57 = vmax.f32 %v1178_v45, 0.0  ;;  %v1192_v53 = vadd.f32 %v4080_v19, %v3592_v39 }
 0x215   : > { %v4226_v58 = vpop.f32.mrf.mxu0  ;;  %v4228_v47 = vpop.f32.mrf.mxu1  ;;  %v1176_v45 = vadd.f32 %v4808_v30, %v3620_v33  ;;  %v1188_v19 = vadd.f32 %v4068_v15, %v3592_v39 }
 0x216   : > { %v1634_v16 = vpack.c.bf16 %v1454_v24, %v1450_v49  ;;  %v1639_v29 = vpack.c.bf16 %v1463_v9, %v1459_v57  ;;  %v4807_v49 = vld [vmem:[#allocation25_spill] sm:$0xff]  ;;  %v1460_v57 = vmax.f32 %v827_v0, 0.0  ;;  %v1462_v24 = vmax.f32 %v1180_v10, 0.0 }
 0x217   : > { %v4230_v28 = vpop.f32.mrf.mxu0  ;;  %v4232_v26 = vpop.f32.mrf.mxu1  ;;  %v823_v59 = vadd.f32 %v4807_v49, %v3618_v4  ;;  %v1471_v31 = vmax.f32 %v1192_v53, 0.0  ;;  %v1458_v30 = vmax.f32 %v1176_v45, 0.0  ;;  %v837_v0 = vadd.f32 %v4070_v48, %v3618_v4  ;;  %v4812_v48 = vld [vmem:[#allocation17_spill] sm:$0xff] }
 0x218   : > { %v1190_v10 = vadd.f32 %v4072_v12, %v3620_v33  ;;  %v849_v53 = vadd.f32 %v4110_v8, %v3590_v38  ;;  %v845_v8 = vadd.f32 %v4098_v27, %v3590_v38 }
 0x219   : > { %v4238_v22 = vpop.f32.mrf.mxu0  ;;  %v4240_v6 = vpop.f32.mrf.mxu1  ;;  %v1456_v49 = vmax.f32 %v823_v59, 0.0  ;;  %v1638_v15 = vpack.c.bf16 %v1462_v24, %v1458_v30  ;;  %v1641_v59 = vpack.c.bf16 %v1469_v37, %v1465_v34 }
 0x21a   : > { %v1470_v37 = vmax.f32 %v1190_v10, 0.0  ;;  %v1477_v30 = vmax.f32 %v849_v53, 0.0  ;;  %v1473_v27 = vmax.f32 %v845_v8, 0.0  ;;  %v1200_v10 = vadd.f32 %v4104_v23, %v3620_v33  ;;  %v4815_v8 = vld [vmem:[#allocation15_spill] sm:$0xff] }
 0x21b   : > { %v4250_v56 = vpop.f32.mrf.mxu0  ;;  %v4252_v52 = vpop.f32.mrf.mxu1  ;;  %2128 = vmatmul.mubr.bf16.gmra.mxu0 %v1632_v1  ;;  %2417 = vmatmul.mubr.bf16.gmra.mxu1 %v1634_v16 }
 0x21c   : > { %4809 = vst [vmem:[#allocation27_spill] sm:$0xff] %v4250_v56  ;;  %4810 = vst [vmem:[#allocation23_spill] sm:$0xff] %v4252_v52  ;;  %2135 = vmatprep.mubr.bf16.mxu0 %v1637_v3  ;;  %2424 = vmatprep.mubr.bf16.mxu1 %v1639_v29  ;;  %v1467_v52 = vmax.f32 %v1188_v19, 0.0  ;;  %v1636_v56 = vpack.c.bf16 %v1460_v57, %v1456_v49  ;;  %v1202_v29 = vadd.f32 %v4112_v44, %v3592_v39 }
 0x21d   : > { %v4258_v51 = vpop.f32.mrf.mxu0  ;;  %v4260_v9 = vpop.f32.mrf.mxu1  ;;  %v833_v19 = vadd.f32 %v4811_v42, %v3618_v4  ;;  %v1186_v57 = vadd.f32 %v4812_v48, %v3620_v33  ;;  %v1198_v44 = vadd.f32 %v4100_v62, %v3592_v39 }
 0x21e   : > { %v1643_v45 = vpack.c.bf16 %v1471_v31, %v1467_v52  ;;  %v1468_v52 = vmax.f32 %v837_v0, 0.0  ;;  %v1479_v34 = vmax.f32 %v1202_v29, 0.0  ;;  %v847_v0 = vadd.f32 %v4102_v14, %v3618_v4  ;;  %v4816_v14 = vld [vmem:[#allocation20_spill] sm:$0xff] }
 0x21f   : > { %v4262_v1 = vpop.f32.mrf.mxu0  ;;  %v4264_v16 = vpop.f32.mrf.mxu1  ;;  %v1464_v42 = vmax.f32 %v833_v19, 0.0  ;;  %v1466_v48 = vmax.f32 %v1186_v57, 0.0  ;;  %v859_v29 = vadd.f32 %v4142_v11, %v3590_v38  ;;  %v1645_v19 = vpack.c.bf16 %v1477_v30, %v1473_v27 }
 0x220   : > { %v855_v11 = vadd.f32 %v4130_v55, %v3590_v38  ;;  %v1478_v30 = vmax.f32 %v1200_v10, 0.0  ;;  %v1210_v10 = vadd.f32 %v4136_v17, %v3620_v33 }
 0x221   : > { %v4270_v3 = vpop.f32.mrf.mxu0  ;;  %v4272_v40 = vpop.f32.mrf.mxu1  ;;  %v1642_v62 = vpack.c.bf16 %v1470_v37, %v1466_v48  ;;  %v1485_v48 = vmax.f32 %v859_v29, 0.0 }
 0x222   : > { %v1481_v55 = vmax.f32 %v855_v11, 0.0  ;;  %v853_v11 = vadd.f32 %v4122_v7, %v3618_v4 }
 0x223   : > { %v4282_v24 = vpop.f32.mrf.mxu0  ;;  %v4284_v12 = vpop.f32.mrf.mxu1  ;;  %2136 = vmatmul.mubr.bf16.gmra.mxu0 %v1636_v56  ;;  %2425 = vmatmul.mubr.bf16.gmra.mxu1 %v1638_v15 }
 0x224   : > { %4813 = vst [vmem:[#allocation24_spill] sm:$0xff] %v4282_v24  ;;  %4814 = vst [vmem:[#allocation25_spill] sm:$0xff] %v4284_v12  ;;  %2143 = vmatprep.mubr.bf16.mxu0 %v1641_v59  ;;  %2432 = vmatprep.mubr.bf16.mxu1 %v1643_v45  ;;  %v1475_v12 = vmax.f32 %v1198_v44, 0.0  ;;  %v1640_v24 = vpack.c.bf16 %v1468_v52, %v1464_v42  ;;  %v1212_v45 = vadd.f32 %v4144_v54, %v3592_v39 }
 0x225   : > { %v4290_v31 = vpop.f32.mrf.mxu0  ;;  %v4292_v49 = vpop.f32.mrf.mxu1  ;;  %v843_v44 = vadd.f32 %v4815_v8, %v3618_v4  ;;  %v1196_v52 = vadd.f32 %v4816_v14, %v3620_v33  ;;  %v1208_v54 = vadd.f32 %v4132_v63, %v3592_v39 }
 0x226   : > { %v1647_v57 = vpack.c.bf16 %v1479_v34, %v1475_v12  ;;  %v1476_v12 = vmax.f32 %v847_v0, 0.0  ;;  %v1487_v27 = vmax.f32 %v1212_v45, 0.0  ;;  %v857_v0 = vadd.f32 %v4134_v2, %v3618_v4 }
 0x227   : > { %v4294_v56 = vpop.f32.mrf.mxu0  ;;  %v4296_v15 = vpop.f32.mrf.mxu1  ;;  %v1472_v8 = vmax.f32 %v843_v44, 0.0  ;;  %v1474_v14 = vmax.f32 %v1196_v52, 0.0  ;;  %v869_v45 = vadd.f32 %v4174_v60, %v3590_v38  ;;  %v1649_v44 = vpack.c.bf16 %v1485_v48, %v1481_v55 }
 0x228   : > { %v1206_v2 = vadd.f32 %v4124_v21, %v3620_v33  ;;  %v865_v60 = vadd.f32 %v4162_v61, %v3590_v38 }
 0x229   : > { %v4302_v59 = vpop.f32.mrf.mxu0  ;;  %v4304_v53 = vpop.f32.mrf.mxu1  ;;  %v1646_v63 = vpack.c.bf16 %v1478_v30, %v1474_v14  ;;  %v1493_v21 = vmax.f32 %v869_v45, 0.0 }
 0x22a   : > { %v1489_v61 = vmax.f32 %v865_v60, 0.0  ;;  %v863_v60 = vadd.f32 %v4154_v50, %v3618_v4 }
 0x22b   : > { %v4314_v37 = vpop.f32.mrf.mxu0  ;;  %v4316_v23 = vpop.f32.mrf.mxu1  ;;  %2144 = vmatmul.mubr.bf16.gmra.mxu0 %v1640_v24  ;;  %2433 = vmatmul.mubr.bf16.gmra.mxu1 %v1642_v62 }
 0x22c   : > { %4817 = vst [vmem:[#allocation26_spill] sm:$0xff] %v4314_v37  ;;  %4818 = vst [vmem:[#allocation16_spill] sm:$0xff] %v4316_v23  ;;  %2151 = vmatprep.mubr.bf16.mxu0 %v1645_v19  ;;  %2440 = vmatprep.mubr.bf16.mxu1 %v1647_v57  ;;  %v1483_v23 = vmax.f32 %v1208_v54, 0.0  ;;  %v1644_v37 = vpack.c.bf16 %v1476_v12, %v1472_v8  ;;  %v1222_v57 = vadd.f32 %v4176_v5, %v3592_v39 }
 0x22d   : > { %v4322_v34 = vpop.f32.mrf.mxu0  ;;  %v4324_v42 = vpop.f32.mrf.mxu1  ;;  %v1218_v5 = vadd.f32 %v4164_v13, %v3592_v39  ;;  %v1486_v12 = vmax.f32 %v1210_v10, 0.0  ;;  %v1482_v8 = vmax.f32 %v1206_v2, 0.0  ;;  %v1220_v10 = vadd.f32 %v4168_v35, %v3620_v33 }
 0x22e   : > { %v1651_v52 = vpack.c.bf16 %v1487_v27, %v1483_v23  ;;  %v1484_v23 = vmax.f32 %v857_v0, 0.0  ;;  %v1495_v48 = vmax.f32 %v1222_v57, 0.0  ;;  %v1480_v27 = vmax.f32 %v853_v11, 0.0 }
 0x22f   : > { %v4326_v24 = vpop.f32.mrf.mxu0  ;;  %v4328_v62 = vpop.f32.mrf.mxu1  ;;  %v1491_v55 = vmax.f32 %v1218_v5, 0.0  ;;  %v1650_v13 = vpack.c.bf16 %v1486_v12, %v1482_v8  ;;  %v867_v0 = vadd.f32 %v4166_v46, %v3618_v4  ;;  %v879_v57 = vadd.f32 %v4206_v36, %v3590_v38 }
 0x230   : > { %v1653_v11 = vpack.c.bf16 %v1493_v21, %v1489_v61  ;;  %v1216_v46 = vadd.f32 %v4156_v25, %v3620_v33  ;;  %v875_v36 = vadd.f32 %v4194_v20, %v3590_v38  ;;  %v1494_v12 = vmax.f32 %v1220_v10, 0.0 }
 0x231   : > { %v4334_v19 = vpop.f32.mrf.mxu0  ;;  %v4336_v29 = vpop.f32.mrf.mxu1  ;;  %v1655_v2 = vpack.c.bf16 %v1495_v48, %v1491_v55  ;;  %v1501_v25 = vmax.f32 %v879_v57, 0.0  ;;  %v1230_v10 = vadd.f32 %v4200_v43, %v3620_v33 }
 0x232   : > { %v1490_v8 = vmax.f32 %v1216_v46, 0.0  ;;  %v1497_v20 = vmax.f32 %v875_v36, 0.0  ;;  %v4819_v36 = vld [vmem:[#allocation21_spill] sm:$0xff] }
 0x233   : > { %v4346_v54 = vpop.f32.mrf.mxu0  ;;  %v4348_v17 = vpop.f32.mrf.mxu1  ;;  %2152 = vmatmul.mubr.bf16.gmra.mxu0 %v1644_v37  ;;  %2441 = vmatmul.mubr.bf16.gmra.mxu1 %v1646_v63  ;;  %v1648_v63 = vpack.c.bf16 %v1484_v23, %v1480_v27  ;;  %v1492_v23 = vmax.f32 %v867_v0, 0.0  ;;  %v1488_v27 = vmax.f32 %v863_v60, 0.0  ;;  %v877_v0 = vadd.f32 %v4198_v32, %v3618_v4  ;;  %v4820_v32 = vld [vmem:[#allocation22_spill] sm:$0xff] }
 0x234   : > { %2159 = vmatprep.mubr.bf16.mxu0 %v1649_v44  ;;  %2448 = vmatprep.mubr.bf16.mxu1 %v1651_v52  ;;  %v1232_v52 = vadd.f32 %v4208_v18, %v3592_v39  ;;  %v1228_v18 = vadd.f32 %v4196_v41, %v3592_v39  ;;  %v1654_v41 = vpack.c.bf16 %v1494_v12, %v1490_v8 }
 0x235   : > { %v4354_v7 = vpop.f32.mrf.mxu0  ;;  %v4356_v30 = vpop.f32.mrf.mxu1  ;;  %v1657_v60 = vpack.c.bf16 %v1501_v25, %v1497_v20  ;;  %v1500_v25 = vmax.f32 %v877_v0, 0.0 }
 0x236   : > { %v1503_v48 = vmax.f32 %v1232_v52, 0.0  ;;  %v889_v52 = vadd.f32 %v4238_v22, %v3590_v38  ;;  %v885_v22 = vadd.f32 %v4226_v58, %v3590_v38 }
 0x237   : > { %v4358_v37 = vpop.f32.mrf.mxu0  ;;  %v4360_v14 = vpop.f32.mrf.mxu1 }
 0x238   : > { %v1509_v20 = vmax.f32 %v889_v52, 0.0  ;;  %v1505_v58 = vmax.f32 %v885_v22, 0.0  ;;  %v899_v52 = vadd.f32 %v4270_v3, %v3590_v38  ;;  %v1252_v22 = vadd.f32 %v4272_v40, %v3592_v39 }
 0x239   : > { %v4366_v44 = vpop.f32.mrf.mxu0  ;;  %v4368_v45 = vpop.f32.mrf.mxu1  ;;  %v1248_v40 = vadd.f32 %v4260_v9, %v3592_v39 }
 0x23b   : > { %v4378_v5 = vpop.f32.mrf.mxu0  ;;  %v4380_v35 = vpop.f32.mrf.mxu1  ;;  %2160 = vmatmul.mubr.bf16.gmra.mxu0 %v1648_v63  ;;  %2449 = vmatmul.mubr.bf16.gmra.mxu1 %v1650_v13  ;;  %v1499_v63 = vmax.f32 %v1228_v18, 0.0  ;;  %v1652_v13 = vpack.c.bf16 %v1492_v23, %v1488_v27  ;;  %v873_v18 = vadd.f32 %v4819_v36, %v3618_v4  ;;  %v1226_v23 = vadd.f32 %v4820_v32, %v3620_v33 }
 0x23c   : > { %2167 = vmatprep.mubr.bf16.mxu0 %v1653_v11  ;;  %2456 = vmatprep.mubr.bf16.mxu1 %v1655_v2  ;;  %v1242_v2 = vadd.f32 %v4240_v6, %v3592_v39  ;;  %v1238_v6 = vadd.f32 %v4228_v47, %v3592_v39  ;;  %v887_v47 = vadd.f32 %v4230_v28, %v3618_v4  ;;  %v4443_v28 = vld [vmem:[%s4730_s4] ss:$0 sm:$0xff] }
 0x23d   : > { %v4386_v50 = vpop.f32.mrf.mxu0  ;;  %v4388_v21 = vpop.f32.mrf.mxu1  ;;  %v1659_v46 = vpack.c.bf16 %v1503_v48, %v1499_v63  ;;  %v1502_v48 = vmax.f32 %v1230_v10, 0.0  ;;  %v1496_v36 = vmax.f32 %v873_v18, 0.0  ;;  %v1498_v32 = vmax.f32 %v1226_v23, 0.0  ;;  %v4826_v18 = vld [vmem:[#allocation18_spill] sm:$0xff] }
 0x23e   : > { %v1511_v63 = vmax.f32 %v1242_v2, 0.0  ;;  %v1240_v10 = vadd.f32 %v4232_v26, %v3620_v33  ;;  %v883_v23 = vadd.f32 %v4826_v18, %v3618_v4  ;;  %v1508_v18 = vmax.f32 %v887_v47, 0.0 }
 0x23f   : > { %v4390_v61 = vpop.f32.mrf.mxu0  ;;  %v4392_v55 = vpop.f32.mrf.mxu1  ;;  %v1658_v0 = vpack.c.bf16 %v1502_v48, %v1498_v32  ;;  %v895_v48 = vadd.f32 %v4258_v51, %v3590_v38 }
 0x241   : > { %v4398_v11 = vpop.f32.mrf.mxu0  ;;  %v4400_v57 = vpop.f32.mrf.mxu1 }
 0x243   : > { %v4410_v12 = vpop.f32.mrf.mxu0  ;;  %v4412_v43 = vpop.f32.mrf.mxu1  ;;  %2168 = vmatmul.mubr.bf16.gmra.mxu0 %v1652_v13  ;;  %2457 = vmatmul.mubr.bf16.gmra.mxu1 %v1654_v41 }
 0x244   : > { %4821 = vst [vmem:[#allocation17_spill] sm:$0xff] %v4410_v12  ;;  %4822 = vst [vmem:[#allocation15_spill] sm:$0xff] %v4412_v43  ;;  %2175 = vmatprep.mubr.bf16.mxu0 %v1657_v60  ;;  %2464 = vmatprep.mubr.bf16.mxu1 %v1659_v46  ;;  %v1507_v43 = vmax.f32 %v1238_v6, 0.0  ;;  %v1656_v60 = vpack.c.bf16 %v1500_v25, %v1496_v36  ;;  %v1661_v6 = vpack.c.bf16 %v1509_v20, %v1505_v58  ;;  %v4827_v25 = vld [vmem:[#allocation19_spill] sm:$0xff] }
 0x245   : > { %v4418_v27 = vpop.f32.mrf.mxu0  ;;  %v4420_v8 = vpop.f32.mrf.mxu1  ;;  %v1236_v3 = vadd.f32 %v4827_v25, %v3620_v33  ;;  %v1510_v12 = vmax.f32 %v1240_v10, 0.0  ;;  %v1504_v58 = vmax.f32 %v883_v23, 0.0  ;;  %v1519_v25 = vmax.f32 %v1252_v22, 0.0 }
 0x246   : > { %4823 = vst [vmem:[#allocation20_spill] sm:$0xff] %v4420_v8  ;;  %v1663_v26 = vpack.c.bf16 %v1511_v63, %v1507_v43  ;;  %v1250_v23 = vadd.f32 %v4264_v16, %v3620_v33 }
 0x247   : > { %v4422_v13 = vpop.f32.mrf.mxu0  ;;  %v4424_v41 = vpop.f32.mrf.mxu1  ;;  %v1506_v51 = vmax.f32 %v1236_v3, 0.0  ;;  %v1660_v9 = vpack.c.bf16 %v1508_v18, %v1504_v58  ;;  %v905_v58 = vadd.f32 %v4290_v31, %v3590_v38 }
 0x248   : > { %4824 = vst [vmem:[#allocation21_spill] sm:$0xff] %v4422_v13  ;;  %4825 = vst [vmem:[#allocation22_spill] sm:$0xff] %v4424_v41  ;;  %v1517_v41 = vmax.f32 %v899_v52, 0.0  ;;  %v1513_v13 = vmax.f32 %v895_v48, 0.0  ;;  %v909_v48 = vadd.f32 %v4302_v59, %v3590_v38 }
 0x249   : > { %v4432_v2 = vpop.f32.mrf.mxu0  ;;  %v4434_v46 = vpop.f32.mrf.mxu1  ;;  %v1662_v52 = vpack.c.bf16 %v1510_v12, %v1506_v51  ;;  %v1262_v12 = vadd.f32 %v4304_v53, %v3592_v39 }
 0x24a   : > { %v1665_v3 = vpack.c.bf16 %v1517_v41, %v1513_v13  ;;  %v1258_v13 = vadd.f32 %v4292_v49, %v3592_v39  ;;  %v1525_v51 = vmax.f32 %v909_v48, 0.0  ;;  %v907_v49 = vadd.f32 %v4294_v56, %v3618_v4 }
 0x24b   : > { %v1985_v36 = vpop.f32.mrf.mxu0  ;;  %2176 = vmatmul.mubr.bf16.gmra.mxu0 %v1656_v60  ;;  %v2274_v32 = vpop.f32.mrf.mxu1  ;;  %2465 = vmatmul.mubr.bf16.gmra.mxu1 %v1658_v0  ;;  %v897_v60 = vadd.f32 %v4262_v1, %v3618_v4 }
 0x24c   : > { %2183 = vmatprep.mubr.bf16.mxu0 %v1661_v6  ;;  %2472 = vmatprep.mubr.bf16.mxu1 %v1663_v26  ;;  %v1986_v43 = vadd.f32 %v4443_v28, %v1985_v36  ;;  %v1515_v6 = vmax.f32 %v1248_v40, 0.0  ;;  %v4828_v26 = vld [vmem:[#allocation27_spill] sm:$0xff] }
 0x24d   : > { %v1987_v20 = vpop.f32.mrf.mxu0  ;;  %v2276_v63 = vpop.f32.mrf.mxu1  ;;  %v893_v36 = vadd.f32 %v4828_v26, %v3618_v4  ;;  %v4829_v40 = vld [vmem:[#allocation23_spill] sm:$0xff] }
 0x24e   : > { %v2275_v47 = vadd.f32 %v2274_v32, %v1986_v43  ;;  %v1667_v18 = vpack.c.bf16 %v1519_v25, %v1515_v6  ;;  %v1246_v16 = vadd.f32 %v4829_v40, %v3620_v33  ;;  %v1516_v43 = vmax.f32 %v897_v60, 0.0 }
 0x24f   : > { %v1988_v0 = vpop.f32.mrf.mxu0  ;;  %v2277_v8 = vpop.f32.mrf.mxu1  ;;  %v1512_v53 = vmax.f32 %v893_v36, 0.0  ;;  %v1527_v60 = vmax.f32 %v1262_v12, 0.0  ;;  %v4830_v36 = vld [vmem:[#allocation24_spill] sm:$0xff] }
 0x250   : > { %v1989_v10 = vadd.f32 %v4443_v28, %v1988_v0  ;;  %2529 = vst [vmem:[%s4461_s15] sm:$0xff] %v2275_v47  ;;  %v1514_v0 = vmax.f32 %v1246_v16, 0.0  ;;  %v4831_v16 = vld [vmem:[#allocation25_spill] sm:$0xff] }
 0x251   : > { %v1990_v1 = vpop.f32.mrf.mxu0  ;;  %v2279_v22 = vpop.f32.mrf.mxu1 }
 0x252   : > { %v2278_v32 = vadd.f32 %v2277_v8, %v1989_v10  ;;  %v1518_v8 = vmax.f32 %v1250_v23, 0.0  ;;  %v1521_v10 = vmax.f32 %v905_v58, 0.0  ;;  %v903_v23 = vadd.f32 %v4830_v36, %v3618_v4 }
 0x253   : > { %v1993_v20 = vpop.f32.mrf.mxu0  ;;  %2184 = vmatmul.mubr.bf16.gmra.mxu0 %v1660_v9  ;;  %v2282_v63 = vpop.f32.mrf.mxu1  ;;  %2473 = vmatmul.mubr.bf16.gmra.mxu1 %v1662_v52  ;;  %v1664_v9 = vpack.c.bf16 %v1516_v43, %v1512_v53  ;;  %v1523_v52 = vmax.f32 %v1258_v13, 0.0  ;;  %v1260_v22 = vadd.f32 %v4296_v15, %v3620_v33  ;;  %v1256_v43 = vadd.f32 %v4831_v16, %v3620_v33 }
 0x254   : > { %2530 = vst [vmem:[%s4461_s15 + $0x8] sm:$0xff] %v2278_v32  ;;  %v1994_v59 = vadd.f32 %v4443_v28, %v1993_v20  ;;  %2191 = vmatprep.mubr.bf16.mxu0 %v1665_v3  ;;  %2480 = vmatprep.mubr.bf16.mxu1 %v1667_v18  ;;  %v1666_v1 = vpack.c.bf16 %v1518_v8, %v1514_v0  ;;  %v1524_v58 = vmax.f32 %v907_v49, 0.0 }
 0x255   : > { %v1995_v41 = vpop.f32.mrf.mxu0  ;;  %v2284_v25 = vpop.f32.mrf.mxu1  ;;  %v919_v3 = vadd.f32 %v4334_v19, %v3590_v38  ;;  %v1272_v32 = vadd.f32 %v4336_v29, %v3592_v39  ;;  %v1669_v18 = vpack.c.bf16 %v1525_v51, %v1521_v10  ;;  %v1671_v40 = vpack.c.bf16 %v1527_v60, %v1523_v52  ;;  %v4832_v52 = vld [vmem:[#allocation26_spill] sm:$0xff] }
 0x256   : > { %v2283_v47 = vadd.f32 %v2282_v63, %v1994_v59  ;;  %v915_v20 = vadd.f32 %v4322_v34, %v3590_v38  ;;  %v1268_v19 = vadd.f32 %v4324_v42, %v3592_v39  ;;  %v1526_v13 = vmax.f32 %v1260_v22, 0.0 }
 0x257   : > { %v1996_v6 = vpop.f32.mrf.mxu0  ;;  %v2285_v31 = vpop.f32.mrf.mxu1  ;;  %v1533_v59 = vmax.f32 %v919_v3, 0.0  ;;  %v1520_v41 = vmax.f32 %v903_v23, 0.0  ;;  %v1535_v34 = vmax.f32 %v1272_v32, 0.0  ;;  %v1522_v51 = vmax.f32 %v1256_v43, 0.0 }
 0x258   : > { %2531 = vst [vmem:[%s4461_s15 + $0x10] sm:$0xff] %v2283_v47  ;;  %v1997_v26 = vadd.f32 %v4443_v28, %v1996_v6  ;;  %v1529_v60 = vmax.f32 %v915_v20, 0.0  ;;  %v917_v47 = vadd.f32 %v4326_v24, %v3618_v4  ;;  %v1531_v6 = vmax.f32 %v1268_v19, 0.0 }
 0x259   : > { %v1998_v48 = vpop.f32.mrf.mxu0  ;;  %v2287_v12 = vpop.f32.mrf.mxu1  ;;  %v1670_v10 = vpack.c.bf16 %v1526_v13, %v1522_v51  ;;  %v913_v49 = vadd.f32 %v4832_v52, %v3618_v4  ;;  %v929_v24 = vadd.f32 %v4366_v44, %v3590_v38  ;;  %v1282_v22 = vadd.f32 %v4368_v45, %v3592_v39 }
 0x25a   : > { %v2286_v56 = vadd.f32 %v2285_v31, %v1997_v26  ;;  %v1270_v26 = vadd.f32 %v4328_v62, %v3620_v33  ;;  %v1673_v23 = vpack.c.bf16 %v1533_v59, %v1529_v60  ;;  %v1675_v48 = vpack.c.bf16 %v1535_v34, %v1531_v6  ;;  %v4833_v12 = vld [vmem:[#allocation16_spill] sm:$0xff] }
 0x25b   : > { %v2001_v63 = vpop.f32.mrf.mxu0  ;;  %2192 = vmatmul.mubr.bf16.gmra.mxu0 %v1664_v9  ;;  %v2290_v15 = vpop.f32.mrf.mxu1  ;;  %2481 = vmatmul.mubr.bf16.gmra.mxu1 %v1666_v1  ;;  %v1668_v9 = vpack.c.bf16 %v1524_v58, %v1520_v41  ;;  %v1266_v32 = vadd.f32 %v4833_v12, %v3620_v33  ;;  %v925_v62 = vadd.f32 %v4354_v7, %v3590_v38  ;;  %v1528_v45 = vmax.f32 %v913_v49, 0.0 }
 0x25c   : > { %2532 = vst [vmem:[%s4461_s15 + $0x18] sm:$0xff] %v2286_v56  ;;  %v2002_v29 = vadd.f32 %v4443_v28, %v2001_v63  ;;  %2199 = vmatprep.mubr.bf16.mxu0 %v1669_v18  ;;  %2488 = vmatprep.mubr.bf16.mxu1 %v1671_v40  ;;  %v1532_v56 = vmax.f32 %v917_v47, 0.0  ;;  %v1278_v16 = vadd.f32 %v4356_v30, %v3592_v39  ;;  %v1534_v43 = vmax.f32 %v1270_v26, 0.0 }
 0x25d   : > { %v2003_v53 = vpop.f32.mrf.mxu0  ;;  %v2292_v8 = vpop.f32.mrf.mxu1  ;;  %v1543_v58 = vmax.f32 %v1282_v22, 0.0  ;;  %v927_v30 = vadd.f32 %v4358_v37, %v3618_v4  ;;  %v1280_v51 = vadd.f32 %v4360_v14, %v3620_v33  ;;  %v939_v60 = vadd.f32 %v4398_v11, %v3590_v38 }
 0x25e   : > { %v2291_v25 = vadd.f32 %v2290_v15, %v2002_v29  ;;  %v1541_v15 = vmax.f32 %v929_v24, 0.0  ;;  %v1530_v29 = vmax.f32 %v1266_v32, 0.0  ;;  %v1672_v13 = vpack.c.bf16 %v1532_v56, %v1528_v45 }
 0x25f   : > { %v2004_v0 = vpop.f32.mrf.mxu0  ;;  %v2293_v42 = vpop.f32.mrf.mxu1  ;;  %v1537_v53 = vmax.f32 %v925_v62, 0.0  ;;  %v1539_v8 = vmax.f32 %v1278_v16, 0.0  ;;  %v1540_v52 = vmax.f32 %v927_v30, 0.0  ;;  %v1288_v11 = vadd.f32 %v4388_v21, %v3592_v39 }
 0x260   : > { %2533 = vst [vmem:[%s4461_s15 + $0x20] sm:$0xff] %v2291_v25  ;;  %v2005_v31 = vadd.f32 %v4443_v28, %v2004_v0  ;;  %v1674_v34 = vpack.c.bf16 %v1534_v43, %v1530_v29  ;;  %v923_v25 = vadd.f32 %v4346_v54, %v3618_v4  ;;  %v935_v54 = vadd.f32 %v4386_v50, %v3590_v38 }
 0x261   : > { %v2006_v1 = vpop.f32.mrf.mxu0  ;;  %v2295_v36 = vpop.f32.mrf.mxu1  ;;  %v1679_v6 = vpack.c.bf16 %v1543_v58, %v1539_v8  ;;  %v1542_v49 = vmax.f32 %v1280_v51, 0.0  ;;  %v1549_v26 = vmax.f32 %v939_v60, 0.0  ;;  %v1547_v32 = vmax.f32 %v1288_v11, 0.0  ;;  %v4838_v11 = vld [vmem:[#allocation15_spill] sm:$0xff] }
 0x262   : > { %v2294_v3 = vadd.f32 %v2293_v42, %v2005_v31  ;;  %v1292_v42 = vadd.f32 %v4400_v57, %v3592_v39  ;;  %v1276_v31 = vadd.f32 %v4348_v17, %v3620_v33  ;;  %v1536_v36 = vmax.f32 %v923_v25, 0.0 }
 0x263   : > { %v2009_v18 = vpop.f32.mrf.mxu0  ;;  %2200 = vmatmul.mubr.bf16.gmra.mxu0 %v1668_v9  ;;  %v2298_v40 = vpop.f32.mrf.mxu1  ;;  %2489 = vmatmul.mubr.bf16.gmra.mxu1 %v1670_v10  ;;  %v1677_v9 = vpack.c.bf16 %v1541_v15, %v1537_v53  ;;  %v1545_v22 = vmax.f32 %v935_v54, 0.0  ;;  %v949_v45 = vadd.f32 %v4432_v2, %v3590_v38  ;;  %v1302_v43 = vadd.f32 %v4434_v46, %v3592_v39  ;;  %v4834_v2 = vld [vmem:[#allocation20_spill] sm:$0xff] }
 0x264   : > { %2534 = vst [vmem:[%s4461_s15 + $0x28] sm:$0xff] %v2294_v3  ;;  %v2010_v44 = vadd.f32 %v4443_v28, %v2009_v18  ;;  %2207 = vmatprep.mubr.bf16.mxu0 %v1673_v23  ;;  %2496 = vmatprep.mubr.bf16.mxu1 %v1675_v48  ;;  %v1551_v50 = vmax.f32 %v1292_v42, 0.0  ;;  %v1538_v24 = vmax.f32 %v1276_v31, 0.0  ;;  %v1676_v12 = vpack.c.bf16 %v1540_v52, %v1536_v36  ;;  %v4836_v42 = vld [vmem:[#allocation22_spill] sm:$0xff] }
 0x265   : > { %v2011_v20 = vpop.f32.mrf.mxu0  ;;  %v2300_v63 = vpop.f32.mrf.mxu1  ;;  %v937_v18 = vadd.f32 %v4390_v61, %v3618_v4  ;;  %v933_v15 = vadd.f32 %v4378_v5, %v3618_v4  ;;  %v1286_v61 = vadd.f32 %v4380_v35, %v3620_v33  ;;  %v1298_v29 = vadd.f32 %v4834_v2, %v3592_v39 }
 0x266   : > { %v2299_v19 = vadd.f32 %v2298_v40, %v2010_v44  ;;  %v1678_v56 = vpack.c.bf16 %v1542_v49, %v1538_v24  ;;  %v1290_v40 = vadd.f32 %v4392_v55, %v3620_v33  ;;  %v1681_v44 = vpack.c.bf16 %v1549_v26, %v1545_v22 }
 0x267   : > { %v2012_v59 = vpop.f32.mrf.mxu0  ;;  %v2301_v7 = vpop.f32.mrf.mxu1  ;;  %v1683_v63 = vpack.c.bf16 %v1551_v50, %v1547_v32  ;;  %v1548_v5 = vmax.f32 %v937_v18, 0.0  ;;  %v1559_v53 = vmax.f32 %v1302_v43, 0.0  ;;  %v1544_v30 = vmax.f32 %v933_v15, 0.0 }
 0x268   : > { %2535 = vst [vmem:[%s4461_s15 + $0x30] sm:$0xff] %v2299_v19  ;;  %v2013_v41 = vadd.f32 %v4443_v28, %v2012_v59  ;;  %v945_v19 = vadd.f32 %v4418_v27, %v3590_v38  ;;  %v1555_v25 = vmax.f32 %v1298_v29, 0.0 }
 0x269   : > { %v2014_v47 = vpop.f32.mrf.mxu0  ;;  %v2303_v0 = vpop.f32.mrf.mxu1  ;;  %v1680_v51 = vpack.c.bf16 %v1548_v5, %v1544_v30 }
 0x26a   : > { %v2302_v37 = vadd.f32 %v2301_v7, %v2013_v41  ;;  %v1557_v7 = vmax.f32 %v949_v45, 0.0  ;;  %v1546_v41 = vmax.f32 %v1286_v61, 0.0  ;;  %v1553_v27 = vmax.f32 %v945_v19, 0.0  ;;  %v4835_v47 = vld [vmem:[#allocation21_spill] sm:$0xff] }
 0x26b   : > { %v2017_v10 = vpop.f32.mrf.mxu0  ;;  %2208 = vmatmul.mubr.bf16.gmra.mxu0 %v1672_v13  ;;  %v2306_v14 = vpop.f32.mrf.mxu1  ;;  %2497 = vmatmul.mubr.bf16.gmra.mxu1 %v1674_v34  ;;  %v1550_v13 = vmax.f32 %v1290_v40, 0.0  ;;  %v947_v0 = vadd.f32 %v4835_v47, %v3618_v4 }
 0x26c   : > { %2536 = vst [vmem:[%s4461_s15 + $0x38] sm:$0xff] %v2302_v37  ;;  %v2018_v57 = vadd.f32 %v4443_v28, %v2017_v10  ;;  %2215 = vmatprep.mubr.bf16.mxu0 %v1677_v9  ;;  %2504 = vmatprep.mubr.bf16.mxu1 %v1679_v6  ;;  %v1300_v37 = vadd.f32 %v4836_v42, %v3620_v33 }
 0x26d   : > { %v2019_v17 = vpop.f32.mrf.mxu0  ;;  %v2308_v1 = vpop.f32.mrf.mxu1  ;;  %v1682_v60 = vpack.c.bf16 %v1550_v13, %v1546_v41  ;;  %v1685_v54 = vpack.c.bf16 %v1557_v7, %v1553_v27  ;;  %v1687_v10 = vpack.c.bf16 %v1559_v53, %v1555_v25 }
 0x26e   : > { %v2307_v23 = vadd.f32 %v2306_v14, %v2018_v57  ;;  %v4837_v14 = vld [vmem:[#allocation17_spill] sm:$0xff]  ;;  %v1296_v57 = vadd.f32 %v4838_v11, %v3620_v33  ;;  %v1556_v1 = vmax.f32 %v947_v0, 0.0  ;;  %v1558_v36 = vmax.f32 %v1300_v37, 0.0 }
 0x26f   : > { %v2020_v3 = vpop.f32.mrf.mxu0  ;;  %v2309_v48 = vpop.f32.mrf.mxu1  ;;  %v943_v52 = vadd.f32 %v4837_v14, %v3618_v4 }
 0x270   : > { %2537 = vst [vmem:[%s4461_s15 + $0x40] sm:$0xff] %v2307_v23  ;;  %v2021_v21 = vadd.f32 %v4443_v28, %v2020_v3  ;;  %v1554_v22 = vmax.f32 %v1296_v57, 0.0 }
 0x271   : > { %v2022_v62 = vpop.f32.mrf.mxu0  ;;  %v2311_v16 = vpop.f32.mrf.mxu1  ;;  %v1552_v4 = vmax.f32 %v943_v52, 0.0 }
 0x272   : > { %v2310_v20 = vadd.f32 %v2309_v48, %v2021_v21  ;;  %v1686_v32 = vpack.c.bf16 %v1558_v36, %v1554_v22 }
 0x273   : > { %v2025_v58 = vpop.f32.mrf.mxu0  ;;  %2216 = vmatmul.mubr.bf16.gmra.mxu0 %v1676_v12  ;;  %v2314_v55 = vpop.f32.mrf.mxu1  ;;  %2505 = vmatmul.mubr.bf16.gmra.mxu1 %v1678_v56  ;;  %v1684_v12 = vpack.c.bf16 %v1556_v1, %v1552_v4 }
 0x274   : > { %2538 = vst [vmem:[%s4461_s15 + $0x48] sm:$0xff] %v2310_v20  ;;  %v2026_v46 = vadd.f32 %v4443_v28, %v2025_v58  ;;  %2223 = vmatprep.mubr.bf16.mxu0 %v1681_v44  ;;  %2512 = vmatprep.mubr.bf16.mxu1 %v1683_v63 }
 0x275   : > { %v2027_v59 = vpop.f32.mrf.mxu0  ;;  %v2316_v35 = vpop.f32.mrf.mxu1 }
 0x276   : > { %v2315_v8 = vadd.f32 %v2314_v55, %v2026_v46 }
 0x277   : > { %v2028_v34 = vpop.f32.mrf.mxu0  ;;  %v2317_v38 = vpop.f32.mrf.mxu1 }
 0x278   : > { %2539 = vst [vmem:[%s4461_s15 + $0x50] sm:$0xff] %v2315_v8  ;;  %v2029_v39 = vadd.f32 %v4443_v28, %v2028_v34 }
 0x279   : > { %v2030_v9 = vpop.f32.mrf.mxu0  ;;  %v2319_v6 = vpop.f32.mrf.mxu1 }
 0x27a   : > { %v2318_v31 = vadd.f32 %v2317_v38, %v2029_v39 }
 0x27b   : > { %v2033_v49 = vpop.f32.mrf.mxu0  ;;  %2224 = vmatmul.mubr.bf16.gmra.mxu0 %v1680_v51  ;;  %v2322_v26 = vpop.f32.mrf.mxu1  ;;  %2513 = vmatmul.mubr.bf16.gmra.mxu1 %v1682_v60 }
 0x27c   : > { %2540 = vst [vmem:[%s4461_s15 + $0x58] sm:$0xff] %v2318_v31  ;;  %v2034_v17 = vadd.f32 %v4443_v28, %v2033_v49  ;;  %2231 = vmatprep.mubr.bf16.mxu0 %v1685_v54  ;;  %2520 = vmatprep.mubr.bf16.mxu1 %v1687_v10 }
 0x27d   : > { %v2035_v50 = vpop.f32.mrf.mxu0  ;;  %v2324_v23 = vpop.f32.mrf.mxu1 }
 0x27e   : > { %v2323_v24 = vadd.f32 %v2322_v26, %v2034_v17 }
 0x27f   : > { %v2036_v3 = vpop.f32.mrf.mxu0  ;;  %v2325_v33 = vpop.f32.mrf.mxu1 }
 0x280   : > { %2541 = vst [vmem:[%s4461_s15 + $0x60] sm:$0xff] %v2323_v24  ;;  %v2037_v48 = vadd.f32 %v4443_v28, %v2036_v3 }
 0x281   : > { %v2038_v21 = vpop.f32.mrf.mxu0  ;;  %v2327_v56 = vpop.f32.mrf.mxu1 }
 0x282   : > { %v2326_v18 = vadd.f32 %v2325_v33, %v2037_v48 }
 0x283   : > { %v2041_v40 = vpop.f32.mrf.mxu0  ;;  %2232 = vmatmul.mubr.bf16.gmra.mxu0 %v1684_v12  ;;  %v2330_v62 = vpop.f32.mrf.mxu1  ;;  %2521 = vmatmul.mubr.bf16.gmra.mxu1 %v1686_v32 }
 0x284   : > { %2542 = vst [vmem:[%s4461_s15 + $0x68] sm:$0xff] %v2326_v18  ;;  %v2042_v16 = vadd.f32 %v4443_v28, %v2041_v40 }
 0x285   : > { %v2043_v44 = vpop.f32.mrf.mxu0  ;;  %v2332_v45 = vpop.f32.mrf.mxu1 }
 0x286   : > { %v2331_v43 = vadd.f32 %v2330_v62, %v2042_v16 }
 0x287   : > { %v2044_v20 = vpop.f32.mrf.mxu0  ;;  %v2333_v63 = vpop.f32.mrf.mxu1 }
 0x288   : > { %2543 = vst [vmem:[%s4461_s15 + $0x70] sm:$0xff] %v2331_v43  ;;  %v2045_v15 = vadd.f32 %v4443_v28, %v2044_v20 }
 0x289   : > { %v2046_v61 = vpop.f32.mrf.mxu0  ;;  %v2335_v58 = vpop.f32.mrf.mxu1 }
 0x28a   : > { %v2334_v55 = vadd.f32 %v2333_v63, %v2045_v15 }
 0x28b   : > { %v2049_v19 = vpop.f32.mrf.mxu0  ;;  %v2338_v2 = vpop.f32.mrf.mxu1 }
 0x28c   : > { %2544 = vst [vmem:[%s4461_s15 + $0x78] sm:$0xff] %v2334_v55  ;;  %v2050_v29 = vadd.f32 %v4443_v28, %v2049_v19 }
 0x28d   : > { %v2051_v46 = vpop.f32.mrf.mxu0  ;;  %v2340_v5 = vpop.f32.mrf.mxu1 }
 0x28e   : > { %v2339_v13 = vadd.f32 %v2338_v2, %v2050_v29 }
 0x28f   : > { %v2052_v59 = vpop.f32.mrf.mxu0  ;;  %v2341_v35 = vpop.f32.mrf.mxu1 }
 0x290   : > { %2545 = vst [vmem:[%s4461_s15 + $0x80] sm:$0xff] %v2339_v13  ;;  %v2053_v7 = vadd.f32 %v4443_v28, %v2052_v59 }
 0x291   : > { %v2054_v53 = vpop.f32.mrf.mxu0  ;;  %v2343_v8 = vpop.f32.mrf.mxu1 }
 0x292   : > { %v2342_v30 = vadd.f32 %v2341_v35, %v2053_v7 }
 0x293   : > { %v2057_v41 = vpop.f32.mrf.mxu0  ;;  %v2346_v34 = vpop.f32.mrf.mxu1 }
 0x294   : > { %2546 = vst [vmem:[%s4461_s15 + $0x88] sm:$0xff] %v2342_v30  ;;  %v2058_v38 = vadd.f32 %v4443_v28, %v2057_v41 }
 0x295   : > { %v2059_v27 = vpop.f32.mrf.mxu0  ;;  %v2348_v25 = vpop.f32.mrf.mxu1 }
 0x296   : > { %v2347_v39 = vadd.f32 %v2346_v34, %v2058_v38 }
 0x297   : > { %v2060_v51 = vpop.f32.mrf.mxu0  ;;  %v2349_v60 = vpop.f32.mrf.mxu1 }
 0x298   : > { %2547 = vst [vmem:[%s4461_s15 + $0x90] sm:$0xff] %v2347_v39  ;;  %v2061_v47 = vadd.f32 %v4443_v28, %v2060_v51 }
 0x299   : > { %v2062_v0 = vpop.f32.mrf.mxu0  ;;  %v2351_v42 = vpop.f32.mrf.mxu1 }
 0x29a   : > { %v2350_v37 = vadd.f32 %v2349_v60, %v2061_v47 }
 0x29b   : > { %v2065_v9 = vpop.f32.mrf.mxu0  ;;  %v2354_v6 = vpop.f32.mrf.mxu1 }
 0x29c   : > { %2548 = vst [vmem:[%s4461_s15 + $0x98] sm:$0xff] %v2350_v37  ;;  %v2066_v31 = vadd.f32 %v4443_v28, %v2065_v9 }
 0x29d   : > { %v2067_v54 = vpop.f32.mrf.mxu0  ;;  %v2356_v10 = vpop.f32.mrf.mxu1 }
 0x29e   : > { %v2355_v14 = vadd.f32 %v2354_v6, %v2066_v31 }
 0x29f   : > { %v2068_v52 = vpop.f32.mrf.mxu0  ;;  %v2357_v11 = vpop.f32.mrf.mxu1 }
 0x2a0   : > { %2549 = vst [vmem:[%s4461_s15 + $0xa0] sm:$0xff] %v2355_v14  ;;  %v2069_v57 = vadd.f32 %v4443_v28, %v2068_v52 }
 0x2a1   : > { %v2070_v49 = vpop.f32.mrf.mxu0  ;;  %v2359_v26 = vpop.f32.mrf.mxu1 }
 0x2a2   : > { %v2358_v17 = vadd.f32 %v2357_v11, %v2069_v57 }
 0x2a3   : > { %v2073_v1 = vpop.f32.mrf.mxu0  ;;  %v2362_v36 = vpop.f32.mrf.mxu1 }
 0x2a4   : > { %2550 = vst [vmem:[%s4461_s15 + $0xa8] sm:$0xff] %v2358_v17  ;;  %v2074_v50 = vadd.f32 %v4443_v28, %v2073_v1 }
 0x2a5   : > { %v2075_v23 = vpop.f32.mrf.mxu0  ;;  %v2364_v24 = vpop.f32.mrf.mxu1 }
 0x2a6   : > { %v2363_v4 = vadd.f32 %v2362_v36, %v2074_v50 }
 0x2a7   : > { %v2076_v22 = vpop.f32.mrf.mxu0  ;;  %v2365_v3 = vpop.f32.mrf.mxu1 }
 0x2a8   : > { %2551 = vst [vmem:[%s4461_s15 + $0xb0] sm:$0xff] %v2363_v4  ;;  %v2077_v33 = vadd.f32 %v4443_v28, %v2076_v22 }
 0x2a9   : > { %v2078_v48 = vpop.f32.mrf.mxu0  ;;  %v2367_v12 = vpop.f32.mrf.mxu1 }
 0x2aa   : > { %v2366_v32 = vadd.f32 %v2365_v3, %v2077_v33 }
 0x2ab   : > { %v2081_v21 = vpop.f32.mrf.mxu0  ;;  %v2370_v56 = vpop.f32.mrf.mxu1 }
 0x2ac   : > { %2552 = vst [vmem:[%s4461_s15 + $0xb8] sm:$0xff] %v2366_v32  ;;  %v2082_v18 = vadd.f32 %v4443_v28, %v2081_v21 }
 0x2ad   : > { %v2083_v40 = vpop.f32.mrf.mxu0  ;;  %v2372_v62 = vpop.f32.mrf.mxu1 }
 0x2ae   : > { %v2371_v16 = vadd.f32 %v2370_v56, %v2082_v18 }
 0x2af   : > { %v2084_v44 = vpop.f32.mrf.mxu0  ;;  %v2373_v45 = vpop.f32.mrf.mxu1 }
 0x2b0   : > { %2553 = vst [vmem:[%s4461_s15 + $0xc0] sm:$0xff] %v2371_v16  ;;  %v2085_v43 = vadd.f32 %v4443_v28, %v2084_v44 }
 0x2b1   : > { %v2086_v20 = vpop.f32.mrf.mxu0  ;;  %v2375_v63 = vpop.f32.mrf.mxu1 }
 0x2b2   : > { %v2374_v15 = vadd.f32 %v2373_v45, %v2085_v43 }
 0x2b3   : > { %v2089_v61 = vpop.f32.mrf.mxu0  ;;  %v2378_v58 = vpop.f32.mrf.mxu1 }
 0x2b4   : > { %2554 = vst [vmem:[%s4461_s15 + $0xc8] sm:$0xff] %v2374_v15  ;;  %v2090_v55 = vadd.f32 %v4443_v28, %v2089_v61 }
 0x2b5   : > { %v2091_v19 = vpop.f32.mrf.mxu0  ;;  %v2380_v2 = vpop.f32.mrf.mxu1 }
 0x2b6   : > { %v2379_v29 = vadd.f32 %v2378_v58, %v2090_v55 }
 0x2b7   : > { %v2092_v46 = vpop.f32.mrf.mxu0  ;;  %v2381_v5 = vpop.f32.mrf.mxu1 }
 0x2b8   : > { %2555 = vst [vmem:[%s4461_s15 + $0xd0] sm:$0xff] %v2379_v29  ;;  %v2093_v13 = vadd.f32 %v4443_v28, %v2092_v46 }
 0x2b9   : > { %v2094_v59 = vpop.f32.mrf.mxu0  ;;  %v2383_v35 = vpop.f32.mrf.mxu1 }
 0x2ba   : > { %v2382_v7 = vadd.f32 %v2381_v5, %v2093_v13 }
 0x2bb   : > { %v2097_v53 = vpop.f32.mrf.mxu0  ;;  %v2386_v8 = vpop.f32.mrf.mxu1 }
 0x2bc   : > { %2556 = vst [vmem:[%s4461_s15 + $0xd8] sm:$0xff] %v2382_v7  ;;  %v2098_v30 = vadd.f32 %v4443_v28, %v2097_v53 }
 0x2bd   : > { %v2099_v41 = vpop.f32.mrf.mxu0  ;;  %v2388_v34 = vpop.f32.mrf.mxu1 }
 0x2be   : > { %v2387_v38 = vadd.f32 %v2386_v8, %v2098_v30 }
 0x2bf   : > { %v2100_v27 = vpop.f32.mrf.mxu0  ;;  %v2389_v25 = vpop.f32.mrf.mxu1 }
 0x2c0   : > { %2557 = vst [vmem:[%s4461_s15 + $0xe0] sm:$0xff] %v2387_v38  ;;  %v2101_v39 = vadd.f32 %v4443_v28, %v2100_v27 }
 0x2c1   : > { %v2102_v51 = vpop.f32.mrf.mxu0  ;;  %v2391_v60 = vpop.f32.mrf.mxu1 }
 0x2c2   : > { %v2390_v47 = vadd.f32 %v2389_v25, %v2101_v39 }
 0x2c3   : > { %v2105_v0 = vpop.f32.mrf.mxu0  ;;  %v2394_v42 = vpop.f32.mrf.mxu1 }
 0x2c4   : > { %2558 = vst [vmem:[%s4461_s15 + $0xe8] sm:$0xff] %v2390_v47  ;;  %v2106_v37 = vadd.f32 %v4443_v28, %v2105_v0 }
 0x2c5   : > { %v2107_v9 = vpop.f32.mrf.mxu0  ;;  %v2396_v6 = vpop.f32.mrf.mxu1 }
 0x2c6   : > { %v2395_v31 = vadd.f32 %v2394_v42, %v2106_v37 }
 0x2c7   : > { %v2108_v54 = vpop.f32.mrf.mxu0  ;;  %v2397_v10 = vpop.f32.mrf.mxu1 }
 0x2c8   : > { %2559 = vst [vmem:[%s4461_s15 + $0xf0] sm:$0xff] %v2395_v31  ;;  %v2109_v14 = vadd.f32 %v4443_v28, %v2108_v54 }
 0x2c9   : > { %v2110_v52 = vpop.f32.mrf.mxu0  ;;  %v2399_v11 = vpop.f32.mrf.mxu1 }
 0x2ca   : > { %v2398_v57 = vadd.f32 %v2397_v10, %v2109_v14 }
 0x2cb   : > { %v2113_v49 = vpop.f32.mrf.mxu0  ;;  %v2402_v26 = vpop.f32.mrf.mxu1 }
 0x2cc   : > { %2560 = vst [vmem:[%s4461_s15 + $0xf8] sm:$0xff] %v2398_v57  ;;  %v2114_v17 = vadd.f32 %v4443_v28, %v2113_v49 }
 0x2cd   : > { %v2115_v1 = vpop.f32.mrf.mxu0  ;;  %v2404_v36 = vpop.f32.mrf.mxu1 }
 0x2ce   : > { %v2403_v50 = vadd.f32 %v2402_v26, %v2114_v17 }
 0x2cf   : > { %v2116_v23 = vpop.f32.mrf.mxu0  ;;  %v2405_v24 = vpop.f32.mrf.mxu1 }
 0x2d0   : > { %2561 = vst [vmem:[%s4461_s15 + $0x100] sm:$0xff] %v2403_v50  ;;  %v2117_v4 = vadd.f32 %v4443_v28, %v2116_v23 }
 0x2d1   : > { %v2118_v22 = vpop.f32.mrf.mxu0  ;;  %v2407_v3 = vpop.f32.mrf.mxu1 }
 0x2d2   : > { %v2406_v33 = vadd.f32 %v2405_v24, %v2117_v4 }
 0x2d3   : > { %v2121_v48 = vpop.f32.mrf.mxu0  ;;  %v2410_v12 = vpop.f32.mrf.mxu1 }
 0x2d4   : > { %2562 = vst [vmem:[%s4461_s15 + $0x108] sm:$0xff] %v2406_v33  ;;  %v2122_v32 = vadd.f32 %v4443_v28, %v2121_v48 }
 0x2d5   : > { %v2123_v21 = vpop.f32.mrf.mxu0  ;;  %v2412_v56 = vpop.f32.mrf.mxu1 }
 0x2d6   : > { %v2411_v18 = vadd.f32 %v2410_v12, %v2122_v32 }
 0x2d7   : > { %v2124_v40 = vpop.f32.mrf.mxu0  ;;  %v2413_v62 = vpop.f32.mrf.mxu1 }
 0x2d8   : > { %2563 = vst [vmem:[%s4461_s15 + $0x110] sm:$0xff] %v2411_v18  ;;  %v2125_v16 = vadd.f32 %v4443_v28, %v2124_v40 }
 0x2d9   : > { %v2126_v44 = vpop.f32.mrf.mxu0  ;;  %v2415_v45 = vpop.f32.mrf.mxu1 }
 0x2da   : > { %v2414_v43 = vadd.f32 %v2413_v62, %v2125_v16 }
 0x2db   : > { %v2129_v20 = vpop.f32.mrf.mxu0  ;;  %v2418_v63 = vpop.f32.mrf.mxu1 }
 0x2dc   : > { %2564 = vst [vmem:[%s4461_s15 + $0x118] sm:$0xff] %v2414_v43  ;;  %v2130_v15 = vadd.f32 %v4443_v28, %v2129_v20 }
 0x2dd   : > { %v2131_v61 = vpop.f32.mrf.mxu0  ;;  %v2420_v58 = vpop.f32.mrf.mxu1 }
 0x2de   : > { %v2419_v55 = vadd.f32 %v2418_v63, %v2130_v15 }
 0x2df   : > { %v2132_v19 = vpop.f32.mrf.mxu0  ;;  %v2421_v2 = vpop.f32.mrf.mxu1 }
 0x2e0   : > { %2565 = vst [vmem:[%s4461_s15 + $0x120] sm:$0xff] %v2419_v55  ;;  %v2133_v29 = vadd.f32 %v4443_v28, %v2132_v19 }
 0x2e1   : > { %v2134_v46 = vpop.f32.mrf.mxu0  ;;  %v2423_v5 = vpop.f32.mrf.mxu1 }
 0x2e2   : > { %v2422_v13 = vadd.f32 %v2421_v2, %v2133_v29 }
 0x2e3   : > { %v2137_v59 = vpop.f32.mrf.mxu0  ;;  %v2426_v35 = vpop.f32.mrf.mxu1 }
 0x2e4   : > { %2566 = vst [vmem:[%s4461_s15 + $0x128] sm:$0xff] %v2422_v13  ;;  %v2138_v7 = vadd.f32 %v4443_v28, %v2137_v59 }
 0x2e5   : > { %v2139_v53 = vpop.f32.mrf.mxu0  ;;  %v2428_v8 = vpop.f32.mrf.mxu1 }
 0x2e6   : > { %v2427_v30 = vadd.f32 %v2426_v35, %v2138_v7 }
 0x2e7   : > { %v2140_v41 = vpop.f32.mrf.mxu0  ;;  %v2429_v34 = vpop.f32.mrf.mxu1 }
 0x2e8   : > { %2567 = vst [vmem:[%s4461_s15 + $0x130] sm:$0xff] %v2427_v30  ;;  %v2141_v38 = vadd.f32 %v4443_v28, %v2140_v41 }
 0x2e9   : > { %v2142_v27 = vpop.f32.mrf.mxu0  ;;  %v2431_v25 = vpop.f32.mrf.mxu1 }
 0x2ea   : > { %v2430_v39 = vadd.f32 %v2429_v34, %v2141_v38 }
 0x2eb   : > { %v2145_v51 = vpop.f32.mrf.mxu0  ;;  %v2434_v60 = vpop.f32.mrf.mxu1 }
 0x2ec   : > { %2568 = vst [vmem:[%s4461_s15 + $0x138] sm:$0xff] %v2430_v39  ;;  %v2146_v47 = vadd.f32 %v4443_v28, %v2145_v51 }
 0x2ed   : > { %v2147_v0 = vpop.f32.mrf.mxu0  ;;  %v2436_v42 = vpop.f32.mrf.mxu1 }
 0x2ee   : > { %v2435_v37 = vadd.f32 %v2434_v60, %v2146_v47 }
 0x2ef   : > { %v2148_v9 = vpop.f32.mrf.mxu0  ;;  %v2437_v6 = vpop.f32.mrf.mxu1 }
 0x2f0   : > { %2569 = vst [vmem:[%s4461_s15 + $0x140] sm:$0xff] %v2435_v37  ;;  %v2149_v31 = vadd.f32 %v4443_v28, %v2148_v9  ;;  %v4648_v37 = vld [vmem:[%s4730_s4] ss:$0 sm:$0xff] }
 0x2f1   : > { %v2150_v54 = vpop.f32.mrf.mxu0  ;;  %v2439_v10 = vpop.f32.mrf.mxu1 }
 0x2f2   : > { %v2438_v14 = vadd.f32 %v2437_v6, %v2149_v31 }
 0x2f3   : > { %v2153_v52 = vpop.f32.mrf.mxu0  ;;  %v2442_v11 = vpop.f32.mrf.mxu1 }
 0x2f4   : > { %2570 = vst [vmem:[%s4461_s15 + $0x148] sm:$0xff] %v2438_v14  ;;  %v2154_v57 = vadd.f32 %v4443_v28, %v2153_v52 }
 0x2f5   : > { %v2155_v49 = vpop.f32.mrf.mxu0  ;;  %v2444_v26 = vpop.f32.mrf.mxu1 }
 0x2f6   : > { %v2443_v17 = vadd.f32 %v2442_v11, %v2154_v57 }
 0x2f7   : > { %v2156_v1 = vpop.f32.mrf.mxu0  ;;  %v2445_v36 = vpop.f32.mrf.mxu1 }
 0x2f8   : > { %2571 = vst [vmem:[%s4461_s15 + $0x150] sm:$0xff] %v2443_v17  ;;  %v2157_v50 = vadd.f32 %v4443_v28, %v2156_v1 }
 0x2f9   : > { %v2158_v23 = vpop.f32.mrf.mxu0  ;;  %v2447_v24 = vpop.f32.mrf.mxu1 }
 0x2fa   : > { %v2446_v4 = vadd.f32 %v2445_v36, %v2157_v50 }
 0x2fb   : > { %v2161_v22 = vpop.f32.mrf.mxu0  ;;  %v2450_v3 = vpop.f32.mrf.mxu1 }
 0x2fc   : > { %2572 = vst [vmem:[%s4461_s15 + $0x158] sm:$0xff] %v2446_v4  ;;  %v2162_v33 = vadd.f32 %v4443_v28, %v2161_v22 }
 0x2fd   : > { %v2163_v48 = vpop.f32.mrf.mxu0  ;;  %v2452_v12 = vpop.f32.mrf.mxu1 }
 0x2fe   : > { %v2451_v32 = vadd.f32 %v2450_v3, %v2162_v33 }
 0x2ff   : > { %v2164_v21 = vpop.f32.mrf.mxu0  ;;  %v2453_v56 = vpop.f32.mrf.mxu1 }
 0x300   : > { %2573 = vst [vmem:[%s4461_s15 + $0x160] sm:$0xff] %v2451_v32  ;;  %v2165_v18 = vadd.f32 %v4443_v28, %v2164_v21 }
 0x301   : > { %v2166_v40 = vpop.f32.mrf.mxu0  ;;  %v2455_v62 = vpop.f32.mrf.mxu1 }
 0x302   : > { %v2454_v16 = vadd.f32 %v2453_v56, %v2165_v18 }
 0x303   : > { %v2169_v44 = vpop.f32.mrf.mxu0  ;;  %v2458_v45 = vpop.f32.mrf.mxu1 }
 0x304   : > { %2574 = vst [vmem:[%s4461_s15 + $0x168] sm:$0xff] %v2454_v16  ;;  %v2170_v43 = vadd.f32 %v4443_v28, %v2169_v44 }
 0x305   : > { %v2171_v20 = vpop.f32.mrf.mxu0  ;;  %v2460_v63 = vpop.f32.mrf.mxu1 }
 0x306   : > { %v2459_v15 = vadd.f32 %v2458_v45, %v2170_v43 }
 0x307   : > { %v2172_v61 = vpop.f32.mrf.mxu0  ;;  %v2461_v58 = vpop.f32.mrf.mxu1 }
 0x308   : > { %2575 = vst [vmem:[%s4461_s15 + $0x170] sm:$0xff] %v2459_v15  ;;  %v2173_v55 = vadd.f32 %v4443_v28, %v2172_v61 }
 0x309   : > { %v2174_v19 = vpop.f32.mrf.mxu0  ;;  %v2463_v2 = vpop.f32.mrf.mxu1 }
 0x30a   : > { %v2462_v29 = vadd.f32 %v2461_v58, %v2173_v55 }
 0x30b   : > { %v2177_v46 = vpop.f32.mrf.mxu0  ;;  %v2466_v5 = vpop.f32.mrf.mxu1 }
 0x30c   : > { %2576 = vst [vmem:[%s4461_s15 + $0x178] sm:$0xff] %v2462_v29  ;;  %v2178_v13 = vadd.f32 %v4443_v28, %v2177_v46 }
 0x30d   : > { %v2179_v59 = vpop.f32.mrf.mxu0  ;;  %v2468_v35 = vpop.f32.mrf.mxu1 }
 0x30e   : > { %v2467_v7 = vadd.f32 %v2466_v5, %v2178_v13 }
 0x30f   : > { %v2180_v53 = vpop.f32.mrf.mxu0  ;;  %v2469_v8 = vpop.f32.mrf.mxu1 }
 0x310   : > { %2577 = vst [vmem:[%s4461_s15 + $0x180] sm:$0xff] %v2467_v7  ;;  %v2181_v30 = vadd.f32 %v4443_v28, %v2180_v53 }
 0x311   : > { %v2182_v41 = vpop.f32.mrf.mxu0  ;;  %v2471_v34 = vpop.f32.mrf.mxu1 }
 0x312   : > { %v2470_v38 = vadd.f32 %v2469_v8, %v2181_v30 }
 0x313   : > { %v2185_v27 = vpop.f32.mrf.mxu0  ;;  %v2474_v25 = vpop.f32.mrf.mxu1 }
 0x314   : > { %2578 = vst [vmem:[%s4461_s15 + $0x188] sm:$0xff] %v2470_v38  ;;  %v2186_v39 = vadd.f32 %v4443_v28, %v2185_v27 }
 0x315   : > { %v2187_v51 = vpop.f32.mrf.mxu0  ;;  %v2476_v60 = vpop.f32.mrf.mxu1 }
 0x316   : > { %v2475_v47 = vadd.f32 %v2474_v25, %v2186_v39 }
 0x317   : > { %v2188_v0 = vpop.f32.mrf.mxu0  ;;  %v2477_v42 = vpop.f32.mrf.mxu1 }
 0x318   : > { %2579 = vst [vmem:[%s4461_s15 + $0x190] sm:$0xff] %v2475_v47  ;;  %v2189_v9 = vadd.f32 %v4648_v37, %v2188_v0 }
 0x319   : > { %v2190_v6 = vpop.f32.mrf.mxu0  ;;  %v2479_v31 = vpop.f32.mrf.mxu1 }
 0x31a   : > { %v2478_v54 = vadd.f32 %v2477_v42, %v2189_v9 }
 0x31b   : > { %v2193_v10 = vpop.f32.mrf.mxu0  ;;  %v2482_v28 = vpop.f32.mrf.mxu1 }
 0x31c   : > { %2580 = vst [vmem:[%s4461_s15 + $0x198] sm:$0xff] %v2478_v54  ;;  %v2194_v14 = vadd.f32 %v4648_v37, %v2193_v10 }
 0x31d   : > { %v2195_v52 = vpop.f32.mrf.mxu0  ;;  %v2484_v11 = vpop.f32.mrf.mxu1 }
 0x31e   : > { %v2483_v57 = vadd.f32 %v2482_v28, %v2194_v14 }
 0x31f   : > { %v2196_v49 = vpop.f32.mrf.mxu0  ;;  %v2485_v26 = vpop.f32.mrf.mxu1 }
 0x320   : > { %2581 = vst [vmem:[%s4461_s15 + $0x1a0] sm:$0xff] %v2483_v57  ;;  %v2197_v17 = vadd.f32 %v4648_v37, %v2196_v49 }
 0x321   : > { %v2198_v1 = vpop.f32.mrf.mxu0  ;;  %v2487_v36 = vpop.f32.mrf.mxu1 }
 0x322   : > { %v2486_v50 = vadd.f32 %v2485_v26, %v2197_v17 }
 0x323   : > { %v2201_v23 = vpop.f32.mrf.mxu0  ;;  %v2490_v24 = vpop.f32.mrf.mxu1 }
 0x324   : > { %2582 = vst [vmem:[%s4461_s15 + $0x1a8] sm:$0xff] %v2486_v50  ;;  %v2202_v4 = vadd.f32 %v4648_v37, %v2201_v23 }
 0x325   : > { %v2203_v22 = vpop.f32.mrf.mxu0  ;;  %v2492_v3 = vpop.f32.mrf.mxu1 }
 0x326   : > { %v2491_v33 = vadd.f32 %v2490_v24, %v2202_v4 }
 0x327   : > { %v2204_v48 = vpop.f32.mrf.mxu0  ;;  %v2493_v12 = vpop.f32.mrf.mxu1 }
 0x328   : > { %2583 = vst [vmem:[%s4461_s15 + $0x1b0] sm:$0xff] %v2491_v33  ;;  %v2205_v32 = vadd.f32 %v4648_v37, %v2204_v48 }
 0x329   : > { %v2206_v21 = vpop.f32.mrf.mxu0  ;;  %v2495_v56 = vpop.f32.mrf.mxu1 }
 0x32a   : > { %v2494_v18 = vadd.f32 %v2493_v12, %v2205_v32 }
 0x32b   : > { %v2209_v40 = vpop.f32.mrf.mxu0  ;;  %v2498_v62 = vpop.f32.mrf.mxu1 }
 0x32c   : > { %2584 = vst [vmem:[%s4461_s15 + $0x1b8] sm:$0xff] %v2494_v18  ;;  %v2210_v16 = vadd.f32 %v4648_v37, %v2209_v40 }
 0x32d   : > { %v2211_v44 = vpop.f32.mrf.mxu0  ;;  %v2500_v45 = vpop.f32.mrf.mxu1 }
 0x32e   : > { %v2499_v43 = vadd.f32 %v2498_v62, %v2210_v16 }
 0x32f   : > { %v2212_v20 = vpop.f32.mrf.mxu0  ;;  %v2501_v63 = vpop.f32.mrf.mxu1 }
 0x330   : > { %2585 = vst [vmem:[%s4461_s15 + $0x1c0] sm:$0xff] %v2499_v43  ;;  %v2213_v15 = vadd.f32 %v4648_v37, %v2212_v20 }
 0x331   : > { %v2214_v61 = vpop.f32.mrf.mxu0  ;;  %v2503_v58 = vpop.f32.mrf.mxu1 }
 0x332   : > { %v2502_v55 = vadd.f32 %v2501_v63, %v2213_v15 }
 0x333   : > { %v2217_v19 = vpop.f32.mrf.mxu0  ;;  %v2506_v2 = vpop.f32.mrf.mxu1 }
 0x334   : > { %2586 = vst [vmem:[%s4461_s15 + $0x1c8] sm:$0xff] %v2502_v55  ;;  %v2218_v29 = vadd.f32 %v4648_v37, %v2217_v19 }
 0x335   : > { %v2219_v46 = vpop.f32.mrf.mxu0  ;;  %v2508_v5 = vpop.f32.mrf.mxu1 }
 0x336   : > { %v2507_v13 = vadd.f32 %v2506_v2, %v2218_v29 }
 0x337   : > { %v2220_v59 = vpop.f32.mrf.mxu0  ;;  %v2509_v35 = vpop.f32.mrf.mxu1 }
 0x338   : > { %2587 = vst [vmem:[%s4461_s15 + $0x1d0] sm:$0xff] %v2507_v13  ;;  %v2221_v7 = vadd.f32 %v4648_v37, %v2220_v59 }
 0x339   : > { %v2222_v53 = vpop.f32.mrf.mxu0  ;;  %v2511_v8 = vpop.f32.mrf.mxu1 }
 0x33a   : > { %v2510_v30 = vadd.f32 %v2509_v35, %v2221_v7 }
 0x33b   : > { %v2225_v41 = vpop.f32.mrf.mxu0  ;;  %v2514_v34 = vpop.f32.mrf.mxu1 }
 0x33c   : > { %2588 = vst [vmem:[%s4461_s15 + $0x1d8] sm:$0xff] %v2510_v30  ;;  %v2226_v38 = vadd.f32 %v4648_v37, %v2225_v41 }
 0x33d   : > { %v2227_v27 = vpop.f32.mrf.mxu0  ;;  %v2516_v25 = vpop.f32.mrf.mxu1 }
 0x33e   : > { %v2515_v39 = vadd.f32 %v2514_v34, %v2226_v38 }
 0x33f   : > { %v2228_v51 = vpop.f32.mrf.mxu0  ;;  %v2517_v60 = vpop.f32.mrf.mxu1 }
 0x340   : > { %2589 = vst [vmem:[%s4461_s15 + $0x1e0] sm:$0xff] %v2515_v39  ;;  %v2229_v47 = vadd.f32 %v4648_v37, %v2228_v51 }
 0x341   : > { %v2230_v0 = vpop.f32.mrf.mxu0  ;;  %v2519_v42 = vpop.f32.mrf.mxu1 }
 0x342   : > { %v2518_v9 = vadd.f32 %v2517_v60, %v2229_v47 }
 0x343   : > { %v2233_v6 = vpop.f32.mrf.mxu0  ;;  %v2522_v31 = vpop.f32.mrf.mxu1 }
 0x344   : > { %2590 = vst [vmem:[%s4461_s15 + $0x1e8] sm:$0xff] %v2518_v9  ;;  %v2234_v54 = vadd.f32 %v4648_v37, %v2233_v6 }
 0x345   : > { %v2235_v10 = vpop.f32.mrf.mxu0  ;;  %v2524_v28 = vpop.f32.mrf.mxu1 }
 0x346   : > { %v2523_v14 = vadd.f32 %v2522_v31, %v2234_v54 }
 0x347   : > { %v2236_v52 = vpop.f32.mrf.mxu0  ;;  %v2525_v11 = vpop.f32.mrf.mxu1 }
 0x348   : > { %2591 = vst [vmem:[%s4461_s15 + $0x1f0] sm:$0xff] %v2523_v14  ;;  %v2237_v57 = vadd.f32 %v4648_v37, %v2236_v52 }
 0x349   : > { %v2238_v49 = vpop.f32.mrf.mxu0  ;;  %v2527_v26 = vpop.f32.mrf.mxu1 }
 0x34a   : > { %v2526_v17 = vadd.f32 %v2525_v11, %v2237_v57 }
 0x34c   : > { %2592 = vst [vmem:[%s4461_s15 + $0x1f8] sm:$0xff] %v2526_v17 }
 0x34d   : > { %3082 = shalt.err (!%p3079_p9)
}
 0x34e   : > { %s3083_s8 = scalar_lea.hbm %s4680_s16, 8192  ;;  %s3087_s15 = scalar_lea.hbm %s4731_s5, 16384 }
 0x34f   : > { %p3084_p1 = scmp.ne.s32.totalorder %s4680_s16, %s3083_s8  ;;  %p3088_p11 = scmp.lt.s32.totalorder %s4680_s16, %s4731_s5 }
 0x350   : > { %p3089_p13 = scmp.lt.s32.totalorder %s3087_s15, %s3083_s8 }
 0x351   : > { %p3085_p8 = pnand %p3084_p1, %p4839_p6 }
 0x352   : > { %p3090_p2 = por %p3089_p13, %p3088_p11 }
 0x353   : > { %p3086_p10 = pneg %p3085_p8 }
 0x355   : > { %p3091_p4 = pnand %p3090_p2, %p3086_p10 }
 0x357   : > { %3094 = shalt.err (!%p3091_p4)
}
 0x358   : > { %s3155_s27 = smov 128   ;;  %s3156_s13 = smov 8  }
 0x359   : > { %2810 = dma.vmem_to_hbm [thread:$0]  (%p4839_p6), %s4682_s29, 8192, %s4680_s16, %s2594_s22, %s3155_s27, %s3155_s27, %s3156_s13  }
 0x35a PF: > { %s2622_s14 = sand.u32 1, %s3129_s18   ;;  %p4840_p12 = scmp.ne.s32.totalorder %s4737_s25, 0 }
 0x35b   : > { %p4841_p0 = scmp.ge.s32.totalorder %s3141_s21, 2  ;;  %s2623_s28 = scalar_lea.sflag [#allocation4], %s2622_s14 }
 0x35d   : > { %p2827_p5 = pnand %p4841_p0, %p4840_p12 }
 0x35f   : > { %p2828_p3 = pneg %p2827_p5 }
 0x361   : > { %3124 = dma.done.wait (%p2828_p3), %s2623_s28, 8192  }
 0x362   : > { %3126 = vsyncadd (%p2828_p3), %s2623_s28, 4294959104  ;;  %p20_p7 = scmp.ge.s32.totalorder %s3267_s6, 4   ;;  %s4842_s18 = smov %s3133_s19 }
 0x363   : > { %s4843_s19 = smov %s3137_s20  ;;  %s4844_s20 = smov %s3277_s10 }
 0x364   : > { %s4845_s21 = smov %s3267_s6  ;;  %22 = sbr.rel (!%p20_p7) target bundleno = 7 (0x7), region = 97 }
 0x369   :  { %2628 = vsyncpa [#allocation3], 1 }
 0x36a   :  { %2630 = vsyncpa [#allocation3 + $0x1], 1 }
 0x36b   :  { %2631 = vsyncpa [#allocation6], 1 }
 0x36c   :  { %2632 = vsyncpa [#allocation9], 1 }
 0x36d   :  { %2633 = vsyncpa [#allocation4], 1 }
 0x36e   :  { %2635 = vsyncpa [#allocation4 + $0x1], 1 }

</bundles_post_ra>
